<compile_context>
chip_gen: v7x
topology: tpu7x:2x2x1
jax: 0.10.0
libtpu: 0.0.40
codegen_flags: <defaults>
</compile_context>

<pallas_src>
import numpy as np
import jax
import jax.numpy as jnp
from jax import lax
from jax.experimental import pallas as pl
from jax.experimental.pallas import tpu as pltpu


def lstm_kernel(gx_ref,    # (T, BB, 4H) f32 : precomputed x @ W_ih0^T + (b_ih0 + b_hh0)
                wbig_ref,  # (2H, 8H) bf16  : [[whh0, wih1], [0, whh1]] (transposed weights)
                b1_ref,    # (1, 4H)  f32   : b_ih1 + b_hh1
                wfc_ref,   # (H, Op)  bf16  : fc weight (lane-padded)
                bfc_ref,   # (1, Op)  f32   : fc bias (lane-padded)
                out_ref):  # (BB, Op) f32
    T, BB, G4 = gx_ref.shape
    H = G4 // 4

    def sig(x):
        # sigmoid(x) == 0.5 * (tanh(x/2) + 1): single EUP push, no exact divide.
        return 0.5 * jnp.tanh(0.5 * x) + 0.5

    def gate_split(gates):
        i = sig(gates[:, 0 * H:1 * H])
        f = sig(gates[:, 1 * H:2 * H])
        g = jnp.tanh(gates[:, 2 * H:3 * H])
        o = sig(gates[:, 3 * H:4 * H])
        return i, f, g, o

    # Hoist the layer-1 bias broadcast out of the recurrent loop.
    b1 = jnp.broadcast_to(b1_ref[...], (BB, 4 * H))

    # Carry:
    #   hc0 = h0(t) @ whh0^T   (layer-0 recurrent gate contribution, f32)
    #   c0, h1, c1             (cell/hidden states, f32)
    def step(t, carry):
        hc0, c0, h1, c1 = carry

        # ---- Layer 0 gates: precomputed input part + carried recurrent part ----
        gates0 = gx_ref[t] + hc0
        i0, f0, g0, o0 = gate_split(gates0)
        c0n = f0 * c0 + i0 * g0
        h0n = o0 * jnp.tanh(c0n)

        # Dropout(p=0.2) between layers: identity in eval/inference mode.

        # ---- Single fused MXU launch per step (bf16 operands, f32 accumulate):
        #   [h0n, h1] @ [[whh0, wih1], [0, whh1]]
        #     -> cols [0,4H)  = h0n @ whh0      (layer-0 recurrence for step t+1)
        #     -> cols [4H,8H) = h0n@wih1 + h1@whh1  (layer-1 gates for step t)
        lhs = jnp.concatenate([h0n, h1], axis=-1).astype(jnp.bfloat16)
        z = jnp.dot(lhs, wbig_ref[...], preferred_element_type=jnp.float32)
        hc0n = z[:, :4 * H]
        gates1 = z[:, 4 * H:] + b1

        i1, f1, g1, o1 = gate_split(gates1)
        c1n = f1 * c1 + i1 * g1
        h1n = o1 * jnp.tanh(c1n)

        return (hc0n, c0n, h1n, c1n)

    zg = jnp.zeros((BB, 4 * H), jnp.float32)
    zh = jnp.zeros((BB, H), jnp.float32)
    _, _, h1, _ = lax.fori_loop(0, T, step, (zg, zh, zh, zh), unroll=min(T, 8))

    # ---- FC head on the last layer's final hidden state (lane-dense store) ----
    out_ref[...] = (jnp.dot(h1.astype(jnp.bfloat16), wfc_ref[...],
                            preferred_element_type=jnp.float32) + bfc_ref[...])


def lstm_position_predictor(x, params):
    """x: (B, T, D) batch_first float32. Returns (B, output_size) float32."""
    B, T, D = x.shape
    H = params["w_hh0"].shape[1]          # hidden_size
    O = params["w_fc"].shape[0]           # output_size
    assert H % 128 == 0, "hidden_size must be a multiple of 128 (lane width); default 128 OK"

    Op = ((O + 127) // 128) * 128         # lane-pad fc output
    Bp = ((B + 7) // 8) * 8               # sublane-pad batch
    BB = min(Bp, 64)                      # batch block (grid shards across TCs if Bp > BB)
    Bp = ((Bp + BB - 1) // BB) * BB

    # ---- Non-recurrent layer-0 input projection done in XLA (lane-sparse D) ----
    x_tm = jnp.transpose(x, (1, 0, 2))                               # (T, B, D)
    x_tm = jnp.pad(x_tm, ((0, 0), (0, Bp - B), (0, 0)))              # (T, Bp, D)
    b0 = (params["b_ih0"] + params["b_hh0"]).reshape(1, 1, 4 * H)
    gx = jnp.einsum("tbd,gd->tbg", x_tm, params["w_ih0"],
                    preferred_element_type=jnp.float32) + b0         # (T, Bp, 4H) f32

    # ---- Stacked recurrent weight block (bf16) + biases ----
    whh0_t = params["w_hh0"].T                                       # (H, 4H)
    wih1_t = params["w_ih1"].T                                       # (H, 4H)
    whh1_t = params["w_hh1"].T                                       # (H, 4H)
    wbig = jnp.concatenate(
        [jnp.concatenate([whh0_t, wih1_t], axis=1),
         jnp.concatenate([jnp.zeros((H, 4 * H), jnp.float32), whh1_t], axis=1)],
        axis=0).astype(jnp.bfloat16)                                 # (2H, 8H)
    b1 = (params["b_ih1"] + params["b_hh1"]).reshape(1, 4 * H)

    # fc head, zero-padded to a lane-dense output width; bf16 weights.
    wfc = (jnp.zeros((H, Op), jnp.float32).at[:, :O].set(params["w_fc"].T)
           .astype(jnp.bfloat16))
    bfc = jnp.zeros((1, Op), jnp.float32).at[:, :O].set(params["b_fc"].reshape(1, O))

    out = pl.pallas_call(
        lstm_kernel,
        out_shape=jax.ShapeDtypeStruct((Bp, Op), jnp.float32),
        grid_spec=pltpu.PrefetchScalarGridSpec(
            num_scalar_prefetch=0,
            grid=(Bp // BB,),
            in_specs=[
                pl.BlockSpec((T, BB, 4 * H), lambda b: (0, b, 0)),   # gx: batch-chunked
                pl.BlockSpec((2 * H, 8 * H), lambda b: (0, 0)),      # weights: resident
                pl.BlockSpec((1, 4 * H), lambda b: (0, 0)),
                pl.BlockSpec((H, Op), lambda b: (0, 0)),
                pl.BlockSpec((1, Op), lambda b: (0, 0)),
            ],
            out_specs=pl.BlockSpec((BB, Op), lambda b: (b, 0)),
        ),
        compiler_params=pltpu.CompilerParams(
            dimension_semantics=("parallel",)),
    )(gx, wbig, b1, wfc, bfc)

    return out[:B, :O]


def _ref_forward(x, params):
    """Pure-JAX f32 reference matching PyTorch nn.LSTM (eval) + Linear."""
    B, T, D = x.shape
    H = params["w_hh0"].shape[1]

    def cell(inp, h, c, wih, whh, bih, bhh):
        gates = inp @ wih.T + bih + h @ whh.T + bhh
        i, f, g, o = jnp.split(gates, 4, axis=-1)
        i, f, o = jax.nn.sigmoid(i), jax.nn.sigmoid(f), jax.nn.sigmoid(o)
        g = jnp.tanh(g)
        c_new = f * c + i * g
        return o * jnp.tanh(c_new), c_new

    h0 = c0 = h1 = c1 = jnp.zeros((B, H), jnp.float32)
    for t in range(T):
        h0, c0 = cell(x[:, t], h0, c0, params["w_ih0"], params["w_hh0"],
                      params["b_ih0"], params["b_hh0"])
        h1, c1 = cell(h0, h1, c1, params["w_ih1"], params["w_hh1"],
                      params["b_ih1"], params["b_hh1"])
    return h1 @ params["w_fc"].T + params["b_fc"]


def init_params(key, input_size, hidden_size, output_size):
    """Deterministic init, PyTorch-style uniform(-1/sqrt(H), 1/sqrt(H))."""
    k = 1.0 / np.sqrt(hidden_size)
    keys = jax.random.split(key, 10)
    u = lambda kk, shape: jax.random.uniform(kk, shape, jnp.float32, -k, k)
    H4 = 4 * hidden_size
    return {
        "w_ih0": u(keys[0], (H4, input_size)),
        "w_hh0": u(keys[1], (H4, hidden_size)),
        "b_ih0": u(keys[2], (H4,)),
        "b_hh0": u(keys[3], (H4,)),
        "w_ih1": u(keys[4], (H4, hidden_size)),
        "w_hh1": u(keys[5], (H4, hidden_size)),
        "b_ih1": u(keys[6], (H4,)),
        "b_hh1": u(keys[7], (H4,)),
        "w_fc":  u(keys[8], (output_size, hidden_size)),
        "b_fc":  u(keys[9], (output_size,)),
    }


if __name__ == "__main__":
    # batch=2, seq=8, input_size=16, hidden_size=128 (module default), output=2
    B, T, D, H, O = 2, 8, 16, 128, 2
    key = jax.random.PRNGKey(0)
    kx, kp = jax.random.split(key)
    x = jax.random.normal(kx, (B, T, D), jnp.float32)
    params = init_params(kp, D, H, O)

    out = lstm_position_predictor(x, params)
    out = jax.block_until_ready(out)

    ref = _ref_forward(x, params)
    assert out.shape == (B, O)
    # bf16 recurrent-path weights -> looser tolerance than a pure-f32 kernel.
    np.testing.assert_allclose(np.asarray(out), np.asarray(ref),
                               rtol=3e-2, atol=3e-2)
    print("KERNEL_OK")
</pallas_src>

<mosaic_0001>
module attributes {stable_mosaic.version = 11 : i64} {
  func.func @lstm_kernel(%arg0: i32, %arg1: memref<8x8x512xf32, #tpu.memory_space<vmem>>, %arg2: memref<256x1024xbf16, #tpu.memory_space<vmem>>, %arg3: memref<1x512xf32, #tpu.memory_space<vmem>>, %arg4: memref<128x128xbf16, #tpu.memory_space<vmem>>, %arg5: memref<1x128xf32, #tpu.memory_space<vmem>>, %arg6: memref<8x128xf32, #tpu.memory_space<vmem>>) attributes {dimension_semantics = [#tpu.dimension_semantics<parallel>], iteration_bounds = array<i64: 1>, scalar_prefetch = 0 : i64, scratch_operands = 0 : i64, tpu.core_type = #tpu.core_type<tc>, window_params = [{transform_indices = @transform_0, window_bounds = array<i64: 8, 8, 512>}, {pipeline_mode = #tpu.pipeline_mode<synchronous>, transform_indices = @transform_1, window_bounds = array<i64: 256, 1024>}, {pipeline_mode = #tpu.pipeline_mode<synchronous>, transform_indices = @transform_2, window_bounds = array<i64: 1, 512>}, {pipeline_mode = #tpu.pipeline_mode<synchronous>, transform_indices = @transform_3, window_bounds = array<i64: 128, 128>}, {pipeline_mode = #tpu.pipeline_mode<synchronous>, transform_indices = @transform_4, window_bounds = array<i64: 1, 128>}, {transform_indices = @transform_5, window_bounds = array<i64: 8, 128>}]} {
    %c0 = arith.constant 0 : index
    %c0_0 = arith.constant 0 : index
    %0 = vector.load %arg3[%c0, %c0_0] : memref<1x512xf32, #tpu.memory_space<vmem>>, vector<1x512xf32>
    %1 = vector.shape_cast %0 : vector<1x512xf32> to vector<1x512xf32>
    %2 = vector.broadcast %1 : vector<1x512xf32> to vector<8x512xf32>
    %cst = arith.constant 0.000000e+00 : f32
    %3 = vector.broadcast %cst : f32 to vector<8x512xf32>
    %cst_1 = arith.constant 0.000000e+00 : f32
    %4 = vector.broadcast %cst_1 : f32 to vector<8x128xf32>
    %c0_i32 = arith.constant 0 : i32
    %5 = arith.index_cast %c0_i32 : i32 to index
    %c0_2 = arith.constant 0 : index
    %c0_3 = arith.constant 0 : index
    %6 = vector.load %arg1[%5, %c0_2, %c0_3] : memref<8x8x512xf32, #tpu.memory_space<vmem>>, vector<1x8x512xf32>
    %7 = vector.shape_cast %6 : vector<1x8x512xf32> to vector<8x512xf32>
    %8 = arith.addf %7, %3 : vector<8x512xf32>
    %9 = vector.extract_strided_slice %8 {offsets = [0, 0], sizes = [8, 128], strides = [1, 1]} : vector<8x512xf32> to vector<8x128xf32>
    %cst_4 = arith.constant 5.000000e-01 : f32
    %10 = vector.broadcast %cst_4 : f32 to vector<8x128xf32>
    %11 = arith.mulf %10, %9 : vector<8x128xf32>
    %12 = math.tanh %11 : vector<8x128xf32>
    %cst_5 = arith.constant 5.000000e-01 : f32
    %13 = vector.broadcast %cst_5 : f32 to vector<8x128xf32>
    %14 = arith.mulf %13, %12 : vector<8x128xf32>
    %cst_6 = arith.constant 5.000000e-01 : f32
    %15 = vector.broadcast %cst_6 : f32 to vector<8x128xf32>
    %16 = arith.addf %14, %15 : vector<8x128xf32>
    %17 = vector.extract_strided_slice %8 {offsets = [0, 128], sizes = [8, 128], strides = [1, 1]} : vector<8x512xf32> to vector<8x128xf32>
    %cst_7 = arith.constant 5.000000e-01 : f32
    %18 = vector.broadcast %cst_7 : f32 to vector<8x128xf32>
    %19 = arith.mulf %18, %17 : vector<8x128xf32>
    %20 = math.tanh %19 : vector<8x128xf32>
    %cst_8 = arith.constant 5.000000e-01 : f32
    %21 = vector.broadcast %cst_8 : f32 to vector<8x128xf32>
    %22 = arith.mulf %21, %20 : vector<8x128xf32>
    %cst_9 = arith.constant 5.000000e-01 : f32
    %23 = vector.broadcast %cst_9 : f32 to vector<8x128xf32>
    %24 = arith.addf %22, %23 : vector<8x128xf32>
    %25 = vector.extract_strided_slice %8 {offsets = [0, 256], sizes = [8, 128], strides = [1, 1]} : vector<8x512xf32> to vector<8x128xf32>
    %26 = math.tanh %25 : vector<8x128xf32>
    %27 = vector.extract_strided_slice %8 {offsets = [0, 384], sizes = [8, 128], strides = [1, 1]} : vector<8x512xf32> to vector<8x128xf32>
    %cst_10 = arith.constant 5.000000e-01 : f32
    %28 = vector.broadcast %cst_10 : f32 to vector<8x128xf32>
    %29 = arith.mulf %28, %27 : vector<8x128xf32>
    %30 = math.tanh %29 : vector<8x128xf32>
    %cst_11 = arith.constant 5.000000e-01 : f32
    %31 = vector.broadcast %cst_11 : f32 to vector<8x128xf32>
    %32 = arith.mulf %31, %30 : vector<8x128xf32>
    %cst_12 = arith.constant 5.000000e-01 : f32
    %33 = vector.broadcast %cst_12 : f32 to vector<8x128xf32>
    %34 = arith.addf %32, %33 : vector<8x128xf32>
    %35 = arith.mulf %24, %4 : vector<8x128xf32>
    %36 = arith.mulf %16, %26 : vector<8x128xf32>
    %37 = arith.addf %35, %36 : vector<8x128xf32>
    %38 = math.tanh %37 : vector<8x128xf32>
    %39 = arith.mulf %34, %38 : vector<8x128xf32>
    %40 = tpu.concatenate %39, %4 in 1 : vector<8x128xf32>, vector<8x128xf32> -> vector<8x256xf32>
    %41 = arith.truncf %40 : vector<8x256xf32> to vector<8x256xbf16>
    %c0_13 = arith.constant 0 : index
    %c0_14 = arith.constant 0 : index
    %42 = vector.load %arg2[%c0_13, %c0_14] : memref<256x1024xbf16, #tpu.memory_space<vmem>>, vector<256x1024xbf16>
    %cst_15 = arith.constant dense<0.000000e+00> : vector<8x1024xf32>
    %43 = tpu.matmul %41, %42, %cst_15 {dimension_numbers = #tpu.dot_dimension_numbers<[1], [0], [0], [1], [0, 0, 1, 1], [], []>} : vector<8x256xbf16>, vector<256x1024xbf16>, vector<8x1024xf32> -> vector<8x1024xf32>
    %44 = vector.extract_strided_slice %43 {offsets = [0, 0], sizes = [8, 512], strides = [1, 1]} : vector<8x1024xf32> to vector<8x512xf32>
    %45 = vector.extract_strided_slice %43 {offsets = [0, 512], sizes = [8, 512], strides = [1, 1]} : vector<8x1024xf32> to vector<8x512xf32>
    %46 = arith.addf %45, %2 : vector<8x512xf32>
    %47 = vector.extract_strided_slice %46 {offsets = [0, 0], sizes = [8, 128], strides = [1, 1]} : vector<8x512xf32> to vector<8x128xf32>
    %cst_16 = arith.constant 5.000000e-01 : f32
    %48 = vector.broadcast %cst_16 : f32 to vector<8x128xf32>
    %49 = arith.mulf %48, %47 : vector<8x128xf32>
    %50 = math.tanh %49 : vector<8x128xf32>
    %cst_17 = arith.constant 5.000000e-01 : f32
    %51 = vector.broadcast %cst_17 : f32 to vector<8x128xf32>
    %52 = arith.mulf %51, %50 : vector<8x128xf32>
    %cst_18 = arith.constant 5.000000e-01 : f32
    %53 = vector.broadcast %cst_18 : f32 to vector<8x128xf32>
    %54 = arith.addf %52, %53 : vector<8x128xf32>
    %55 = vector.extract_strided_slice %46 {offsets = [0, 128], sizes = [8, 128], strides = [1, 1]} : vector<8x512xf32> to vector<8x128xf32>
    %cst_19 = arith.constant 5.000000e-01 : f32
    %56 = vector.broadcast %cst_19 : f32 to vector<8x128xf32>
    %57 = arith.mulf %56, %55 : vector<8x128xf32>
    %58 = math.tanh %57 : vector<8x128xf32>
    %cst_20 = arith.constant 5.000000e-01 : f32
    %59 = vector.broadcast %cst_20 : f32 to vector<8x128xf32>
    %60 = arith.mulf %59, %58 : vector<8x128xf32>
    %cst_21 = arith.constant 5.000000e-01 : f32
    %61 = vector.broadcast %cst_21 : f32 to vector<8x128xf32>
    %62 = arith.addf %60, %61 : vector<8x128xf32>
    %63 = vector.extract_strided_slice %46 {offsets = [0, 256], sizes = [8, 128], strides = [1, 1]} : vector<8x512xf32> to vector<8x128xf32>
    %64 = math.tanh %63 : vector<8x128xf32>
    %65 = vector.extract_strided_slice %46 {offsets = [0, 384], sizes = [8, 128], strides = [1, 1]} : vector<8x512xf32> to vector<8x128xf32>
    %cst_22 = arith.constant 5.000000e-01 : f32
    %66 = vector.broadcast %cst_22 : f32 to vector<8x128xf32>
    %67 = arith.mulf %66, %65 : vector<8x128xf32>
    %68 = math.tanh %67 : vector<8x128xf32>
    %cst_23 = arith.constant 5.000000e-01 : f32
    %69 = vector.broadcast %cst_23 : f32 to vector<8x128xf32>
    %70 = arith.mulf %69, %68 : vector<8x128xf32>
    %cst_24 = arith.constant 5.000000e-01 : f32
    %71 = vector.broadcast %cst_24 : f32 to vector<8x128xf32>
    %72 = arith.addf %70, %71 : vector<8x128xf32>
    %73 = arith.mulf %62, %4 : vector<8x128xf32>
    %74 = arith.mulf %54, %64 : vector<8x128xf32>
    %75 = arith.addf %73, %74 : vector<8x128xf32>
    %76 = math.tanh %75 : vector<8x128xf32>
    %77 = arith.mulf %72, %76 : vector<8x128xf32>
    %c1_i32 = arith.constant 1 : i32
    %78 = arith.index_cast %c1_i32 : i32 to index
    %c0_25 = arith.constant 0 : index
    %c0_26 = arith.constant 0 : index
    %79 = vector.load %arg1[%78, %c0_25, %c0_26] : memref<8x8x512xf32, #tpu.memory_space<vmem>>, vector<1x8x512xf32>
    %80 = vector.shape_cast %79 : vector<1x8x512xf32> to vector<8x512xf32>
    %81 = arith.addf %80, %44 : vector<8x512xf32>
    %82 = vector.extract_strided_slice %81 {offsets = [0, 0], sizes = [8, 128], strides = [1, 1]} : vector<8x512xf32> to vector<8x128xf32>
    %cst_27 = arith.constant 5.000000e-01 : f32
    %83 = vector.broadcast %cst_27 : f32 to vector<8x128xf32>
    %84 = arith.mulf %83, %82 : vector<8x128xf32>
    %85 = math.tanh %84 : vector<8x128xf32>
    %cst_28 = arith.constant 5.000000e-01 : f32
    %86 = vector.broadcast %cst_28 : f32 to vector<8x128xf32>
    %87 = arith.mulf %86, %85 : vector<8x128xf32>
    %cst_29 = arith.constant 5.000000e-01 : f32
    %88 = vector.broadcast %cst_29 : f32 to vector<8x128xf32>
    %89 = arith.addf %87, %88 : vector<8x128xf32>
    %90 = vector.extract_strided_slice %81 {offsets = [0, 128], sizes = [8, 128], strides = [1, 1]} : vector<8x512xf32> to vector<8x128xf32>
    %cst_30 = arith.constant 5.000000e-01 : f32
    %91 = vector.broadcast %cst_30 : f32 to vector<8x128xf32>
    %92 = arith.mulf %91, %90 : vector<8x128xf32>
    %93 = math.tanh %92 : vector<8x128xf32>
    %cst_31 = arith.constant 5.000000e-01 : f32
    %94 = vector.broadcast %cst_31 : f32 to vector<8x128xf32>
    %95 = arith.mulf %94, %93 : vector<8x128xf32>
    %cst_32 = arith.constant 5.000000e-01 : f32
    %96 = vector.broadcast %cst_32 : f32 to vector<8x128xf32>
    %97 = arith.addf %95, %96 : vector<8x128xf32>
    %98 = vector.extract_strided_slice %81 {offsets = [0, 256], sizes = [8, 128], strides = [1, 1]} : vector<8x512xf32> to vector<8x128xf32>
    %99 = math.tanh %98 : vector<8x128xf32>
    %100 = vector.extract_strided_slice %81 {offsets = [0, 384], sizes = [8, 128], strides = [1, 1]} : vector<8x512xf32> to vector<8x128xf32>
    %cst_33 = arith.constant 5.000000e-01 : f32
    %101 = vector.broadcast %cst_33 : f32 to vector<8x128xf32>
    %102 = arith.mulf %101, %100 : vector<8x128xf32>
    %103 = math.tanh %102 : vector<8x128xf32>
    %cst_34 = arith.constant 5.000000e-01 : f32
    %104 = vector.broadcast %cst_34 : f32 to vector<8x128xf32>
    %105 = arith.mulf %104, %103 : vector<8x128xf32>
    %cst_35 = arith.constant 5.000000e-01 : f32
    %106 = vector.broadcast %cst_35 : f32 to vector<8x128xf32>
    %107 = arith.addf %105, %106 : vector<8x128xf32>
    %108 = arith.mulf %97, %37 : vector<8x128xf32>
    %109 = arith.mulf %89, %99 : vector<8x128xf32>
    %110 = arith.addf %108, %109 : vector<8x128xf32>
    %111 = math.tanh %110 : vector<8x128xf32>
    %112 = arith.mulf %107, %111 : vector<8x128xf32>
    %113 = tpu.concatenate %112, %77 in 1 : vector<8x128xf32>, vector<8x128xf32> -> vector<8x256xf32>
    %114 = arith.truncf %113 : vector<8x256xf32> to vector<8x256xbf16>
    %c0_36 = arith.constant 0 : index
    %c0_37 = arith.constant 0 : index
    %115 = vector.load %arg2[%c0_36, %c0_37] : memref<256x1024xbf16, #tpu.memory_space<vmem>>, vector<256x1024xbf16>
    %cst_38 = arith.constant dense<0.000000e+00> : vector<8x1024xf32>
    %116 = tpu.matmul %114, %115, %cst_38 {dimension_numbers = #tpu.dot_dimension_numbers<[1], [0], [0], [1], [0, 0, 1, 1], [], []>} : vector<8x256xbf16>, vector<256x1024xbf16>, vector<8x1024xf32> -> vector<8x1024xf32>
    %117 = vector.extract_strided_slice %116 {offsets = [0, 0], sizes = [8, 512], strides = [1, 1]} : vector<8x1024xf32> to vector<8x512xf32>
    %118 = vector.extract_strided_slice %116 {offsets = [0, 512], sizes = [8, 512], strides = [1, 1]} : vector<8x1024xf32> to vector<8x512xf32>
    %119 = arith.addf %118, %2 : vector<8x512xf32>
    %120 = vector.extract_strided_slice %119 {offsets = [0, 0], sizes = [8, 128], strides = [1, 1]} : vector<8x512xf32> to vector<8x128xf32>
    %cst_39 = arith.constant 5.000000e-01 : f32
    %121 = vector.broadcast %cst_39 : f32 to vector<8x128xf32>
    %122 = arith.mulf %121, %120 : vector<8x128xf32>
    %123 = math.tanh %122 : vector<8x128xf32>
    %cst_40 = arith.constant 5.000000e-01 : f32
    %124 = vector.broadcast %cst_40 : f32 to vector<8x128xf32>
    %125 = arith.mulf %124, %123 : vector<8x128xf32>
    %cst_41 = arith.constant 5.000000e-01 : f32
    %126 = vector.broadcast %cst_41 : f32 to vector<8x128xf32>
    %127 = arith.addf %125, %126 : vector<8x128xf32>
    %128 = vector.extract_strided_slice %119 {offsets = [0, 128], sizes = [8, 128], strides = [1, 1]} : vector<8x512xf32> to vector<8x128xf32>
    %cst_42 = arith.constant 5.000000e-01 : f32
    %129 = vector.broadcast %cst_42 : f32 to vector<8x128xf32>
    %130 = arith.mulf %129, %128 : vector<8x128xf32>
    %131 = math.tanh %130 : vector<8x128xf32>
    %cst_43 = arith.constant 5.000000e-01 : f32
    %132 = vector.broadcast %cst_43 : f32 to vector<8x128xf32>
    %133 = arith.mulf %132, %131 : vector<8x128xf32>
    %cst_44 = arith.constant 5.000000e-01 : f32
    %134 = vector.broadcast %cst_44 : f32 to vector<8x128xf32>
    %135 = arith.addf %133, %134 : vector<8x128xf32>
    %136 = vector.extract_strided_slice %119 {offsets = [0, 256], sizes = [8, 128], strides = [1, 1]} : vector<8x512xf32> to vector<8x128xf32>
    %137 = math.tanh %136 : vector<8x128xf32>
    %138 = vector.extract_strided_slice %119 {offsets = [0, 384], sizes = [8, 128], strides = [1, 1]} : vector<8x512xf32> to vector<8x128xf32>
    %cst_45 = arith.constant 5.000000e-01 : f32
    %139 = vector.broadcast %cst_45 : f32 to vector<8x128xf32>
    %140 = arith.mulf %139, %138 : vector<8x128xf32>
    %141 = math.tanh %140 : vector<8x128xf32>
    %cst_46 = arith.constant 5.000000e-01 : f32
    %142 = vector.broadcast %cst_46 : f32 to vector<8x128xf32>
    %143 = arith.mulf %142, %141 : vector<8x128xf32>
    %cst_47 = arith.constant 5.000000e-01 : f32
    %144 = vector.broadcast %cst_47 : f32 to vector<8x128xf32>
    %145 = arith.addf %143, %144 : vector<8x128xf32>
    %146 = arith.mulf %135, %75 : vector<8x128xf32>
    %147 = arith.mulf %127, %137 : vector<8x128xf32>
    %148 = arith.addf %146, %147 : vector<8x128xf32>
    %149 = math.tanh %148 : vector<8x128xf32>
    %150 = arith.mulf %145, %149 : vector<8x128xf32>
    %c2_i32 = arith.constant 2 : i32
    %151 = arith.index_cast %c2_i32 : i32 to index
    %c0_48 = arith.constant 0 : index
    %c0_49 = arith.constant 0 : index
    %152 = vector.load %arg1[%151, %c0_48, %c0_49] : memref<8x8x512xf32, #tpu.memory_space<vmem>>, vector<1x8x512xf32>
    %153 = vector.shape_cast %152 : vector<1x8x512xf32> to vector<8x512xf32>
    %154 = arith.addf %153, %117 : vector<8x512xf32>
    %155 = vector.extract_strided_slice %154 {offsets = [0, 0], sizes = [8, 128], strides = [1, 1]} : vector<8x512xf32> to vector<8x128xf32>
    %cst_50 = arith.constant 5.000000e-01 : f32
    %156 = vector.broadcast %cst_50 : f32 to vector<8x128xf32>
    %157 = arith.mulf %156, %155 : vector<8x128xf32>
    %158 = math.tanh %157 : vector<8x128xf32>
    %cst_51 = arith.constant 5.000000e-01 : f32
    %159 = vector.broadcast %cst_51 : f32 to vector<8x128xf32>
    %160 = arith.mulf %159, %158 : vector<8x128xf32>
    %cst_52 = arith.constant 5.000000e-01 : f32
    %161 = vector.broadcast %cst_52 : f32 to vector<8x128xf32>
    %162 = arith.addf %160, %161 : vector<8x128xf32>
    %163 = vector.extract_strided_slice %154 {offsets = [0, 128], sizes = [8, 128], strides = [1, 1]} : vector<8x512xf32> to vector<8x128xf32>
    %cst_53 = arith.constant 5.000000e-01 : f32
    %164 = vector.broadcast %cst_53 : f32 to vector<8x128xf32>
    %165 = arith.mulf %164, %163 : vector<8x128xf32>
    %166 = math.tanh %165 : vector<8x128xf32>
    %cst_54 = arith.constant 5.000000e-01 : f32
    %167 = vector.broadcast %cst_54 : f32 to vector<8x128xf32>
    %168 = arith.mulf %167, %166 : vector<8x128xf32>
    %cst_55 = arith.constant 5.000000e-01 : f32
    %169 = vector.broadcast %cst_55 : f32 to vector<8x128xf32>
    %170 = arith.addf %168, %169 : vector<8x128xf32>
    %171 = vector.extract_strided_slice %154 {offsets = [0, 256], sizes = [8, 128], strides = [1, 1]} : vector<8x512xf32> to vector<8x128xf32>
    %172 = math.tanh %171 : vector<8x128xf32>
    %173 = vector.extract_strided_slice %154 {offsets = [0, 384], sizes = [8, 128], strides = [1, 1]} : vector<8x512xf32> to vector<8x128xf32>
    %cst_56 = arith.constant 5.000000e-01 : f32
    %174 = vector.broadcast %cst_56 : f32 to vector<8x128xf32>
    %175 = arith.mulf %174, %173 : vector<8x128xf32>
    %176 = math.tanh %175 : vector<8x128xf32>
    %cst_57 = arith.constant 5.000000e-01 : f32
    %177 = vector.broadcast %cst_57 : f32 to vector<8x128xf32>
    %178 = arith.mulf %177, %176 : vector<8x128xf32>
    %cst_58 = arith.constant 5.000000e-01 : f32
    %179 = vector.broadcast %cst_58 : f32 to vector<8x128xf32>
    %180 = arith.addf %178, %179 : vector<8x128xf32>
    %181 = arith.mulf %170, %110 : vector<8x128xf32>
    %182 = arith.mulf %162, %172 : vector<8x128xf32>
    %183 = arith.addf %181, %182 : vector<8x128xf32>
    %184 = math.tanh %183 : vector<8x128xf32>
    %185 = arith.mulf %180, %184 : vector<8x128xf32>
    %186 = tpu.concatenate %185, %150 in 1 : vector<8x128xf32>, vector<8x128xf32> -> vector<8x256xf32>
    %187 = arith.truncf %186 : vector<8x256xf32> to vector<8x256xbf16>
    %c0_59 = arith.constant 0 : index
    %c0_60 = arith.constant 0 : index
    %188 = vector.load %arg2[%c0_59, %c0_60] : memref<256x1024xbf16, #tpu.memory_space<vmem>>, vector<256x1024xbf16>
    %cst_61 = arith.constant dense<0.000000e+00> : vector<8x1024xf32>
    %189 = tpu.matmul %187, %188, %cst_61 {dimension_numbers = #tpu.dot_dimension_numbers<[1], [0], [0], [1], [0, 0, 1, 1], [], []>} : vector<8x256xbf16>, vector<256x1024xbf16>, vector<8x1024xf32> -> vector<8x1024xf32>
    %190 = vector.extract_strided_slice %189 {offsets = [0, 0], sizes = [8, 512], strides = [1, 1]} : vector<8x1024xf32> to vector<8x512xf32>
    %191 = vector.extract_strided_slice %189 {offsets = [0, 512], sizes = [8, 512], strides = [1, 1]} : vector<8x1024xf32> to vector<8x512xf32>
    %192 = arith.addf %191, %2 : vector<8x512xf32>
    %193 = vector.extract_strided_slice %192 {offsets = [0, 0], sizes = [8, 128], strides = [1, 1]} : vector<8x512xf32> to vector<8x128xf32>
    %cst_62 = arith.constant 5.000000e-01 : f32
    %194 = vector.broadcast %cst_62 : f32 to vector<8x128xf32>
    %195 = arith.mulf %194, %193 : vector<8x128xf32>
    %196 = math.tanh %195 : vector<8x128xf32>
    %cst_63 = arith.constant 5.000000e-01 : f32
    %197 = vector.broadcast %cst_63 : f32 to vector<8x128xf32>
    %198 = arith.mulf %197, %196 : vector<8x128xf32>
    %cst_64 = arith.constant 5.000000e-01 : f32
    %199 = vector.broadcast %cst_64 : f32 to vector<8x128xf32>
    %200 = arith.addf %198, %199 : vector<8x128xf32>
    %201 = vector.extract_strided_slice %192 {offsets = [0, 128], sizes = [8, 128], strides = [1, 1]} : vector<8x512xf32> to vector<8x128xf32>
    %cst_65 = arith.constant 5.000000e-01 : f32
    %202 = vector.broadcast %cst_65 : f32 to vector<8x128xf32>
    %203 = arith.mulf %202, %201 : vector<8x128xf32>
    %204 = math.tanh %203 : vector<8x128xf32>
    %cst_66 = arith.constant 5.000000e-01 : f32
    %205 = vector.broadcast %cst_66 : f32 to vector<8x128xf32>
    %206 = arith.mulf %205, %204 : vector<8x128xf32>
    %cst_67 = arith.constant 5.000000e-01 : f32
    %207 = vector.broadcast %cst_67 : f32 to vector<8x128xf32>
    %208 = arith.addf %206, %207 : vector<8x128xf32>
    %209 = vector.extract_strided_slice %192 {offsets = [0, 256], sizes = [8, 128], strides = [1, 1]} : vector<8x512xf32> to vector<8x128xf32>
    %210 = math.tanh %209 : vector<8x128xf32>
    %211 = vector.extract_strided_slice %192 {offsets = [0, 384], sizes = [8, 128], strides = [1, 1]} : vector<8x512xf32> to vector<8x128xf32>
    %cst_68 = arith.constant 5.000000e-01 : f32
    %212 = vector.broadcast %cst_68 : f32 to vector<8x128xf32>
    %213 = arith.mulf %212, %211 : vector<8x128xf32>
    %214 = math.tanh %213 : vector<8x128xf32>
    %cst_69 = arith.constant 5.000000e-01 : f32
    %215 = vector.broadcast %cst_69 : f32 to vector<8x128xf32>
    %216 = arith.mulf %215, %214 : vector<8x128xf32>
    %cst_70 = arith.constant 5.000000e-01 : f32
    %217 = vector.broadcast %cst_70 : f32 to vector<8x128xf32>
    %218 = arith.addf %216, %217 : vector<8x128xf32>
    %219 = arith.mulf %208, %148 : vector<8x128xf32>
    %220 = arith.mulf %200, %210 : vector<8x128xf32>
    %221 = arith.addf %219, %220 : vector<8x128xf32>
    %222 = math.tanh %221 : vector<8x128xf32>
    %223 = arith.mulf %218, %222 : vector<8x128xf32>
    %c3_i32 = arith.constant 3 : i32
    %224 = arith.index_cast %c3_i32 : i32 to index
    %c0_71 = arith.constant 0 : index
    %c0_72 = arith.constant 0 : index
    %225 = vector.load %arg1[%224, %c0_71, %c0_72] : memref<8x8x512xf32, #tpu.memory_space<vmem>>, vector<1x8x512xf32>
    %226 = vector.shape_cast %225 : vector<1x8x512xf32> to vector<8x512xf32>
    %227 = arith.addf %226, %190 : vector<8x512xf32>
    %228 = vector.extract_strided_slice %227 {offsets = [0, 0], sizes = [8, 128], strides = [1, 1]} : vector<8x512xf32> to vector<8x128xf32>
    %cst_73 = arith.constant 5.000000e-01 : f32
    %229 = vector.broadcast %cst_73 : f32 to vector<8x128xf32>
    %230 = arith.mulf %229, %228 : vector<8x128xf32>
    %231 = math.tanh %230 : vector<8x128xf32>
    %cst_74 = arith.constant 5.000000e-01 : f32
    %232 = vector.broadcast %cst_74 : f32 to vector<8x128xf32>
    %233 = arith.mulf %232, %231 : vector<8x128xf32>
    %cst_75 = arith.constant 5.000000e-01 : f32
    %234 = vector.broadcast %cst_75 : f32 to vector<8x128xf32>
    %235 = arith.addf %233, %234 : vector<8x128xf32>
    %236 = vector.extract_strided_slice %227 {offsets = [0, 128], sizes = [8, 128], strides = [1, 1]} : vector<8x512xf32> to vector<8x128xf32>
    %cst_76 = arith.constant 5.000000e-01 : f32
    %237 = vector.broadcast %cst_76 : f32 to vector<8x128xf32>
    %238 = arith.mulf %237, %236 : vector<8x128xf32>
    %239 = math.tanh %238 : vector<8x128xf32>
    %cst_77 = arith.constant 5.000000e-01 : f32
    %240 = vector.broadcast %cst_77 : f32 to vector<8x128xf32>
    %241 = arith.mulf %240, %239 : vector<8x128xf32>
    %cst_78 = arith.constant 5.000000e-01 : f32
    %242 = vector.broadcast %cst_78 : f32 to vector<8x128xf32>
    %243 = arith.addf %241, %242 : vector<8x128xf32>
    %244 = vector.extract_strided_slice %227 {offsets = [0, 256], sizes = [8, 128], strides = [1, 1]} : vector<8x512xf32> to vector<8x128xf32>
    %245 = math.tanh %244 : vector<8x128xf32>
    %246 = vector.extract_strided_slice %227 {offsets = [0, 384], sizes = [8, 128], strides = [1, 1]} : vector<8x512xf32> to vector<8x128xf32>
    %cst_79 = arith.constant 5.000000e-01 : f32
    %247 = vector.broadcast %cst_79 : f32 to vector<8x128xf32>
    %248 = arith.mulf %247, %246 : vector<8x128xf32>
    %249 = math.tanh %248 : vector<8x128xf32>
    %cst_80 = arith.constant 5.000000e-01 : f32
    %250 = vector.broadcast %cst_80 : f32 to vector<8x128xf32>
    %251 = arith.mulf %250, %249 : vector<8x128xf32>
    %cst_81 = arith.constant 5.000000e-01 : f32
    %252 = vector.broadcast %cst_81 : f32 to vector<8x128xf32>
    %253 = arith.addf %251, %252 : vector<8x128xf32>
    %254 = arith.mulf %243, %183 : vector<8x128xf32>
    %255 = arith.mulf %235, %245 : vector<8x128xf32>
    %256 = arith.addf %254, %255 : vector<8x128xf32>
    %257 = math.tanh %256 : vector<8x128xf32>
    %258 = arith.mulf %253, %257 : vector<8x128xf32>
    %259 = tpu.concatenate %258, %223 in 1 : vector<8x128xf32>, vector<8x128xf32> -> vector<8x256xf32>
    %260 = arith.truncf %259 : vector<8x256xf32> to vector<8x256xbf16>
    %c0_82 = arith.constant 0 : index
    %c0_83 = arith.constant 0 : index
    %261 = vector.load %arg2[%c0_82, %c0_83] : memref<256x1024xbf16, #tpu.memory_space<vmem>>, vector<256x1024xbf16>
    %cst_84 = arith.constant dense<0.000000e+00> : vector<8x1024xf32>
    %262 = tpu.matmul %260, %261, %cst_84 {dimension_numbers = #tpu.dot_dimension_numbers<[1], [0], [0], [1], [0, 0, 1, 1], [], []>} : vector<8x256xbf16>, vector<256x1024xbf16>, vector<8x1024xf32> -> vector<8x1024xf32>
    %263 = vector.extract_strided_slice %262 {offsets = [0, 0], sizes = [8, 512], strides = [1, 1]} : vector<8x1024xf32> to vector<8x512xf32>
    %264 = vector.extract_strided_slice %262 {offsets = [0, 512], sizes = [8, 512], strides = [1, 1]} : vector<8x1024xf32> to vector<8x512xf32>
    %265 = arith.addf %264, %2 : vector<8x512xf32>
    %266 = vector.extract_strided_slice %265 {offsets = [0, 0], sizes = [8, 128], strides = [1, 1]} : vector<8x512xf32> to vector<8x128xf32>
    %cst_85 = arith.constant 5.000000e-01 : f32
    %267 = vector.broadcast %cst_85 : f32 to vector<8x128xf32>
    %268 = arith.mulf %267, %266 : vector<8x128xf32>
    %269 = math.tanh %268 : vector<8x128xf32>
    %cst_86 = arith.constant 5.000000e-01 : f32
    %270 = vector.broadcast %cst_86 : f32 to vector<8x128xf32>
    %271 = arith.mulf %270, %269 : vector<8x128xf32>
    %cst_87 = arith.constant 5.000000e-01 : f32
    %272 = vector.broadcast %cst_87 : f32 to vector<8x128xf32>
    %273 = arith.addf %271, %272 : vector<8x128xf32>
    %274 = vector.extract_strided_slice %265 {offsets = [0, 128], sizes = [8, 128], strides = [1, 1]} : vector<8x512xf32> to vector<8x128xf32>
    %cst_88 = arith.constant 5.000000e-01 : f32
    %275 = vector.broadcast %cst_88 : f32 to vector<8x128xf32>
    %276 = arith.mulf %275, %274 : vector<8x128xf32>
    %277 = math.tanh %276 : vector<8x128xf32>
    %cst_89 = arith.constant 5.000000e-01 : f32
    %278 = vector.broadcast %cst_89 : f32 to vector<8x128xf32>
    %279 = arith.mulf %278, %277 : vector<8x128xf32>
    %cst_90 = arith.constant 5.000000e-01 : f32
    %280 = vector.broadcast %cst_90 : f32 to vector<8x128xf32>
    %281 = arith.addf %279, %280 : vector<8x128xf32>
    %282 = vector.extract_strided_slice %265 {offsets = [0, 256], sizes = [8, 128], strides = [1, 1]} : vector<8x512xf32> to vector<8x128xf32>
    %283 = math.tanh %282 : vector<8x128xf32>
    %284 = vector.extract_strided_slice %265 {offsets = [0, 384], sizes = [8, 128], strides = [1, 1]} : vector<8x512xf32> to vector<8x128xf32>
    %cst_91 = arith.constant 5.000000e-01 : f32
    %285 = vector.broadcast %cst_91 : f32 to vector<8x128xf32>
    %286 = arith.mulf %285, %284 : vector<8x128xf32>
    %287 = math.tanh %286 : vector<8x128xf32>
    %cst_92 = arith.constant 5.000000e-01 : f32
    %288 = vector.broadcast %cst_92 : f32 to vector<8x128xf32>
    %289 = arith.mulf %288, %287 : vector<8x128xf32>
    %cst_93 = arith.constant 5.000000e-01 : f32
    %290 = vector.broadcast %cst_93 : f32 to vector<8x128xf32>
    %291 = arith.addf %289, %290 : vector<8x128xf32>
    %292 = arith.mulf %281, %221 : vector<8x128xf32>
    %293 = arith.mulf %273, %283 : vector<8x128xf32>
    %294 = arith.addf %292, %293 : vector<8x128xf32>
    %295 = math.tanh %294 : vector<8x128xf32>
    %296 = arith.mulf %291, %295 : vector<8x128xf32>
    %c4_i32 = arith.constant 4 : i32
    %297 = arith.index_cast %c4_i32 : i32 to index
    %c0_94 = arith.constant 0 : index
    %c0_95 = arith.constant 0 : index
    %298 = vector.load %arg1[%297, %c0_94, %c0_95] : memref<8x8x512xf32, #tpu.memory_space<vmem>>, vector<1x8x512xf32>
    %299 = vector.shape_cast %298 : vector<1x8x512xf32> to vector<8x512xf32>
    %300 = arith.addf %299, %263 : vector<8x512xf32>
    %301 = vector.extract_strided_slice %300 {offsets = [0, 0], sizes = [8, 128], strides = [1, 1]} : vector<8x512xf32> to vector<8x128xf32>
    %cst_96 = arith.constant 5.000000e-01 : f32
    %302 = vector.broadcast %cst_96 : f32 to vector<8x128xf32>
    %303 = arith.mulf %302, %301 : vector<8x128xf32>
    %304 = math.tanh %303 : vector<8x128xf32>
    %cst_97 = arith.constant 5.000000e-01 : f32
    %305 = vector.broadcast %cst_97 : f32 to vector<8x128xf32>
    %306 = arith.mulf %305, %304 : vector<8x128xf32>
    %cst_98 = arith.constant 5.000000e-01 : f32
    %307 = vector.broadcast %cst_98 : f32 to vector<8x128xf32>
    %308 = arith.addf %306, %307 : vector<8x128xf32>
    %309 = vector.extract_strided_slice %300 {offsets = [0, 128], sizes = [8, 128], strides = [1, 1]} : vector<8x512xf32> to vector<8x128xf32>
    %cst_99 = arith.constant 5.000000e-01 : f32
    %310 = vector.broadcast %cst_99 : f32 to vector<8x128xf32>
    %311 = arith.mulf %310, %309 : vector<8x128xf32>
    %312 = math.tanh %311 : vector<8x128xf32>
    %cst_100 = arith.constant 5.000000e-01 : f32
    %313 = vector.broadcast %cst_100 : f32 to vector<8x128xf32>
    %314 = arith.mulf %313, %312 : vector<8x128xf32>
    %cst_101 = arith.constant 5.000000e-01 : f32
    %315 = vector.broadcast %cst_101 : f32 to vector<8x128xf32>
    %316 = arith.addf %314, %315 : vector<8x128xf32>
    %317 = vector.extract_strided_slice %300 {offsets = [0, 256], sizes = [8, 128], strides = [1, 1]} : vector<8x512xf32> to vector<8x128xf32>
    %318 = math.tanh %317 : vector<8x128xf32>
    %319 = vector.extract_strided_slice %300 {offsets = [0, 384], sizes = [8, 128], strides = [1, 1]} : vector<8x512xf32> to vector<8x128xf32>
    %cst_102 = arith.constant 5.000000e-01 : f32
    %320 = vector.broadcast %cst_102 : f32 to vector<8x128xf32>
    %321 = arith.mulf %320, %319 : vector<8x128xf32>
    %322 = math.tanh %321 : vector<8x128xf32>
    %cst_103 = arith.constant 5.000000e-01 : f32
    %323 = vector.broadcast %cst_103 : f32 to vector<8x128xf32>
    %324 = arith.mulf %323, %322 : vector<8x128xf32>
    %cst_104 = arith.constant 5.000000e-01 : f32
    %325 = vector.broadcast %cst_104 : f32 to vector<8x128xf32>
    %326 = arith.addf %324, %325 : vector<8x128xf32>
    %327 = arith.mulf %316, %256 : vector<8x128xf32>
    %328 = arith.mulf %308, %318 : vector<8x128xf32>
    %329 = arith.addf %327, %328 : vector<8x128xf32>
    %330 = math.tanh %329 : vector<8x128xf32>
    %331 = arith.mulf %326, %330 : vector<8x128xf32>
    %332 = tpu.concatenate %331, %296 in 1 : vector<8x128xf32>, vector<8x128xf32> -> vector<8x256xf32>
    %333 = arith.truncf %332 : vector<8x256xf32> to vector<8x256xbf16>
    %c0_105 = arith.constant 0 : index
    %c0_106 = arith.constant 0 : index
    %334 = vector.load %arg2[%c0_105, %c0_106] : memref<256x1024xbf16, #tpu.memory_space<vmem>>, vector<256x1024xbf16>
    %cst_107 = arith.constant dense<0.000000e+00> : vector<8x1024xf32>
    %335 = tpu.matmul %333, %334, %cst_107 {dimension_numbers = #tpu.dot_dimension_numbers<[1], [0], [0], [1], [0, 0, 1, 1], [], []>} : vector<8x256xbf16>, vector<256x1024xbf16>, vector<8x1024xf32> -> vector<8x1024xf32>
    %336 = vector.extract_strided_slice %335 {offsets = [0, 0], sizes = [8, 512], strides = [1, 1]} : vector<8x1024xf32> to vector<8x512xf32>
    %337 = vector.extract_strided_slice %335 {offsets = [0, 512], sizes = [8, 512], strides = [1, 1]} : vector<8x1024xf32> to vector<8x512xf32>
    %338 = arith.addf %337, %2 : vector<8x512xf32>
    %339 = vector.extract_strided_slice %338 {offsets = [0, 0], sizes = [8, 128], strides = [1, 1]} : vector<8x512xf32> to vector<8x128xf32>
    %cst_108 = arith.constant 5.000000e-01 : f32
    %340 = vector.broadcast %cst_108 : f32 to vector<8x128xf32>
    %341 = arith.mulf %340, %339 : vector<8x128xf32>
    %342 = math.tanh %341 : vector<8x128xf32>
    %cst_109 = arith.constant 5.000000e-01 : f32
    %343 = vector.broadcast %cst_109 : f32 to vector<8x128xf32>
    %344 = arith.mulf %343, %342 : vector<8x128xf32>
    %cst_110 = arith.constant 5.000000e-01 : f32
    %345 = vector.broadcast %cst_110 : f32 to vector<8x128xf32>
    %346 = arith.addf %344, %345 : vector<8x128xf32>
    %347 = vector.extract_strided_slice %338 {offsets = [0, 128], sizes = [8, 128], strides = [1, 1]} : vector<8x512xf32> to vector<8x128xf32>
    %cst_111 = arith.constant 5.000000e-01 : f32
    %348 = vector.broadcast %cst_111 : f32 to vector<8x128xf32>
    %349 = arith.mulf %348, %347 : vector<8x128xf32>
    %350 = math.tanh %349 : vector<8x128xf32>
    %cst_112 = arith.constant 5.000000e-01 : f32
    %351 = vector.broadcast %cst_112 : f32 to vector<8x128xf32>
    %352 = arith.mulf %351, %350 : vector<8x128xf32>
    %cst_113 = arith.constant 5.000000e-01 : f32
    %353 = vector.broadcast %cst_113 : f32 to vector<8x128xf32>
    %354 = arith.addf %352, %353 : vector<8x128xf32>
    %355 = vector.extract_strided_slice %338 {offsets = [0, 256], sizes = [8, 128], strides = [1, 1]} : vector<8x512xf32> to vector<8x128xf32>
    %356 = math.tanh %355 : vector<8x128xf32>
    %357 = vector.extract_strided_slice %338 {offsets = [0, 384], sizes = [8, 128], strides = [1, 1]} : vector<8x512xf32> to vector<8x128xf32>
    %cst_114 = arith.constant 5.000000e-01 : f32
    %358 = vector.broadcast %cst_114 : f32 to vector<8x128xf32>
    %359 = arith.mulf %358, %357 : vector<8x128xf32>
    %360 = math.tanh %359 : vector<8x128xf32>
    %cst_115 = arith.constant 5.000000e-01 : f32
    %361 = vector.broadcast %cst_115 : f32 to vector<8x128xf32>
    %362 = arith.mulf %361, %360 : vector<8x128xf32>
    %cst_116 = arith.constant 5.000000e-01 : f32
    %363 = vector.broadcast %cst_116 : f32 to vector<8x128xf32>
    %364 = arith.addf %362, %363 : vector<8x128xf32>
    %365 = arith.mulf %354, %294 : vector<8x128xf32>
    %366 = arith.mulf %346, %356 : vector<8x128xf32>
    %367 = arith.addf %365, %366 : vector<8x128xf32>
    %368 = math.tanh %367 : vector<8x128xf32>
    %369 = arith.mulf %364, %368 : vector<8x128xf32>
    %c5_i32 = arith.constant 5 : i32
    %370 = arith.index_cast %c5_i32 : i32 to index
    %c0_117 = arith.constant 0 : index
    %c0_118 = arith.constant 0 : index
    %371 = vector.load %arg1[%370, %c0_117, %c0_118] : memref<8x8x512xf32, #tpu.memory_space<vmem>>, vector<1x8x512xf32>
    %372 = vector.shape_cast %371 : vector<1x8x512xf32> to vector<8x512xf32>
    %373 = arith.addf %372, %336 : vector<8x512xf32>
    %374 = vector.extract_strided_slice %373 {offsets = [0, 0], sizes = [8, 128], strides = [1, 1]} : vector<8x512xf32> to vector<8x128xf32>
    %cst_119 = arith.constant 5.000000e-01 : f32
    %375 = vector.broadcast %cst_119 : f32 to vector<8x128xf32>
    %376 = arith.mulf %375, %374 : vector<8x128xf32>
    %377 = math.tanh %376 : vector<8x128xf32>
    %cst_120 = arith.constant 5.000000e-01 : f32
    %378 = vector.broadcast %cst_120 : f32 to vector<8x128xf32>
    %379 = arith.mulf %378, %377 : vector<8x128xf32>
    %cst_121 = arith.constant 5.000000e-01 : f32
    %380 = vector.broadcast %cst_121 : f32 to vector<8x128xf32>
    %381 = arith.addf %379, %380 : vector<8x128xf32>
    %382 = vector.extract_strided_slice %373 {offsets = [0, 128], sizes = [8, 128], strides = [1, 1]} : vector<8x512xf32> to vector<8x128xf32>
    %cst_122 = arith.constant 5.000000e-01 : f32
    %383 = vector.broadcast %cst_122 : f32 to vector<8x128xf32>
    %384 = arith.mulf %383, %382 : vector<8x128xf32>
    %385 = math.tanh %384 : vector<8x128xf32>
    %cst_123 = arith.constant 5.000000e-01 : f32
    %386 = vector.broadcast %cst_123 : f32 to vector<8x128xf32>
    %387 = arith.mulf %386, %385 : vector<8x128xf32>
    %cst_124 = arith.constant 5.000000e-01 : f32
    %388 = vector.broadcast %cst_124 : f32 to vector<8x128xf32>
    %389 = arith.addf %387, %388 : vector<8x128xf32>
    %390 = vector.extract_strided_slice %373 {offsets = [0, 256], sizes = [8, 128], strides = [1, 1]} : vector<8x512xf32> to vector<8x128xf32>
    %391 = math.tanh %390 : vector<8x128xf32>
    %392 = vector.extract_strided_slice %373 {offsets = [0, 384], sizes = [8, 128], strides = [1, 1]} : vector<8x512xf32> to vector<8x128xf32>
    %cst_125 = arith.constant 5.000000e-01 : f32
    %393 = vector.broadcast %cst_125 : f32 to vector<8x128xf32>
    %394 = arith.mulf %393, %392 : vector<8x128xf32>
    %395 = math.tanh %394 : vector<8x128xf32>
    %cst_126 = arith.constant 5.000000e-01 : f32
    %396 = vector.broadcast %cst_126 : f32 to vector<8x128xf32>
    %397 = arith.mulf %396, %395 : vector<8x128xf32>
    %cst_127 = arith.constant 5.000000e-01 : f32
    %398 = vector.broadcast %cst_127 : f32 to vector<8x128xf32>
    %399 = arith.addf %397, %398 : vector<8x128xf32>
    %400 = arith.mulf %389, %329 : vector<8x128xf32>
    %401 = arith.mulf %381, %391 : vector<8x128xf32>
    %402 = arith.addf %400, %401 : vector<8x128xf32>
    %403 = math.tanh %402 : vector<8x128xf32>
    %404 = arith.mulf %399, %403 : vector<8x128xf32>
    %405 = tpu.concatenate %404, %369 in 1 : vector<8x128xf32>, vector<8x128xf32> -> vector<8x256xf32>
    %406 = arith.truncf %405 : vector<8x256xf32> to vector<8x256xbf16>
    %c0_128 = arith.constant 0 : index
    %c0_129 = arith.constant 0 : index
    %407 = vector.load %arg2[%c0_128, %c0_129] : memref<256x1024xbf16, #tpu.memory_space<vmem>>, vector<256x1024xbf16>
    %cst_130 = arith.constant dense<0.000000e+00> : vector<8x1024xf32>
    %408 = tpu.matmul %406, %407, %cst_130 {dimension_numbers = #tpu.dot_dimension_numbers<[1], [0], [0], [1], [0, 0, 1, 1], [], []>} : vector<8x256xbf16>, vector<256x1024xbf16>, vector<8x1024xf32> -> vector<8x1024xf32>
    %409 = vector.extract_strided_slice %408 {offsets = [0, 0], sizes = [8, 512], strides = [1, 1]} : vector<8x1024xf32> to vector<8x512xf32>
    %410 = vector.extract_strided_slice %408 {offsets = [0, 512], sizes = [8, 512], strides = [1, 1]} : vector<8x1024xf32> to vector<8x512xf32>
    %411 = arith.addf %410, %2 : vector<8x512xf32>
    %412 = vector.extract_strided_slice %411 {offsets = [0, 0], sizes = [8, 128], strides = [1, 1]} : vector<8x512xf32> to vector<8x128xf32>
    %cst_131 = arith.constant 5.000000e-01 : f32
    %413 = vector.broadcast %cst_131 : f32 to vector<8x128xf32>
    %414 = arith.mulf %413, %412 : vector<8x128xf32>
    %415 = math.tanh %414 : vector<8x128xf32>
    %cst_132 = arith.constant 5.000000e-01 : f32
    %416 = vector.broadcast %cst_132 : f32 to vector<8x128xf32>
    %417 = arith.mulf %416, %415 : vector<8x128xf32>
    %cst_133 = arith.constant 5.000000e-01 : f32
    %418 = vector.broadcast %cst_133 : f32 to vector<8x128xf32>
    %419 = arith.addf %417, %418 : vector<8x128xf32>
    %420 = vector.extract_strided_slice %411 {offsets = [0, 128], sizes = [8, 128], strides = [1, 1]} : vector<8x512xf32> to vector<8x128xf32>
    %cst_134 = arith.constant 5.000000e-01 : f32
    %421 = vector.broadcast %cst_134 : f32 to vector<8x128xf32>
    %422 = arith.mulf %421, %420 : vector<8x128xf32>
    %423 = math.tanh %422 : vector<8x128xf32>
    %cst_135 = arith.constant 5.000000e-01 : f32
    %424 = vector.broadcast %cst_135 : f32 to vector<8x128xf32>
    %425 = arith.mulf %424, %423 : vector<8x128xf32>
    %cst_136 = arith.constant 5.000000e-01 : f32
    %426 = vector.broadcast %cst_136 : f32 to vector<8x128xf32>
    %427 = arith.addf %425, %426 : vector<8x128xf32>
    %428 = vector.extract_strided_slice %411 {offsets = [0, 256], sizes = [8, 128], strides = [1, 1]} : vector<8x512xf32> to vector<8x128xf32>
    %429 = math.tanh %428 : vector<8x128xf32>
    %430 = vector.extract_strided_slice %411 {offsets = [0, 384], sizes = [8, 128], strides = [1, 1]} : vector<8x512xf32> to vector<8x128xf32>
    %cst_137 = arith.constant 5.000000e-01 : f32
    %431 = vector.broadcast %cst_137 : f32 to vector<8x128xf32>
    %432 = arith.mulf %431, %430 : vector<8x128xf32>
    %433 = math.tanh %432 : vector<8x128xf32>
    %cst_138 = arith.constant 5.000000e-01 : f32
    %434 = vector.broadcast %cst_138 : f32 to vector<8x128xf32>
    %435 = arith.mulf %434, %433 : vector<8x128xf32>
    %cst_139 = arith.constant 5.000000e-01 : f32
    %436 = vector.broadcast %cst_139 : f32 to vector<8x128xf32>
    %437 = arith.addf %435, %436 : vector<8x128xf32>
    %438 = arith.mulf %427, %367 : vector<8x128xf32>
    %439 = arith.mulf %419, %429 : vector<8x128xf32>
    %440 = arith.addf %438, %439 : vector<8x128xf32>
    %441 = math.tanh %440 : vector<8x128xf32>
    %442 = arith.mulf %437, %441 : vector<8x128xf32>
    %c6_i32 = arith.constant 6 : i32
    %443 = arith.index_cast %c6_i32 : i32 to index
    %c0_140 = arith.constant 0 : index
    %c0_141 = arith.constant 0 : index
    %444 = vector.load %arg1[%443, %c0_140, %c0_141] : memref<8x8x512xf32, #tpu.memory_space<vmem>>, vector<1x8x512xf32>
    %445 = vector.shape_cast %444 : vector<1x8x512xf32> to vector<8x512xf32>
    %446 = arith.addf %445, %409 : vector<8x512xf32>
    %447 = vector.extract_strided_slice %446 {offsets = [0, 0], sizes = [8, 128], strides = [1, 1]} : vector<8x512xf32> to vector<8x128xf32>
    %cst_142 = arith.constant 5.000000e-01 : f32
    %448 = vector.broadcast %cst_142 : f32 to vector<8x128xf32>
    %449 = arith.mulf %448, %447 : vector<8x128xf32>
    %450 = math.tanh %449 : vector<8x128xf32>
    %cst_143 = arith.constant 5.000000e-01 : f32
    %451 = vector.broadcast %cst_143 : f32 to vector<8x128xf32>
    %452 = arith.mulf %451, %450 : vector<8x128xf32>
    %cst_144 = arith.constant 5.000000e-01 : f32
    %453 = vector.broadcast %cst_144 : f32 to vector<8x128xf32>
    %454 = arith.addf %452, %453 : vector<8x128xf32>
    %455 = vector.extract_strided_slice %446 {offsets = [0, 128], sizes = [8, 128], strides = [1, 1]} : vector<8x512xf32> to vector<8x128xf32>
    %cst_145 = arith.constant 5.000000e-01 : f32
    %456 = vector.broadcast %cst_145 : f32 to vector<8x128xf32>
    %457 = arith.mulf %456, %455 : vector<8x128xf32>
    %458 = math.tanh %457 : vector<8x128xf32>
    %cst_146 = arith.constant 5.000000e-01 : f32
    %459 = vector.broadcast %cst_146 : f32 to vector<8x128xf32>
    %460 = arith.mulf %459, %458 : vector<8x128xf32>
    %cst_147 = arith.constant 5.000000e-01 : f32
    %461 = vector.broadcast %cst_147 : f32 to vector<8x128xf32>
    %462 = arith.addf %460, %461 : vector<8x128xf32>
    %463 = vector.extract_strided_slice %446 {offsets = [0, 256], sizes = [8, 128], strides = [1, 1]} : vector<8x512xf32> to vector<8x128xf32>
    %464 = math.tanh %463 : vector<8x128xf32>
    %465 = vector.extract_strided_slice %446 {offsets = [0, 384], sizes = [8, 128], strides = [1, 1]} : vector<8x512xf32> to vector<8x128xf32>
    %cst_148 = arith.constant 5.000000e-01 : f32
    %466 = vector.broadcast %cst_148 : f32 to vector<8x128xf32>
    %467 = arith.mulf %466, %465 : vector<8x128xf32>
    %468 = math.tanh %467 : vector<8x128xf32>
    %cst_149 = arith.constant 5.000000e-01 : f32
    %469 = vector.broadcast %cst_149 : f32 to vector<8x128xf32>
    %470 = arith.mulf %469, %468 : vector<8x128xf32>
    %cst_150 = arith.constant 5.000000e-01 : f32
    %471 = vector.broadcast %cst_150 : f32 to vector<8x128xf32>
    %472 = arith.addf %470, %471 : vector<8x128xf32>
    %473 = arith.mulf %462, %402 : vector<8x128xf32>
    %474 = arith.mulf %454, %464 : vector<8x128xf32>
    %475 = arith.addf %473, %474 : vector<8x128xf32>
    %476 = math.tanh %475 : vector<8x128xf32>
    %477 = arith.mulf %472, %476 : vector<8x128xf32>
    %478 = tpu.concatenate %477, %442 in 1 : vector<8x128xf32>, vector<8x128xf32> -> vector<8x256xf32>
    %479 = arith.truncf %478 : vector<8x256xf32> to vector<8x256xbf16>
    %c0_151 = arith.constant 0 : index
    %c0_152 = arith.constant 0 : index
    %480 = vector.load %arg2[%c0_151, %c0_152] : memref<256x1024xbf16, #tpu.memory_space<vmem>>, vector<256x1024xbf16>
    %cst_153 = arith.constant dense<0.000000e+00> : vector<8x1024xf32>
    %481 = tpu.matmul %479, %480, %cst_153 {dimension_numbers = #tpu.dot_dimension_numbers<[1], [0], [0], [1], [0, 0, 1, 1], [], []>} : vector<8x256xbf16>, vector<256x1024xbf16>, vector<8x1024xf32> -> vector<8x1024xf32>
    %482 = vector.extract_strided_slice %481 {offsets = [0, 0], sizes = [8, 512], strides = [1, 1]} : vector<8x1024xf32> to vector<8x512xf32>
    %483 = vector.extract_strided_slice %481 {offsets = [0, 512], sizes = [8, 512], strides = [1, 1]} : vector<8x1024xf32> to vector<8x512xf32>
    %484 = arith.addf %483, %2 : vector<8x512xf32>
    %485 = vector.extract_strided_slice %484 {offsets = [0, 0], sizes = [8, 128], strides = [1, 1]} : vector<8x512xf32> to vector<8x128xf32>
    %cst_154 = arith.constant 5.000000e-01 : f32
    %486 = vector.broadcast %cst_154 : f32 to vector<8x128xf32>
    %487 = arith.mulf %486, %485 : vector<8x128xf32>
    %488 = math.tanh %487 : vector<8x128xf32>
    %cst_155 = arith.constant 5.000000e-01 : f32
    %489 = vector.broadcast %cst_155 : f32 to vector<8x128xf32>
    %490 = arith.mulf %489, %488 : vector<8x128xf32>
    %cst_156 = arith.constant 5.000000e-01 : f32
    %491 = vector.broadcast %cst_156 : f32 to vector<8x128xf32>
    %492 = arith.addf %490, %491 : vector<8x128xf32>
    %493 = vector.extract_strided_slice %484 {offsets = [0, 128], sizes = [8, 128], strides = [1, 1]} : vector<8x512xf32> to vector<8x128xf32>
    %cst_157 = arith.constant 5.000000e-01 : f32
    %494 = vector.broadcast %cst_157 : f32 to vector<8x128xf32>
    %495 = arith.mulf %494, %493 : vector<8x128xf32>
    %496 = math.tanh %495 : vector<8x128xf32>
    %cst_158 = arith.constant 5.000000e-01 : f32
    %497 = vector.broadcast %cst_158 : f32 to vector<8x128xf32>
    %498 = arith.mulf %497, %496 : vector<8x128xf32>
    %cst_159 = arith.constant 5.000000e-01 : f32
    %499 = vector.broadcast %cst_159 : f32 to vector<8x128xf32>
    %500 = arith.addf %498, %499 : vector<8x128xf32>
    %501 = vector.extract_strided_slice %484 {offsets = [0, 256], sizes = [8, 128], strides = [1, 1]} : vector<8x512xf32> to vector<8x128xf32>
    %502 = math.tanh %501 : vector<8x128xf32>
    %503 = vector.extract_strided_slice %484 {offsets = [0, 384], sizes = [8, 128], strides = [1, 1]} : vector<8x512xf32> to vector<8x128xf32>
    %cst_160 = arith.constant 5.000000e-01 : f32
    %504 = vector.broadcast %cst_160 : f32 to vector<8x128xf32>
    %505 = arith.mulf %504, %503 : vector<8x128xf32>
    %506 = math.tanh %505 : vector<8x128xf32>
    %cst_161 = arith.constant 5.000000e-01 : f32
    %507 = vector.broadcast %cst_161 : f32 to vector<8x128xf32>
    %508 = arith.mulf %507, %506 : vector<8x128xf32>
    %cst_162 = arith.constant 5.000000e-01 : f32
    %509 = vector.broadcast %cst_162 : f32 to vector<8x128xf32>
    %510 = arith.addf %508, %509 : vector<8x128xf32>
    %511 = arith.mulf %500, %440 : vector<8x128xf32>
    %512 = arith.mulf %492, %502 : vector<8x128xf32>
    %513 = arith.addf %511, %512 : vector<8x128xf32>
    %514 = math.tanh %513 : vector<8x128xf32>
    %515 = arith.mulf %510, %514 : vector<8x128xf32>
    %c7_i32 = arith.constant 7 : i32
    %516 = arith.index_cast %c7_i32 : i32 to index
    %c0_163 = arith.constant 0 : index
    %c0_164 = arith.constant 0 : index
    %517 = vector.load %arg1[%516, %c0_163, %c0_164] : memref<8x8x512xf32, #tpu.memory_space<vmem>>, vector<1x8x512xf32>
    %518 = vector.shape_cast %517 : vector<1x8x512xf32> to vector<8x512xf32>
    %519 = arith.addf %518, %482 : vector<8x512xf32>
    %520 = vector.extract_strided_slice %519 {offsets = [0, 0], sizes = [8, 128], strides = [1, 1]} : vector<8x512xf32> to vector<8x128xf32>
    %cst_165 = arith.constant 5.000000e-01 : f32
    %521 = vector.broadcast %cst_165 : f32 to vector<8x128xf32>
    %522 = arith.mulf %521, %520 : vector<8x128xf32>
    %523 = math.tanh %522 : vector<8x128xf32>
    %cst_166 = arith.constant 5.000000e-01 : f32
    %524 = vector.broadcast %cst_166 : f32 to vector<8x128xf32>
    %525 = arith.mulf %524, %523 : vector<8x128xf32>
    %cst_167 = arith.constant 5.000000e-01 : f32
    %526 = vector.broadcast %cst_167 : f32 to vector<8x128xf32>
    %527 = arith.addf %525, %526 : vector<8x128xf32>
    %528 = vector.extract_strided_slice %519 {offsets = [0, 128], sizes = [8, 128], strides = [1, 1]} : vector<8x512xf32> to vector<8x128xf32>
    %cst_168 = arith.constant 5.000000e-01 : f32
    %529 = vector.broadcast %cst_168 : f32 to vector<8x128xf32>
    %530 = arith.mulf %529, %528 : vector<8x128xf32>
    %531 = math.tanh %530 : vector<8x128xf32>
    %cst_169 = arith.constant 5.000000e-01 : f32
    %532 = vector.broadcast %cst_169 : f32 to vector<8x128xf32>
    %533 = arith.mulf %532, %531 : vector<8x128xf32>
    %cst_170 = arith.constant 5.000000e-01 : f32
    %534 = vector.broadcast %cst_170 : f32 to vector<8x128xf32>
    %535 = arith.addf %533, %534 : vector<8x128xf32>
    %536 = vector.extract_strided_slice %519 {offsets = [0, 256], sizes = [8, 128], strides = [1, 1]} : vector<8x512xf32> to vector<8x128xf32>
    %537 = math.tanh %536 : vector<8x128xf32>
    %538 = vector.extract_strided_slice %519 {offsets = [0, 384], sizes = [8, 128], strides = [1, 1]} : vector<8x512xf32> to vector<8x128xf32>
    %cst_171 = arith.constant 5.000000e-01 : f32
    %539 = vector.broadcast %cst_171 : f32 to vector<8x128xf32>
    %540 = arith.mulf %539, %538 : vector<8x128xf32>
    %541 = math.tanh %540 : vector<8x128xf32>
    %cst_172 = arith.constant 5.000000e-01 : f32
    %542 = vector.broadcast %cst_172 : f32 to vector<8x128xf32>
    %543 = arith.mulf %542, %541 : vector<8x128xf32>
    %cst_173 = arith.constant 5.000000e-01 : f32
    %544 = vector.broadcast %cst_173 : f32 to vector<8x128xf32>
    %545 = arith.addf %543, %544 : vector<8x128xf32>
    %546 = arith.mulf %535, %475 : vector<8x128xf32>
    %547 = arith.mulf %527, %537 : vector<8x128xf32>
    %548 = arith.addf %546, %547 : vector<8x128xf32>
    %549 = math.tanh %548 : vector<8x128xf32>
    %550 = arith.mulf %545, %549 : vector<8x128xf32>
    %551 = tpu.concatenate %550, %515 in 1 : vector<8x128xf32>, vector<8x128xf32> -> vector<8x256xf32>
    %552 = arith.truncf %551 : vector<8x256xf32> to vector<8x256xbf16>
    %c0_174 = arith.constant 0 : index
    %c0_175 = arith.constant 0 : index
    %553 = vector.load %arg2[%c0_174, %c0_175] : memref<256x1024xbf16, #tpu.memory_space<vmem>>, vector<256x1024xbf16>
    %cst_176 = arith.constant dense<0.000000e+00> : vector<8x1024xf32>
    %554 = tpu.matmul %552, %553, %cst_176 {dimension_numbers = #tpu.dot_dimension_numbers<[1], [0], [0], [1], [0, 0, 1, 1], [], []>} : vector<8x256xbf16>, vector<256x1024xbf16>, vector<8x1024xf32> -> vector<8x1024xf32>
    %555 = vector.extract_strided_slice %554 {offsets = [0, 0], sizes = [8, 512], strides = [1, 1]} : vector<8x1024xf32> to vector<8x512xf32>
    %556 = vector.extract_strided_slice %554 {offsets = [0, 512], sizes = [8, 512], strides = [1, 1]} : vector<8x1024xf32> to vector<8x512xf32>
    %557 = arith.addf %556, %2 : vector<8x512xf32>
    %558 = vector.extract_strided_slice %557 {offsets = [0, 0], sizes = [8, 128], strides = [1, 1]} : vector<8x512xf32> to vector<8x128xf32>
    %cst_177 = arith.constant 5.000000e-01 : f32
    %559 = vector.broadcast %cst_177 : f32 to vector<8x128xf32>
    %560 = arith.mulf %559, %558 : vector<8x128xf32>
    %561 = math.tanh %560 : vector<8x128xf32>
    %cst_178 = arith.constant 5.000000e-01 : f32
    %562 = vector.broadcast %cst_178 : f32 to vector<8x128xf32>
    %563 = arith.mulf %562, %561 : vector<8x128xf32>
    %cst_179 = arith.constant 5.000000e-01 : f32
    %564 = vector.broadcast %cst_179 : f32 to vector<8x128xf32>
    %565 = arith.addf %563, %564 : vector<8x128xf32>
    %566 = vector.extract_strided_slice %557 {offsets = [0, 128], sizes = [8, 128], strides = [1, 1]} : vector<8x512xf32> to vector<8x128xf32>
    %cst_180 = arith.constant 5.000000e-01 : f32
    %567 = vector.broadcast %cst_180 : f32 to vector<8x128xf32>
    %568 = arith.mulf %567, %566 : vector<8x128xf32>
    %569 = math.tanh %568 : vector<8x128xf32>
    %cst_181 = arith.constant 5.000000e-01 : f32
    %570 = vector.broadcast %cst_181 : f32 to vector<8x128xf32>
    %571 = arith.mulf %570, %569 : vector<8x128xf32>
    %cst_182 = arith.constant 5.000000e-01 : f32
    %572 = vector.broadcast %cst_182 : f32 to vector<8x128xf32>
    %573 = arith.addf %571, %572 : vector<8x128xf32>
    %574 = vector.extract_strided_slice %557 {offsets = [0, 256], sizes = [8, 128], strides = [1, 1]} : vector<8x512xf32> to vector<8x128xf32>
    %575 = math.tanh %574 : vector<8x128xf32>
    %576 = vector.extract_strided_slice %557 {offsets = [0, 384], sizes = [8, 128], strides = [1, 1]} : vector<8x512xf32> to vector<8x128xf32>
    %cst_183 = arith.constant 5.000000e-01 : f32
    %577 = vector.broadcast %cst_183 : f32 to vector<8x128xf32>
    %578 = arith.mulf %577, %576 : vector<8x128xf32>
    %579 = math.tanh %578 : vector<8x128xf32>
    %cst_184 = arith.constant 5.000000e-01 : f32
    %580 = vector.broadcast %cst_184 : f32 to vector<8x128xf32>
    %581 = arith.mulf %580, %579 : vector<8x128xf32>
    %cst_185 = arith.constant 5.000000e-01 : f32
    %582 = vector.broadcast %cst_185 : f32 to vector<8x128xf32>
    %583 = arith.addf %581, %582 : vector<8x128xf32>
    %584 = arith.mulf %573, %513 : vector<8x128xf32>
    %585 = arith.mulf %565, %575 : vector<8x128xf32>
    %586 = arith.addf %584, %585 : vector<8x128xf32>
    %587 = math.tanh %586 : vector<8x128xf32>
    %588 = arith.mulf %583, %587 : vector<8x128xf32>
    %c8_i32 = arith.constant 8 : i32
    %589 = arith.truncf %588 : vector<8x128xf32> to vector<8x128xbf16>
    %c0_186 = arith.constant 0 : index
    %c0_187 = arith.constant 0 : index
    %590 = vector.load %arg4[%c0_186, %c0_187] : memref<128x128xbf16, #tpu.memory_space<vmem>>, vector<128x128xbf16>
    %cst_188 = arith.constant dense<0.000000e+00> : vector<8x128xf32>
    %591 = tpu.matmul %589, %590, %cst_188 {dimension_numbers = #tpu.dot_dimension_numbers<[1], [0], [0], [1], [0, 0, 1, 1], [], []>} : vector<8x128xbf16>, vector<128x128xbf16>, vector<8x128xf32> -> vector<8x128xf32>
    %c0_189 = arith.constant 0 : index
    %c0_190 = arith.constant 0 : index
    %592 = vector.load %arg5[%c0_189, %c0_190] : memref<1x128xf32, #tpu.memory_space<vmem>>, vector<1x128xf32>
    %593 = vector.broadcast %592 : vector<1x128xf32> to vector<8x128xf32>
    %594 = arith.addf %591, %593 : vector<8x128xf32>
    %c0_191 = arith.constant 0 : index
    %c0_192 = arith.constant 0 : index
    %595 = vector.load %arg6[%c0_191, %c0_192] : memref<8x128xf32, #tpu.memory_space<vmem>>, vector<8x128xf32>
    tpu.vector_store %arg6[%c0_191, %c0_192], %594 {strides = array<i32>} : memref<8x128xf32, #tpu.memory_space<vmem>>, vector<8x128xf32>,
    return
  }
  func.func @transform_0(%arg0: i32) -> (i32, i32, i32) {
    %c0_i32 = arith.constant 0 : i32
    %c0_i32_0 = arith.constant 0 : i32
    %c0_i32_1 = arith.constant 0 : i32
    return %c0_i32, %arg0, %c0_i32_0 : i32, i32, i32
  }
  func.func @transform_1(%arg0: i32) -> (i32, i32) {
    %c0_i32 = arith.constant 0 : i32
    %c0_i32_0 = arith.constant 0 : i32
    %c0_i32_1 = arith.constant 0 : i32
    return %c0_i32, %c0_i32_0 : i32, i32
  }
  func.func @transform_2(%arg0: i32) -> (i32, i32) {
    %c0_i32 = arith.constant 0 : i32
    %c0_i32_0 = arith.constant 0 : i32
    %c0_i32_1 = arith.constant 0 : i32
    return %c0_i32, %c0_i32_0 : i32, i32
  }
  func.func @transform_3(%arg0: i32) -> (i32, i32) {
    %c0_i32 = arith.constant 0 : i32
    %c0_i32_0 = arith.constant 0 : i32
    %c0_i32_1 = arith.constant 0 : i32
    return %c0_i32, %c0_i32_0 : i32, i32
  }
  func.func @transform_4(%arg0: i32) -> (i32, i32) {
    %c0_i32 = arith.constant 0 : i32
    %c0_i32_0 = arith.constant 0 : i32
    %c0_i32_1 = arith.constant 0 : i32
    return %c0_i32, %c0_i32_0 : i32, i32
  }
  func.func @transform_5(%arg0: i32) -> (i32, i32) {
    %c0_i32 = arith.constant 0 : i32
    %c0_i32_0 = arith.constant 0 : i32
    return %arg0, %c0_i32 : i32, i32
  }
}

</mosaic_0001>

<bundles_post_ra>
// kernel: tpu_custom_call.1
= control target key start
LH: loop header
LB: loop body
LE: loop exit
PB: predicated region body
PF: predicated region fallthrough
CT: control target
= control target key end

     0   :  { %10 = vsyncpa [#allocation3], 0  ;;  %s4518_s0 = inlined_call_operand.hbm [shape: f32[8,8,512], index: 0, kind: input, shape index: {}]   ;;  %s4519_s1 = inlined_call_operand.hbm [shape: bf16[256,1024], index: 1, kind: input, shape index: {}]   ;;  %s4520_s2 = inlined_call_operand.vmem [shape: f32[1,512], index: 2, kind: input, shape index: {}]   ;;  %s4521_s3 = inlined_call_operand.hbm [shape: bf16[128,128], index: 3, kind: input, shape index: {}]   ;;  %s4522_s4 = inlined_call_operand.vmem [shape: f32[1,128], index: 4, kind: input, shape index: {}]   ;;  %s4523_s5 = inlined_call_operand.hbm [shape: f32[8,128], index: 5, kind: output, shape index: {}]  }
   0x1   :  { %11 = vsyncpa [#allocation6], 0 }
   0x2   :  { %12 = vsyncpa [#allocation4], 0  ;;  %s3058_s18 = smov [#allocation5]   ;;  %s3059_s20 = smov [#allocation2]  }
   0x3   :  { %s30_s19 = sshll.u32 %s3058_s18, 4  ;;  %s18_s21 = sshll.u32 %s3059_s20, 4  ;;  %s31_s19 = int_to_ptr.vmem [resolvable:$true] %s30_s19  ;;  %s3099_s21 = int_to_ptr.vmem [resolvable:$true] %s18_s21 }
   0x4   :  { %s2964_s24 = scalar_lea.hbm %s4519_s1, 16384 }
   0x5   :  { %p2965_p0 = scmp.ne.s32.totalorder %s4519_s1, %s2964_s24  ;;  %p2968_p1 = scmp.lt.u32.totalorder %s2964_s24, %s4519_s1 }
   0x7   :  { %p2970_p2 = pnand %p2968_p1, %p2965_p0 }
   0x9   :  { %2973 = shalt.err (!%p2970_p2)
}
   0xa   :  { %s2974_s29 = scalar_lea.vmem %s31_s19, 16384  ;;  %p2979_p4 = scmp.lt.s32.totalorder %s31_s19, %s31_s19 }
   0xb   :  { %p2975_p3 = scmp.ne.s32.totalorder %s31_s19, %s2974_s29  ;;  %p2980_p5 = scmp.lt.s32.totalorder %s2974_s29, %s2974_s29 }
   0xd   :  { %p2981_p6 = por %p2980_p5, %p2979_p4 }
   0xf   :  { %p2982_p7 = pnand %p2981_p6, %p2975_p3 }
  0x11   :  { %2985 = shalt.err (!%p2982_p7)
}
  0x12   :  { %s3060_s30 = smov 512   ;;  %s3061_s6 = smov 32  }
  0x13   :  { %36 = dma.hbm_to_vmem [thread:$0]  %s4519_s1, 16384, %s31_s19, [#allocation6], %s3060_s30, %s3060_s30, %s3061_s6  }
  0x14   :  { %s2986_s11 = scalar_lea.hbm %s4518_s0, 4096 }
  0x15   :  { %p2987_p8 = scmp.ne.s32.totalorder %s4518_s0, %s2986_s11  ;;  %p2990_p9 = scmp.lt.u32.totalorder %s2986_s11, %s4518_s0 }
  0x17   :  { %p2992_p10 = pnand %p2990_p9, %p2987_p8 }
  0x19   :  { %2995 = shalt.err (!%p2992_p10)
}
  0x1a   :  { %s2996_s16 = scalar_lea.vmem %s3099_s21, 4096  ;;  %p3001_p12 = scmp.lt.s32.totalorder %s3099_s21, %s3099_s21 }
  0x1b   :  { %p2997_p11 = scmp.ne.s32.totalorder %s3099_s21, %s2996_s16  ;;  %p3002_p13 = scmp.lt.s32.totalorder %s2996_s16, %s2996_s16 }
  0x1d   :  { %p3003_p0 = por %p3002_p13, %p3001_p12 }
  0x1f   :  { %p3004_p1 = pnand %p3003_p0, %p2997_p11 }
  0x21   :  { %3007 = shalt.err (!%p3004_p1)
}
  0x22   :  { %24 = dma.hbm_to_vmem [thread:$0]  %s4518_s0, 4096, %s3099_s21, [#allocation3], %s3060_s30, %s3060_s30, %s3061_s6  }
  0x23   :  { %s3062_s18 = smov [#allocation7]   ;;  %s3008_s23 = scalar_lea.hbm %s4521_s3, 1024 }
  0x24   :  { %s44_s19 = sshll.u32 %s3062_s18, 4  ;;  %p3009_p2 = scmp.ne.s32.totalorder %s4521_s3, %s3008_s23  ;;  %s45_s19 = int_to_ptr.vmem [resolvable:$true] %s44_s19 }
  0x25   :  { %p3012_p3 = scmp.lt.u32.totalorder %s3008_s23, %s4521_s3 }
  0x27   :  { %p3014_p4 = pnand %p3012_p3, %p3009_p2 }
  0x29   :  { %3017 = shalt.err (!%p3014_p4)
}
  0x2a   :  { %s3018_s28 = scalar_lea.vmem %s45_s19, 1024  ;;  %p3023_p6 = scmp.lt.s32.totalorder %s45_s19, %s45_s19 }
  0x2b   :  { %p3019_p5 = scmp.ne.s32.totalorder %s45_s19, %s3018_s28  ;;  %p3024_p7 = scmp.lt.s32.totalorder %s3018_s28, %s3018_s28 }
  0x2d   :  { %p3025_p8 = por %p3024_p7, %p3023_p6 }
  0x2f   :  { %p3026_p9 = pnand %p3025_p8, %p3019_p5 }
  0x31   :  { %3029 = shalt.err (!%p3026_p9)
}
  0x32   :  { %s3063_s0 = smov 64   ;;  %s3064_s21 = smov 4  }
  0x33   :  { %50 = dma.hbm_to_vmem [thread:$0]  %s4521_s3, 1024, %s45_s19, [#allocation6], %s3063_s0, %s3063_s0, %s3064_s21  }
  0x34   :  { %3052 = dma.done.wait [#allocation3], 4096  }
  0x35   :  { %3053 = vsyncadd [#allocation3], 4294963200 }
  0x36   :  { %3054 = dma.done.wait [#allocation6], 17408  }
  0x37   :  { %3055 = vsyncadd [#allocation6], 4294949888  ;;  %v4524_v0 = vmov 0.0|0.0   ;;  %v113_v1 = vld [vmem:[#allocation5] sm:$0xff]  ;;  %v114_v7 = vld [vmem:[#allocation5 + $0x8] sm:$0xff]  ;;  %vm3067_vm0 = vmmov 0  }
  0x38   :  { %913 = vmatprep.mubr.bf16.mxu0 %v4524_v0  ;;  %954 = vmatprep.mubr.bf16.mxu1 %v4524_v0  ;;  %v117_v2 = vld [vmem:[#allocation5 + $0x20] sm:$0xff]  ;;  %v118_v8 = vld [vmem:[#allocation5 + $0x28] sm:$0xff]  ;;  %v87_v60 = vld [vmem:[#allocation2 + $0x10] sm:$0xff]  ;;  %s3068_s8 = smov [#allocation8]  }
  0x39   :  { %v121_v3 = vld [vmem:[#allocation5 + $0x40] sm:$0xff]  ;;  %v3144_v4 = vcombine.high %v113_v1, %v117_v2  ;;  %v3146_v5 = vcombine.low %v113_v1, %v117_v2  ;;  %v3150_v10 = vcombine.high %v114_v7, %v118_v8  ;;  %v3152_v11 = vcombine.low %v114_v7, %v118_v8  ;;  %v122_v14 = vld [vmem:[#allocation5 + $0x48] sm:$0xff]  ;;  %s2609_s9 = sshll.u32 %s3068_s8, 4  ;;  %s2610_s9 = int_to_ptr.vmem [resolvable:$true] %s2609_s9 }
  0x3a   :  { %v125_v6 = vld [vmem:[#allocation5 + $0x60] sm:$0xff]  ;;  %v126_v15 = vld [vmem:[#allocation5 + $0x68] sm:$0xff]  ;;  %s3030_s10 = scalar_lea.vmem %s2610_s9, 128  ;;  %p3035_p11 = scmp.lt.s32.totalorder %s2610_s9, %s2610_s9 }
  0x3b   :  { %4808 = vst [vmem:[#allocation12_spill] sm:$0xff] %v3144_v4  ;;  %4809 = vst [vmem:[#allocation13_spill] sm:$0xff] %v3146_v5  ;;  %v3148_v9 = vcombine.high %v121_v3, %v125_v6  ;;  %v129_v12 = vld [vmem:[#allocation5 + $0x80] sm:$0xff]  ;;  %881 = vmatprep.subr.bf16.mxu0 %v3144_v4  ;;  %922 = vmatprep.subr.bf16.mxu1 %v3150_v10  ;;  %v3157_v16 = vcombine.low %v121_v3, %v125_v6  ;;  %v130_v18 = vld [vmem:[#allocation5 + $0x88] sm:$0xff]  ;;  %p3031_p10 = scmp.ne.s32.totalorder %s2610_s9, %s3030_s10  ;;  %p3036_p12 = scmp.lt.s32.totalorder %s3030_s10, %s3030_s10 }
  0x3c   :  { %4811 = vst [vmem:[#allocation15_spill] sm:$0xff] %v3150_v10  ;;  %4812 = vst [vmem:[#allocation16_spill] sm:$0xff] %v3152_v11  ;;  %v133_v13 = vld [vmem:[#allocation5 + $0xa0] sm:$0xff]  ;;  %882 = vmatpush1.bf16.msra.mxu0 %v3146_v5  ;;  %v3159_v17 = vcombine.high %v122_v14, %v126_v15  ;;  %v134_v19 = vld [vmem:[#allocation5 + $0xa8] sm:$0xff]  ;;  %923 = vmatpush1.bf16.msra.mxu1 %v3152_v11  ;;  %v3165_v21 = vcombine.low %v122_v14, %v126_v15 }
  0x3d   :  { %4810 = vst [vmem:[#allocation14_spill] sm:$0xff] %v3148_v9  ;;  %4813 = vst [vmem:[#allocation17_spill] sm:$0xff] %v3157_v16  ;;  %883 = vmatprep.subr.bf16.mxu0 %v3148_v9  ;;  %v3163_v20 = vcombine.high %v129_v12, %v133_v13  ;;  %v137_v22 = vld [vmem:[#allocation5 + $0xc0] sm:$0xff]  ;;  %v3168_v24 = vcombine.high %v130_v18, %v134_v19  ;;  %v138_v25 = vld [vmem:[#allocation5 + $0xc8] sm:$0xff]  ;;  %v3171_v27 = vcombine.low %v129_v12, %v133_v13  ;;  %p3037_p13 = por %p3036_p12, %p3035_p11 }
  0x3e   :  { %4814 = vst [vmem:[#allocation18_spill] sm:$0xff] %v3159_v17  ;;  %4816 = vst [vmem:[#allocation20_spill] sm:$0xff] %v3165_v21  ;;  %924 = vmatprep.subr.bf16.mxu1 %v3159_v17  ;;  %v141_v23 = vld [vmem:[#allocation5 + $0xe0] sm:$0xff]  ;;  %v142_v26 = vld [vmem:[#allocation5 + $0xe8] sm:$0xff]  ;;  %v3177_v29 = vcombine.low %v130_v18, %v134_v19 }
  0x3f   :  { %4815 = vst [vmem:[#allocation19_spill] sm:$0xff] %v3163_v20  ;;  %4817 = vst [vmem:[#allocation21_spill] sm:$0xff] %v3168_v24  ;;  %v3175_v28 = vcombine.high %v137_v22, %v141_v23  ;;  %v145_v30 = vld [vmem:[#allocation5 + $0x100] sm:$0xff]  ;;  %v3180_v32 = vcombine.high %v138_v25, %v142_v26  ;;  %v146_v33 = vld [vmem:[#allocation5 + $0x108] sm:$0xff]  ;;  %v3183_v35 = vcombine.low %v137_v22, %v141_v23  ;;  %p3038_p0 = pnand %p3037_p13, %p3031_p10 }
  0x40   :  { %884 = vmatpush1.bf16.msra.mxu0 %v3157_v16  ;;  %4818 = vst [vmem:[#allocation22_spill] sm:$0xff] %v3171_v27  ;;  %925 = vmatpush1.bf16.msra.mxu1 %v3165_v21  ;;  %4820 = vst [vmem:[#allocation24_spill] sm:$0xff] %v3177_v29  ;;  %v149_v31 = vld [vmem:[#allocation5 + $0x120] sm:$0xff]  ;;  %v150_v34 = vld [vmem:[#allocation5 + $0x128] sm:$0xff]  ;;  %v3189_v37 = vcombine.low %v138_v25, %v142_v26 }
  0x41   :  { %885 = vmatprep.subr.bf16.mxu0 %v3163_v20  ;;  %4819 = vst [vmem:[#allocation23_spill] sm:$0xff] %v3175_v28  ;;  %926 = vmatprep.subr.bf16.mxu1 %v3168_v24  ;;  %4821 = vst [vmem:[#allocation25_spill] sm:$0xff] %v3180_v32  ;;  %v3187_v36 = vcombine.high %v145_v30, %v149_v31  ;;  %v153_v38 = vld [vmem:[#allocation5 + $0x140] sm:$0xff]  ;;  %v3192_v40 = vcombine.high %v146_v33, %v150_v34  ;;  %v154_v41 = vld [vmem:[#allocation5 + $0x148] sm:$0xff] }
  0x42   :  { %4822 = vst [vmem:[#allocation26_spill] sm:$0xff] %v3183_v35  ;;  %4824 = vst [vmem:[#allocation28_spill] sm:$0xff] %v3189_v37  ;;  %v157_v39 = vld [vmem:[#allocation5 + $0x160] sm:$0xff]  ;;  %v158_v42 = vld [vmem:[#allocation5 + $0x168] sm:$0xff]  ;;  %v3195_v43 = vcombine.low %v145_v30, %v149_v31  ;;  %v3201_v45 = vcombine.low %v146_v33, %v150_v34 }
  0x43   :  { %4823 = vst [vmem:[#allocation27_spill] sm:$0xff] %v3187_v36  ;;  %4825 = vst [vmem:[#allocation29_spill] sm:$0xff] %v3192_v40  ;;  %v3199_v44 = vcombine.high %v153_v38, %v157_v39  ;;  %v161_v46 = vld [vmem:[#allocation5 + $0x180] sm:$0xff]  ;;  %v3204_v48 = vcombine.high %v154_v41, %v158_v42  ;;  %v162_v49 = vld [vmem:[#allocation5 + $0x188] sm:$0xff]  ;;  %v3207_v51 = vcombine.low %v153_v38, %v157_v39 }
  0x44   :  { %886 = vmatpush1.bf16.msra.mxu0 %v3171_v27  ;;  %927 = vmatpush1.bf16.msra.mxu1 %v3177_v29  ;;  %4826 = vst [vmem:[#allocation30_spill] sm:$0xff] %v3195_v43  ;;  %4828 = vst [vmem:[#allocation32_spill] sm:$0xff] %v3201_v45  ;;  %v165_v47 = vld [vmem:[#allocation5 + $0x1a0] sm:$0xff]  ;;  %v166_v50 = vld [vmem:[#allocation5 + $0x1a8] sm:$0xff]  ;;  %v3213_v54 = vcombine.low %v154_v41, %v158_v42 }
  0x45   :  { %887 = vmatprep.subr.bf16.mxu0 %v3175_v28  ;;  %928 = vmatprep.subr.bf16.mxu1 %v3180_v32  ;;  %4827 = vst [vmem:[#allocation31_spill] sm:$0xff] %v3199_v44  ;;  %4829 = vst [vmem:[#allocation33_spill] sm:$0xff] %v3204_v48  ;;  %v85_v52 = vld [vmem:[#allocation2] sm:$0xff]  ;;  %v3211_v53 = vcombine.high %v161_v46, %v165_v47  ;;  %v86_v55 = vld [vmem:[#allocation2 + $0x8] sm:$0xff]  ;;  %v3216_v59 = vcombine.high %v162_v49, %v166_v50 }
  0x46   :  { %4830 = vst [vmem:[#allocation34_spill] sm:$0xff] %v3207_v51  ;;  %4832 = vst [vmem:[#allocation36_spill] sm:$0xff] %v3213_v54  ;;  %v93_v56 = vmul.f32 0.5, %v85_v52  ;;  %v169_v57 = vld [vmem:[#allocation5 + $0x1c0] sm:$0xff]  ;;  %v97_v61 = vmul.f32 0.5, %v86_v55  ;;  %v170_v62 = vld [vmem:[#allocation5 + $0x1c8] sm:$0xff]  ;;  %v3219_v1 = vcombine.low %v161_v46, %v165_v47  ;;  %v3225_v3 = vcombine.low %v162_v49, %v166_v50 }
  0x47   :  { %4831 = vst [vmem:[#allocation35_spill] sm:$0xff] %v3211_v53  ;;  %v173_v58 = vld [vmem:[#allocation5 + $0x1e0] sm:$0xff]  ;;  %4833 = vst [vmem:[#allocation37_spill] sm:$0xff] %v3216_v59  ;;  %v174_v63 = vld [vmem:[#allocation5 + $0x1e8] sm:$0xff] }
  0x48   :  { %888 = vmatpush1.bf16.msra.mxu0 %v3183_v35  ;;  %929 = vmatpush1.bf16.msra.mxu1 %v3189_v37  ;;  %2804 = vtanh.f32 %v93_v56  ;;  %4834 = vst [vmem:[#allocation38_spill] sm:$0xff] %v3219_v1  ;;  %v3223_v2 = vcombine.high %v169_v57, %v173_v58  ;;  %4836 = vst [vmem:[#allocation40_spill] sm:$0xff] %v3225_v3  ;;  %v177_v6 = vld [vmem:[#allocation5 + $0x200] sm:$0xff]  ;;  %v3228_v8 = vcombine.high %v170_v62, %v174_v63  ;;  %v178_v12 = vld [vmem:[#allocation5 + $0x208] sm:$0xff] }
  0x49   :  { %889 = vmatprep.subr.bf16.mxu0 %v3187_v36  ;;  %930 = vmatprep.subr.bf16.mxu1 %v3192_v40  ;;  %2806 = vtanh.f32 %v97_v61  ;;  %v181_v7 = vld [vmem:[#allocation5 + $0x220] sm:$0xff]  ;;  %v182_v13 = vld [vmem:[#allocation5 + $0x228] sm:$0xff]  ;;  %v3231_v14 = vcombine.low %v169_v57, %v173_v58  ;;  %v3237_v18 = vcombine.low %v170_v62, %v174_v63  ;;  %v88_v30 = vld [vmem:[#allocation2 + $0x18] sm:$0xff] }
  0x4a   :  { %4835 = vst [vmem:[#allocation39_spill] sm:$0xff] %v3223_v2  ;;  %2808 = vtanh.f32 %v87_v60  ;;  %4837 = vst [vmem:[#allocation41_spill] sm:$0xff] %v3228_v8  ;;  %v3235_v15 = vcombine.high %v177_v6, %v181_v7  ;;  %v185_v19 = vld [vmem:[#allocation5 + $0x240] sm:$0xff]  ;;  %v3240_v23 = vcombine.high %v178_v12, %v182_v13  ;;  %v186_v25 = vld [vmem:[#allocation5 + $0x248] sm:$0xff]  ;;  %v3243_v31 = vcombine.low %v177_v6, %v181_v7 }
  0x4b   :  { %4838 = vst [vmem:[#allocation42_spill] sm:$0xff] %v3231_v14  ;;  %4840 = vst [vmem:[#allocation44_spill] sm:$0xff] %v3237_v18  ;;  %v189_v22 = vld [vmem:[#allocation5 + $0x260] sm:$0xff]  ;;  %v190_v26 = vld [vmem:[#allocation5 + $0x268] sm:$0xff]  ;;  %v3249_v38 = vcombine.low %v178_v12, %v182_v13  ;;  %v102_v49 = vmul.f32 0.5, %v88_v30 }
  0x4c   :  { %890 = vmatpush1.bf16.msra.mxu0 %v3195_v43  ;;  %931 = vmatpush1.bf16.msra.mxu1 %v3201_v45  ;;  %4839 = vst [vmem:[#allocation43_spill] sm:$0xff] %v3235_v15  ;;  %4841 = vst [vmem:[#allocation45_spill] sm:$0xff] %v3240_v23  ;;  %v3247_v34 = vcombine.high %v185_v19, %v189_v22  ;;  %v193_v41 = vld [vmem:[#allocation5 + $0x280] sm:$0xff]  ;;  %v3252_v46 = vcombine.high %v186_v25, %v190_v26  ;;  %v194_v52 = vld [vmem:[#allocation5 + $0x288] sm:$0xff] }
  0x4d   :  { %891 = vmatprep.subr.bf16.mxu0 %v3199_v44  ;;  %932 = vmatprep.subr.bf16.mxu1 %v3204_v48  ;;  %4842 = vst [vmem:[#allocation46_spill] sm:$0xff] %v3243_v31  ;;  %4844 = vst [vmem:[#allocation48_spill] sm:$0xff] %v3249_v38  ;;  %v197_v42 = vld [vmem:[#allocation5 + $0x2a0] sm:$0xff]  ;;  %v198_v55 = vld [vmem:[#allocation5 + $0x2a8] sm:$0xff]  ;;  %v3255_v57 = vcombine.low %v185_v19, %v189_v22  ;;  %v3261_v61 = vcombine.low %v186_v25, %v190_v26  ;;  %2810 = vtanh.f32 %v102_v49 }
  0x4e   :  { %4843 = vst [vmem:[#allocation47_spill] sm:$0xff] %v3247_v34  ;;  %4845 = vst [vmem:[#allocation49_spill] sm:$0xff] %v3252_v46  ;;  %v3259_v60 = vcombine.high %v193_v41, %v197_v42  ;;  %v201_v63 = vld [vmem:[#allocation5 + $0x2c0] sm:$0xff]  ;;  %v3264_v7 = vcombine.high %v194_v52, %v198_v55  ;;  %v202_v13 = vld [vmem:[#allocation5 + $0x2c8] sm:$0xff]  ;;  %v3267_v30 = vcombine.low %v193_v41, %v197_v42 }
  0x4f   :  { %4846 = vst [vmem:[#allocation50_spill] sm:$0xff] %v3255_v57  ;;  %4848 = vst [vmem:[#allocation52_spill] sm:$0xff] %v3261_v61  ;;  %v205_v6 = vld [vmem:[#allocation5 + $0x2e0] sm:$0xff]  ;;  %v206_v19 = vld [vmem:[#allocation5 + $0x2e8] sm:$0xff]  ;;  %v3273_v26 = vcombine.low %v194_v52, %v198_v55 }
  0x50   :  { %892 = vmatpush1.bf16.msra.mxu0 %v3207_v51  ;;  %933 = vmatpush1.bf16.msra.mxu1 %v3213_v54  ;;  %4847 = vst [vmem:[#allocation51_spill] sm:$0xff] %v3259_v60  ;;  %4849 = vst [vmem:[#allocation53_spill] sm:$0xff] %v3264_v7  ;;  %v3271_v25 = vcombine.high %v201_v63, %v205_v6  ;;  %v3281_v41 = vcombine.low %v201_v63, %v205_v6  ;;  %v217_v42 = vld [vmem:[#allocation5 + $0x340] sm:$0xff]  ;;  %v222_v0 = vld [vmem:[#allocation5 + $0x368] sm:$0xff] }
  0x51   :  { %893 = vmatprep.subr.bf16.mxu0 %v3211_v53  ;;  %934 = vmatprep.subr.bf16.mxu1 %v3216_v59  ;;  %4850 = vst [vmem:[#allocation54_spill] sm:$0xff] %v3267_v30  ;;  %4852 = vst [vmem:[#allocation56_spill] sm:$0xff] %v3273_v26  ;;  %v3287_v55 = vcombine.low %v202_v13, %v206_v19 }
  0x52   :  { %v2805_v33 = vpop.eup %2804  ;;  %4851 = vst [vmem:[#allocation55_spill] sm:$0xff] %v3271_v25  ;;  %4855 = vst [vmem:[#allocation59_spill] sm:$0xff] %v3281_v41 }
  0x53   :  { %v2807_v39 = vpop.eup %2806  ;;  %v95_v47 = vmul.f32 0.5, %v2805_v33  ;;  %v209_v33 = vld [vmem:[#allocation5 + $0x300] sm:$0xff]  ;;  %4857 = vst [vmem:[#allocation61_spill] sm:$0xff] %v3287_v55 }
  0x54   :  { %894 = vmatpush1.bf16.msra.mxu0 %v3219_v1  ;;  %935 = vmatpush1.bf16.msra.mxu1 %v3225_v3  ;;  %v2809_v50 = vpop.eup %2808  ;;  %v99_v56 = vmul.f32 0.5, %v2807_v39  ;;  %v213_v39 = vld [vmem:[#allocation5 + $0x320] sm:$0xff] }
  0x55   :  { %895 = vmatprep.subr.bf16.mxu0 %v3223_v2  ;;  %936 = vmatprep.subr.bf16.mxu1 %v3228_v8  ;;  %v96_v58 = vadd.f32 0.5, %v95_v47  ;;  %v3276_v47 = vcombine.high %v202_v13, %v206_v19  ;;  %v3285_v52 = vcombine.high %v209_v33, %v213_v39  ;;  %v3294_v6 = vcombine.low %v209_v33, %v213_v39  ;;  %v225_v19 = vld [vmem:[#allocation5 + $0x380] sm:$0xff] }
  0x56   :  { %v100_v62 = vadd.f32 0.5, %v99_v56  ;;  %v214_v56 = vld [vmem:[#allocation5 + $0x328] sm:$0xff] }
  0x57   :  { %v107_v12 = vmul.f32 %v2809_v50, %v96_v58  ;;  %4853 = vst [vmem:[#allocation57_spill] sm:$0xff] %v3276_v47  ;;  %v210_v50 = vld [vmem:[#allocation5 + $0x308] sm:$0xff]  ;;  %v221_v58 = vld [vmem:[#allocation5 + $0x360] sm:$0xff]  ;;  %4856 = vst [vmem:[#allocation60_spill] sm:$0xff] %v3285_v52  ;;  %v2811_v63 = vpop.eup %2810 }
  0x58   :  { %896 = vmatpush1.bf16.msra.mxu0 %v3231_v14  ;;  %937 = vmatpush1.bf16.msra.mxu1 %v3237_v18  ;;  %v106_v22 = vmul.f32 0.0, %v100_v62  ;;  %v218_v62 = vld [vmem:[#allocation5 + $0x348] sm:$0xff]  ;;  %4859 = vst [vmem:[#allocation63_spill] sm:$0xff] %v3294_v6  ;;  %v3300_v13 = vcombine.low %v210_v50, %v214_v56  ;;  %v3306_v33 = vcombine.low %v217_v42, %v221_v58 }
  0x59   :  { %897 = vmatprep.subr.bf16.mxu0 %v3235_v15  ;;  %938 = vmatprep.subr.bf16.mxu1 %v3240_v23 }
  0x5a   :  { %v3278_v49 = vadd.f32 %v107_v12, %v106_v22  ;;  %v3290_v12 = vcombine.high %v210_v50, %v214_v56  ;;  %v3298_v22 = vcombine.high %v217_v42, %v221_v58  ;;  %4861 = vst [vmem:[#allocation65_spill] sm:$0xff] %v3300_v13  ;;  %4863 = vst [vmem:[#allocation67_spill] sm:$0xff] %v3306_v33  ;;  %v233_v56 = vld [vmem:[#allocation5 + $0x3c0] sm:$0xff] }
  0x5b   :  { %v3312_v50 = vcombine.low %v218_v62, %v222_v0 }
  0x5c   :  { %898 = vmatpush1.bf16.msra.mxu0 %v3243_v31  ;;  %939 = vmatpush1.bf16.msra.mxu1 %v3249_v38  ;;  %4854 = vst [vmem:[#allocation58_spill] sm:$0xff] %v3278_v49  ;;  %4858 = vst [vmem:[#allocation62_spill] sm:$0xff] %v3290_v12  ;;  %2812 = vtanh.f32 %v3278_v49  ;;  %v226_v49 = vld [vmem:[#allocation5 + $0x388] sm:$0xff] }
  0x5d   :  { %899 = vmatprep.subr.bf16.mxu0 %v3247_v34  ;;  %940 = vmatprep.subr.bf16.mxu1 %v3252_v46  ;;  %4860 = vst [vmem:[#allocation64_spill] sm:$0xff] %v3298_v22  ;;  %4865 = vst [vmem:[#allocation69_spill] sm:$0xff] %v3312_v50 }
  0x60   :  { %900 = vmatpush1.bf16.msra.mxu0 %v3255_v57  ;;  %941 = vmatpush1.bf16.msra.mxu1 %v3261_v61 }
  0x61   :  { %901 = vmatprep.subr.bf16.mxu0 %v3259_v60  ;;  %942 = vmatprep.subr.bf16.mxu1 %v3264_v7  ;;  %v120_v7 = vld [vmem:[#allocation5 + $0x38] sm:$0xff] }
  0x64   :  { %902 = vmatpush1.bf16.msra.mxu0 %v3267_v30  ;;  %943 = vmatpush1.bf16.msra.mxu1 %v3273_v26  ;;  %v230_v26 = vld [vmem:[#allocation5 + $0x3a8] sm:$0xff]  ;;  %v104_v30 = vmul.f32 0.5, %v2811_v63 }
  0x65   :  { %903 = vmatprep.subr.bf16.mxu0 %v3271_v25  ;;  %944 = vmatprep.subr.bf16.mxu1 %v3276_v47  ;;  %v229_v47 = vld [vmem:[#allocation5 + $0x3a0] sm:$0xff]  ;;  %v3303_v25 = vcombine.high %v218_v62, %v222_v0  ;;  %v234_v63 = vld [vmem:[#allocation5 + $0x3c8] sm:$0xff]  ;;  %v3324_v58 = vcombine.low %v226_v49, %v230_v26 }
  0x66   :  { %v3310_v39 = vcombine.high %v225_v19, %v229_v47  ;;  %v3318_v42 = vcombine.low %v225_v19, %v229_v47 }
  0x67   :  { %4862 = vst [vmem:[#allocation66_spill] sm:$0xff] %v3303_v25  ;;  %4869 = vst [vmem:[#allocation73_spill] sm:$0xff] %v3324_v58 }
  0x68   :  { %904 = vmatpush1.bf16.msra.mxu0 %v3281_v41  ;;  %945 = vmatpush1.bf16.msra.mxu1 %v3287_v55  ;;  %4864 = vst [vmem:[#allocation68_spill] sm:$0xff] %v3310_v39  ;;  %v105_v55 = vadd.f32 0.5, %v104_v30  ;;  %v238_v41 = vld [vmem:[#allocation5 + $0x3e8] sm:$0xff]  ;;  %4867 = vst [vmem:[#allocation71_spill] sm:$0xff] %v3318_v42  ;;  %v115_v30 = vld [vmem:[#allocation5 + $0x10] sm:$0xff] }
  0x69   :  { %905 = vmatprep.subr.bf16.mxu0 %v3285_v52  ;;  %946 = vmatprep.subr.bf16.mxu1 %v3290_v12  ;;  %v237_v12 = vld [vmem:[#allocation5 + $0x3e0] sm:$0xff]  ;;  %v3315_v52 = vcombine.high %v226_v49, %v230_v26  ;;  %v3327_v62 = vcombine.high %v234_v63, %v238_v41  ;;  %v3336_v26 = vcombine.low %v234_v63, %v238_v41  ;;  %v123_v49 = vld [vmem:[#allocation5 + $0x50] sm:$0xff] }
  0x6a   :  { %v3322_v0 = vcombine.high %v233_v56, %v237_v12  ;;  %v3330_v47 = vcombine.low %v233_v56, %v237_v12  ;;  %v131_v63 = vld [vmem:[#allocation5 + $0x90] sm:$0xff] }
  0x6b   :  { %4866 = vst [vmem:[#allocation70_spill] sm:$0xff] %v3315_v52  ;;  %4870 = vst [vmem:[#allocation74_spill] sm:$0xff] %v3327_v62 }
  0x6c   :  { %906 = vmatpush1.bf16.msra.mxu0 %v3294_v6  ;;  %947 = vmatpush1.bf16.msra.mxu1 %v3300_v13  ;;  %v2813_v6 = vpop.eup %2812  ;;  %4868 = vst [vmem:[#allocation72_spill] sm:$0xff] %v3322_v0  ;;  %v116_v13 = vld [vmem:[#allocation5 + $0x18] sm:$0xff]  ;;  %4871 = vst [vmem:[#allocation75_spill] sm:$0xff] %v3330_v47 }
  0x6d   :  { %907 = vmatprep.subr.bf16.mxu0 %v3298_v22  ;;  %948 = vmatprep.subr.bf16.mxu1 %v3303_v25  ;;  %v119_v25 = vld [vmem:[#allocation5 + $0x30] sm:$0xff]  ;;  %v110_v22 = vmul.f32 %v2813_v6, %v105_v55  ;;  %4873 = vst [vmem:[#allocation77_spill] sm:$0xff] %v3336_v26  ;;  %v124_v6 = vld [vmem:[#allocation5 + $0x58] sm:$0xff]  ;;  %v3350_v56 = vcombine.low %v116_v13, %v120_v7 }
  0x6e   :  { %v3334_v19 = vcombine.high %v115_v30, %v119_v25  ;;  %v3344_v12 = vcombine.low %v115_v30, %v119_v25  ;;  %v139_v30 = vld [vmem:[#allocation5 + $0xd0] sm:$0xff] }
  0x6f   :  { %v3341_v55 = vpack.c.bf16 %v110_v22, %v110_v22  ;;  %4877 = vst [vmem:[#allocation81_spill] sm:$0xff] %v3350_v56 }
  0x70   :  { %908 = vmatpush1.bf16.msra.mxu0 %v3306_v33  ;;  %949 = vmatpush1.bf16.msra.mxu1 %v3312_v50  ;;  %4872 = vst [vmem:[#allocation76_spill] sm:$0xff] %v3334_v19  ;;  %4875 = vst [vmem:[#allocation79_spill] sm:$0xff] %v3344_v12 }
  0x71   :  { %909 = vmatprep.subr.bf16.mxu0 %v3310_v39  ;;  %950 = vmatprep.subr.bf16.mxu1 %v3315_v52  ;;  %v127_v52 = vld [vmem:[#allocation5 + $0x70] sm:$0xff]  ;;  %v3339_v39 = vcombine.high %v116_v13, %v120_v7 }
  0x72   :  { %v3348_v41 = vcombine.high %v123_v49, %v127_v52  ;;  %v3358_v25 = vcombine.low %v123_v49, %v127_v52 }
  0x73   :  { %4874 = vst [vmem:[#allocation78_spill] sm:$0xff] %v3339_v39 }
  0x74   :  { %910 = vmatpush1.bf16.msra.mxu0 %v3318_v42  ;;  %951 = vmatpush1.bf16.msra.mxu1 %v3324_v58  ;;  %v128_v42 = vld [vmem:[#allocation5 + $0x78] sm:$0xff]  ;;  %4876 = vst [vmem:[#allocation80_spill] sm:$0xff] %v3348_v41  ;;  %4879 = vst [vmem:[#allocation83_spill] sm:$0xff] %v3358_v25 }
  0x75   :  { %911 = vmatprep.subr.bf16.mxu0 %v3322_v0  ;;  %952 = vmatprep.subr.bf16.mxu1 %v3327_v62  ;;  %v135_v62 = vld [vmem:[#allocation5 + $0xb0] sm:$0xff]  ;;  %v3353_v22 = vcombine.high %v124_v6, %v128_v42  ;;  %v132_v0 = vld [vmem:[#allocation5 + $0x98] sm:$0xff]  ;;  %v3364_v13 = vcombine.low %v124_v6, %v128_v42 }
  0x76   :  { %v3362_v7 = vcombine.high %v131_v63, %v135_v62  ;;  %v144_v58 = vld [vmem:[#allocation5 + $0xf8] sm:$0xff]  ;;  %v3372_v52 = vcombine.low %v131_v63, %v135_v62  ;;  %v147_v6 = vld [vmem:[#allocation5 + $0x110] sm:$0xff] }
  0x77   :  { %4878 = vst [vmem:[#allocation82_spill] sm:$0xff] %v3353_v22  ;;  %4881 = vst [vmem:[#allocation85_spill] sm:$0xff] %v3364_v13 }
  0x78   :  { %912 = vmatpush1.bf16.msra.mxu0 %v3330_v47  ;;  %953 = vmatpush1.bf16.msra.mxu1 %v3336_v26  ;;  %v136_v47 = vld [vmem:[#allocation5 + $0xb8] sm:$0xff]  ;;  %4880 = vst [vmem:[#allocation84_spill] sm:$0xff] %v3362_v7  ;;  %v4883_v26 = vmov 0.0|0.0   ;;  %4884 = vst [vmem:[#allocation87_spill] sm:$0xff] %v3372_v52 }
  0x79   :  { %963 = vmatprep.subr.bf16.mxu0 %v3334_v19  ;;  %1004 = vmatprep.subr.bf16.mxu1 %v3339_v39  ;;  %v143_v39 = vld [vmem:[#allocation5 + $0xf0] sm:$0xff]  ;;  %v3367_v19 = vcombine.high %v132_v0, %v136_v47  ;;  %v3378_v49 = vcombine.low %v132_v0, %v136_v47 }
  0x7a   :  { %v3376_v42 = vcombine.high %v139_v30, %v143_v39  ;;  %v3384_v62 = vcombine.low %v139_v30, %v143_v39  ;;  %v155_v47 = vld [vmem:[#allocation5 + $0x150] sm:$0xff] }
  0x7b   :  { %914 = vmatmul.mubr.bf16.vlgmr.msra.gmra.mrb[0].mxu0 %v3341_v55  ;;  %955 = vmatmul.mubr.bf16.vlgmr.msra.gmra.mrb[0].mxu1 %v3341_v55  ;;  %4882 = vst [vmem:[#allocation86_spill] sm:$0xff] %v3367_v19  ;;  %4886 = vst [vmem:[#allocation89_spill] sm:$0xff] %v3378_v49 }
  0x7c   :  { %964 = vmatpush1.bf16.msra.mxu0 %v3344_v12  ;;  %1005 = vmatpush1.bf16.msra.mxu1 %v3350_v56  ;;  %v140_v12 = vld [vmem:[#allocation5 + $0xd8] sm:$0xff]  ;;  %4885 = vst [vmem:[#allocation88_spill] sm:$0xff] %v3376_v42  ;;  %4888 = vst [vmem:[#allocation91_spill] sm:$0xff] %v3384_v62 }
  0x7d   :  { %965 = vmatprep.subr.bf16.mxu0 %v3348_v41  ;;  %1006 = vmatprep.subr.bf16.mxu1 %v3353_v22  ;;  %v151_v22 = vld [vmem:[#allocation5 + $0x130] sm:$0xff]  ;;  %v3381_v41 = vcombine.high %v140_v12, %v144_v58  ;;  %v148_v56 = vld [vmem:[#allocation5 + $0x118] sm:$0xff]  ;;  %v3390_v0 = vcombine.low %v140_v12, %v144_v58 }
  0x7e   :  { %995 = vmatprep.mubr.bf16.mxu0 %v4883_v26  ;;  %1036 = vmatprep.mubr.bf16.mxu1 %v4883_v26  ;;  %v152_v26 = vld [vmem:[#allocation5 + $0x138] sm:$0xff]  ;;  %v3388_v63 = vcombine.high %v147_v6, %v151_v22  ;;  %v3396_v39 = vcombine.low %v147_v6, %v151_v22  ;;  %v163_v12 = vld [vmem:[#allocation5 + $0x190] sm:$0xff] }
  0x7f   :  { %4887 = vst [vmem:[#allocation90_spill] sm:$0xff] %v3381_v41  ;;  %4890 = vst [vmem:[#allocation93_spill] sm:$0xff] %v3390_v0  ;;  %v3402_v58 = vcombine.low %v148_v56, %v152_v26 }
  0x80   :  { %966 = vmatpush1.bf16.msra.mxu0 %v3358_v25  ;;  %1007 = vmatpush1.bf16.msra.mxu1 %v3364_v13  ;;  %4889 = vst [vmem:[#allocation92_spill] sm:$0xff] %v3388_v63  ;;  %v156_v13 = vld [vmem:[#allocation5 + $0x158] sm:$0xff]  ;;  %4892 = vst [vmem:[#allocation95_spill] sm:$0xff] %v3396_v39 }
  0x81   :  { %967 = vmatprep.subr.bf16.mxu0 %v3362_v7  ;;  %1008 = vmatprep.subr.bf16.mxu1 %v3367_v19  ;;  %v159_v19 = vld [vmem:[#allocation5 + $0x170] sm:$0xff]  ;;  %v3393_v7 = vcombine.high %v148_v56, %v152_v26  ;;  %v160_v25 = vld [vmem:[#allocation5 + $0x178] sm:$0xff]  ;;  %4894 = vst [vmem:[#allocation97_spill] sm:$0xff] %v3402_v58 }
  0x82   :  { %v3400_v30 = vcombine.high %v155_v47, %v159_v19  ;;  %v3408_v22 = vcombine.low %v155_v47, %v159_v19  ;;  %v3414_v56 = vcombine.low %v156_v13, %v160_v25  ;;  %v171_v26 = vld [vmem:[#allocation5 + $0x1d0] sm:$0xff] }
  0x83   :  { %4891 = vst [vmem:[#allocation94_spill] sm:$0xff] %v3393_v7 }
  0x84   :  { %968 = vmatpush1.bf16.msra.mxu0 %v3372_v52  ;;  %1009 = vmatpush1.bf16.msra.mxu1 %v3378_v49  ;;  %4893 = vst [vmem:[#allocation96_spill] sm:$0xff] %v3400_v30  ;;  %v164_v49 = vld [vmem:[#allocation5 + $0x198] sm:$0xff]  ;;  %4896 = vst [vmem:[#allocation99_spill] sm:$0xff] %v3408_v22 }
  0x85   :  { %969 = vmatprep.subr.bf16.mxu0 %v3376_v42  ;;  %1010 = vmatprep.subr.bf16.mxu1 %v3381_v41  ;;  %v167_v41 = vld [vmem:[#allocation5 + $0x1b0] sm:$0xff]  ;;  %v3405_v42 = vcombine.high %v156_v13, %v160_v25  ;;  %v168_v52 = vld [vmem:[#allocation5 + $0x1b8] sm:$0xff]  ;;  %4898 = vst [vmem:[#allocation101_spill] sm:$0xff] %v3414_v56 }
  0x86   :  { %v3412_v6 = vcombine.high %v163_v12, %v167_v41  ;;  %v3420_v19 = vcombine.low %v163_v12, %v167_v41  ;;  %v3426_v25 = vcombine.low %v164_v49, %v168_v52  ;;  %v179_v13 = vld [vmem:[#allocation5 + $0x210] sm:$0xff] }
  0x87   :  { %4895 = vst [vmem:[#allocation98_spill] sm:$0xff] %v3405_v42 }
  0x88   :  { %970 = vmatpush1.bf16.msra.mxu0 %v3384_v62  ;;  %1011 = vmatpush1.bf16.msra.mxu1 %v3390_v0  ;;  %4897 = vst [vmem:[#allocation100_spill] sm:$0xff] %v3412_v6  ;;  %v172_v0 = vld [vmem:[#allocation5 + $0x1d8] sm:$0xff]  ;;  %4900 = vst [vmem:[#allocation103_spill] sm:$0xff] %v3420_v19 }
  0x89   :  { %971 = vmatprep.subr.bf16.mxu0 %v3388_v63  ;;  %1012 = vmatprep.subr.bf16.mxu1 %v3393_v7  ;;  %v175_v7 = vld [vmem:[#allocation5 + $0x1f0] sm:$0xff]  ;;  %v3417_v63 = vcombine.high %v164_v49, %v168_v52  ;;  %v176_v62 = vld [vmem:[#allocation5 + $0x1f8] sm:$0xff]  ;;  %4902 = vst [vmem:[#allocation105_spill] sm:$0xff] %v3426_v25 }
  0x8a   :  { %v3424_v47 = vcombine.high %v171_v26, %v175_v7  ;;  %v3432_v41 = vcombine.low %v171_v26, %v175_v7  ;;  %v3438_v52 = vcombine.low %v172_v0, %v176_v62  ;;  %v187_v49 = vld [vmem:[#allocation5 + $0x250] sm:$0xff] }
  0x8b   :  { %4899 = vst [vmem:[#allocation102_spill] sm:$0xff] %v3417_v63 }
  0x8c   :  { %972 = vmatpush1.bf16.msra.mxu0 %v3396_v39  ;;  %1013 = vmatpush1.bf16.msra.mxu1 %v3402_v58  ;;  %4901 = vst [vmem:[#allocation104_spill] sm:$0xff] %v3424_v47  ;;  %v180_v58 = vld [vmem:[#allocation5 + $0x218] sm:$0xff]  ;;  %4904 = vst [vmem:[#allocation107_spill] sm:$0xff] %v3432_v41 }
  0x8d   :  { %973 = vmatprep.subr.bf16.mxu0 %v3400_v30  ;;  %1014 = vmatprep.subr.bf16.mxu1 %v3405_v42  ;;  %v183_v42 = vld [vmem:[#allocation5 + $0x230] sm:$0xff]  ;;  %v3429_v30 = vcombine.high %v172_v0, %v176_v62  ;;  %v184_v39 = vld [vmem:[#allocation5 + $0x238] sm:$0xff]  ;;  %4906 = vst [vmem:[#allocation109_spill] sm:$0xff] %v3438_v52 }
  0x8e   :  { %v3436_v12 = vcombine.high %v179_v13, %v183_v42  ;;  %v3444_v7 = vcombine.low %v179_v13, %v183_v42  ;;  %v3450_v62 = vcombine.low %v180_v58, %v184_v39  ;;  %v195_v0 = vld [vmem:[#allocation5 + $0x290] sm:$0xff] }
  0x8f   :  { %4903 = vst [vmem:[#allocation106_spill] sm:$0xff] %v3429_v30 }
  0x90   :  { %974 = vmatpush1.bf16.msra.mxu0 %v3408_v22  ;;  %1015 = vmatpush1.bf16.msra.mxu1 %v3414_v56  ;;  %4905 = vst [vmem:[#allocation108_spill] sm:$0xff] %v3436_v12  ;;  %v188_v56 = vld [vmem:[#allocation5 + $0x258] sm:$0xff]  ;;  %4908 = vst [vmem:[#allocation111_spill] sm:$0xff] %v3444_v7 }
  0x91   :  { %975 = vmatprep.subr.bf16.mxu0 %v3412_v6  ;;  %1016 = vmatprep.subr.bf16.mxu1 %v3417_v63  ;;  %v191_v63 = vld [vmem:[#allocation5 + $0x270] sm:$0xff]  ;;  %v3441_v6 = vcombine.high %v180_v58, %v184_v39  ;;  %v192_v22 = vld [vmem:[#allocation5 + $0x278] sm:$0xff]  ;;  %4910 = vst [vmem:[#allocation113_spill] sm:$0xff] %v3450_v62 }
  0x92   :  { %v3448_v26 = vcombine.high %v187_v49, %v191_v63  ;;  %v3456_v42 = vcombine.low %v187_v49, %v191_v63  ;;  %v3462_v39 = vcombine.low %v188_v56, %v192_v22  ;;  %v203_v58 = vld [vmem:[#allocation5 + $0x2d0] sm:$0xff] }
  0x93   :  { %4907 = vst [vmem:[#allocation110_spill] sm:$0xff] %v3441_v6 }
  0x94   :  { %976 = vmatpush1.bf16.msra.mxu0 %v3420_v19  ;;  %1017 = vmatpush1.bf16.msra.mxu1 %v3426_v25  ;;  %4909 = vst [vmem:[#allocation112_spill] sm:$0xff] %v3448_v26  ;;  %v196_v25 = vld [vmem:[#allocation5 + $0x298] sm:$0xff]  ;;  %4912 = vst [vmem:[#allocation115_spill] sm:$0xff] %v3456_v42 }
  0x95   :  { %977 = vmatprep.subr.bf16.mxu0 %v3424_v47  ;;  %1018 = vmatprep.subr.bf16.mxu1 %v3429_v30  ;;  %v199_v30 = vld [vmem:[#allocation5 + $0x2b0] sm:$0xff]  ;;  %v3453_v47 = vcombine.high %v188_v56, %v192_v22  ;;  %v200_v19 = vld [vmem:[#allocation5 + $0x2b8] sm:$0xff]  ;;  %4914 = vst [vmem:[#allocation117_spill] sm:$0xff] %v3462_v39 }
  0x96   :  { %v3460_v13 = vcombine.high %v195_v0, %v199_v30  ;;  %v3468_v63 = vcombine.low %v195_v0, %v199_v30  ;;  %v3474_v22 = vcombine.low %v196_v25, %v200_v19  ;;  %v211_v56 = vld [vmem:[#allocation5 + $0x310] sm:$0xff] }
  0x97   :  { %4911 = vst [vmem:[#allocation114_spill] sm:$0xff] %v3453_v47 }
  0x98   :  { %978 = vmatpush1.bf16.msra.mxu0 %v3432_v41  ;;  %1019 = vmatpush1.bf16.msra.mxu1 %v3438_v52  ;;  %4913 = vst [vmem:[#allocation116_spill] sm:$0xff] %v3460_v13  ;;  %v204_v52 = vld [vmem:[#allocation5 + $0x2d8] sm:$0xff]  ;;  %4916 = vst [vmem:[#allocation119_spill] sm:$0xff] %v3468_v63 }
  0x99   :  { %979 = vmatprep.subr.bf16.mxu0 %v3436_v12  ;;  %1020 = vmatprep.subr.bf16.mxu1 %v3441_v6  ;;  %v207_v6 = vld [vmem:[#allocation5 + $0x2f0] sm:$0xff]  ;;  %v3465_v12 = vcombine.high %v196_v25, %v200_v19  ;;  %v208_v41 = vld [vmem:[#allocation5 + $0x2f8] sm:$0xff]  ;;  %4918 = vst [vmem:[#allocation121_spill] sm:$0xff] %v3474_v22 }
  0x9a   :  { %v3472_v49 = vcombine.high %v203_v58, %v207_v6  ;;  %v3480_v30 = vcombine.low %v203_v58, %v207_v6  ;;  %v3486_v19 = vcombine.low %v204_v52, %v208_v41  ;;  %v219_v25 = vld [vmem:[#allocation5 + $0x350] sm:$0xff] }
  0x9b   :  { %4915 = vst [vmem:[#allocation118_spill] sm:$0xff] %v3465_v12 }
  0x9c   :  { %980 = vmatpush1.bf16.msra.mxu0 %v3444_v7  ;;  %1021 = vmatpush1.bf16.msra.mxu1 %v3450_v62  ;;  %4917 = vst [vmem:[#allocation120_spill] sm:$0xff] %v3472_v49  ;;  %v212_v62 = vld [vmem:[#allocation5 + $0x318] sm:$0xff]  ;;  %4920 = vst [vmem:[#allocation123_spill] sm:$0xff] %v3480_v30 }
  0x9d   :  { %981 = vmatprep.subr.bf16.mxu0 %v3448_v26  ;;  %1022 = vmatprep.subr.bf16.mxu1 %v3453_v47  ;;  %v215_v47 = vld [vmem:[#allocation5 + $0x330] sm:$0xff]  ;;  %v3477_v26 = vcombine.high %v204_v52, %v208_v41  ;;  %v216_v7 = vld [vmem:[#allocation5 + $0x338] sm:$0xff]  ;;  %4922 = vst [vmem:[#allocation125_spill] sm:$0xff] %v3486_v19 }
  0x9e   :  { %v3484_v0 = vcombine.high %v211_v56, %v215_v47  ;;  %v3492_v6 = vcombine.low %v211_v56, %v215_v47  ;;  %v3498_v41 = vcombine.low %v212_v62, %v216_v7  ;;  %v227_v52 = vld [vmem:[#allocation5 + $0x390] sm:$0xff] }
  0x9f   :  { %4919 = vst [vmem:[#allocation122_spill] sm:$0xff] %v3477_v26 }
  0xa0   :  { %982 = vmatpush1.bf16.msra.mxu0 %v3456_v42  ;;  %1023 = vmatpush1.bf16.msra.mxu1 %v3462_v39  ;;  %4921 = vst [vmem:[#allocation124_spill] sm:$0xff] %v3484_v0  ;;  %v220_v39 = vld [vmem:[#allocation5 + $0x358] sm:$0xff]  ;;  %4924 = vst [vmem:[#allocation127_spill] sm:$0xff] %v3492_v6 }
  0xa1   :  { %983 = vmatprep.subr.bf16.mxu0 %v3460_v13  ;;  %1024 = vmatprep.subr.bf16.mxu1 %v3465_v12  ;;  %v223_v12 = vld [vmem:[#allocation5 + $0x370] sm:$0xff]  ;;  %v3489_v13 = vcombine.high %v212_v62, %v216_v7  ;;  %v224_v42 = vld [vmem:[#allocation5 + $0x378] sm:$0xff]  ;;  %4926 = vst [vmem:[#allocation129_spill] sm:$0xff] %v3498_v41 }
  0xa2   :  { %v3496_v58 = vcombine.high %v219_v25, %v223_v12  ;;  %v3504_v47 = vcombine.low %v219_v25, %v223_v12  ;;  %v3510_v7 = vcombine.low %v220_v39, %v224_v42  ;;  %v235_v62 = vld [vmem:[#allocation5 + $0x3d0] sm:$0xff] }
  0xa3   :  { %4923 = vst [vmem:[#allocation126_spill] sm:$0xff] %v3489_v13 }
  0xa4   :  { %984 = vmatpush1.bf16.msra.mxu0 %v3468_v63  ;;  %1025 = vmatpush1.bf16.msra.mxu1 %v3474_v22  ;;  %4925 = vst [vmem:[#allocation128_spill] sm:$0xff] %v3496_v58  ;;  %v228_v22 = vld [vmem:[#allocation5 + $0x398] sm:$0xff]  ;;  %4928 = vst [vmem:[#allocation131_spill] sm:$0xff] %v3504_v47 }
  0xa5   :  { %985 = vmatprep.subr.bf16.mxu0 %v3472_v49  ;;  %1026 = vmatprep.subr.bf16.mxu1 %v3477_v26  ;;  %v231_v26 = vld [vmem:[#allocation5 + $0x3b0] sm:$0xff]  ;;  %v3501_v49 = vcombine.high %v220_v39, %v224_v42  ;;  %v232_v63 = vld [vmem:[#allocation5 + $0x3b8] sm:$0xff]  ;;  %4930 = vst [vmem:[#allocation133_spill] sm:$0xff] %v3510_v7 }
  0xa6   :  { %v3508_v56 = vcombine.high %v227_v52, %v231_v26  ;;  %v3516_v12 = vcombine.low %v227_v52, %v231_v26  ;;  %v3522_v42 = vcombine.low %v228_v22, %v232_v63  ;;  %v4944_v52 = vld [vmem:[#allocation61_spill] sm:$0xff] }
  0xa7   :  { %4927 = vst [vmem:[#allocation130_spill] sm:$0xff] %v3501_v49 }
  0xa8   :  { %986 = vmatpush1.bf16.msra.mxu0 %v3480_v30  ;;  %1027 = vmatpush1.bf16.msra.mxu1 %v3486_v19  ;;  %4929 = vst [vmem:[#allocation132_spill] sm:$0xff] %v3508_v56  ;;  %v236_v19 = vld [vmem:[#allocation5 + $0x3d8] sm:$0xff]  ;;  %4932 = vst [vmem:[#allocation135_spill] sm:$0xff] %v3516_v12 }
  0xa9   :  { %987 = vmatprep.subr.bf16.mxu0 %v3484_v0  ;;  %1028 = vmatprep.subr.bf16.mxu1 %v3489_v13  ;;  %v239_v13 = vld [vmem:[#allocation5 + $0x3f0] sm:$0xff]  ;;  %v3513_v0 = vcombine.high %v228_v22, %v232_v63  ;;  %v240_v30 = vld [vmem:[#allocation5 + $0x3f8] sm:$0xff]  ;;  %4934 = vst [vmem:[#allocation137_spill] sm:$0xff] %v3522_v42  ;;  %v4940_v63 = vld [vmem:[#allocation56_spill] sm:$0xff] }
  0xaa   :  { %v3520_v25 = vcombine.high %v235_v62, %v239_v13  ;;  %v3525_v39 = vcombine.high %v236_v19, %v240_v30  ;;  %v3532_v26 = vcombine.low %v236_v19, %v240_v30  ;;  %v4941_v22 = vld [vmem:[#allocation55_spill] sm:$0xff]  ;;  %v4942_v30 = vld [vmem:[#allocation57_spill] sm:$0xff] }
  0xab   :  { %4931 = vst [vmem:[#allocation134_spill] sm:$0xff] %v3513_v0  ;;  %v4943_v19 = vld [vmem:[#allocation59_spill] sm:$0xff] }
  0xac   :  { %988 = vmatpush1.bf16.msra.mxu0 %v3492_v6  ;;  %1029 = vmatpush1.bf16.msra.mxu1 %v3498_v41  ;;  %4933 = vst [vmem:[#allocation136_spill] sm:$0xff] %v3520_v25  ;;  %4935 = vst [vmem:[#allocation138_spill] sm:$0xff] %v3525_v39 }
  0xad   :  { %989 = vmatprep.subr.bf16.mxu0 %v3496_v58  ;;  %1030 = vmatprep.subr.bf16.mxu1 %v3501_v49  ;;  %v3528_v49 = vcombine.low %v235_v62, %v239_v13  ;;  %4937 = vst [vmem:[#allocation140_spill] sm:$0xff] %v3532_v26  ;;  %v4939_v13 = vld [vmem:[#allocation54_spill] sm:$0xff]  ;;  %v4945_v62 = vld [vmem:[#allocation60_spill] sm:$0xff] }
  0xaf   :  { %4936 = vst [vmem:[#allocation139_spill] sm:$0xff] %v3528_v49 }
  0xb0   :  { %990 = vmatpush1.bf16.msra.mxu0 %v3504_v47  ;;  %1031 = vmatpush1.bf16.msra.mxu1 %v3510_v7 }
  0xb1   :  { %991 = vmatprep.subr.bf16.mxu0 %v3508_v56  ;;  %1032 = vmatprep.subr.bf16.mxu1 %v3513_v0 }
  0xb4   :  { %992 = vmatpush1.bf16.msra.mxu0 %v3516_v12  ;;  %1033 = vmatpush1.bf16.msra.mxu1 %v3522_v42 }
  0xb5   :  { %993 = vmatprep.subr.bf16.mxu0 %v3520_v25  ;;  %1034 = vmatprep.subr.bf16.mxu1 %v3525_v39 }
  0xb8   :  { %994 = vmatpush1.bf16.msra.mxu0 %v3528_v49  ;;  %1035 = vmatpush1.bf16.msra.mxu1 %v3532_v26 }
  0xb9   :  { %1096 = vmatprep.subr.bf16.mxu0 %v3144_v4  ;;  %1137 = vmatprep.subr.bf16.mxu1 %v3150_v10 }
  0xbb   :  { %996 = vmatmul.mubr.bf16.vlgmr.msra.gmra.mrb[4].mxu0 %v3341_v55  ;;  %1037 = vmatmul.mubr.bf16.vlgmr.msra.gmra.mrb[4].mxu1 %v3341_v55  ;;  %v4938_v55 = vld [vmem:[#allocation53_spill] sm:$0xff] }
  0xbc   :  { %1097 = vmatpush1.bf16.msra.mxu0 %v3146_v5  ;;  %1138 = vmatpush1.bf16.msra.mxu1 %v3152_v11 }
  0xbd   :  { %1098 = vmatprep.subr.bf16.mxu0 %v3148_v9  ;;  %1139 = vmatprep.subr.bf16.mxu1 %v3159_v17 }
  0xc0   :  { %1099 = vmatpush1.bf16.msra.mxu0 %v3157_v16  ;;  %1140 = vmatpush1.bf16.msra.mxu1 %v3165_v21 }
  0xc1   :  { %1100 = vmatprep.subr.bf16.mxu0 %v3163_v20  ;;  %1141 = vmatprep.subr.bf16.mxu1 %v3168_v24 }
  0xc4   :  { %1101 = vmatpush1.bf16.msra.mxu0 %v3171_v27  ;;  %1142 = vmatpush1.bf16.msra.mxu1 %v3177_v29 }
  0xc5   :  { %1102 = vmatprep.subr.bf16.mxu0 %v3175_v28  ;;  %1143 = vmatprep.subr.bf16.mxu1 %v3180_v32 }
  0xc8   :  { %1103 = vmatpush1.bf16.msra.mxu0 %v3183_v35  ;;  %1144 = vmatpush1.bf16.msra.mxu1 %v3189_v37 }
  0xc9   :  { %1104 = vmatprep.subr.bf16.mxu0 %v3187_v36  ;;  %1145 = vmatprep.subr.bf16.mxu1 %v3192_v40 }
  0xcc   :  { %1105 = vmatpush1.bf16.msra.mxu0 %v3195_v43  ;;  %1146 = vmatpush1.bf16.msra.mxu1 %v3201_v45 }
  0xcd   :  { %1106 = vmatprep.subr.bf16.mxu0 %v3199_v44  ;;  %1147 = vmatprep.subr.bf16.mxu1 %v3204_v48 }
  0xd0   :  { %1107 = vmatpush1.bf16.msra.mxu0 %v3207_v51  ;;  %1148 = vmatpush1.bf16.msra.mxu1 %v3213_v54 }
  0xd1   :  { %1108 = vmatprep.subr.bf16.mxu0 %v3211_v53  ;;  %1149 = vmatprep.subr.bf16.mxu1 %v3216_v59 }
  0xd4   :  { %1109 = vmatpush1.bf16.msra.mxu0 %v3219_v1  ;;  %1150 = vmatpush1.bf16.msra.mxu1 %v3225_v3 }
  0xd5   :  { %1110 = vmatprep.subr.bf16.mxu0 %v3223_v2  ;;  %1151 = vmatprep.subr.bf16.mxu1 %v3228_v8  ;;  %v1071_v2 = vld [vmem:[#allocation2 + $0x38] sm:$0xff] }
  0xd8   :  { %1111 = vmatpush1.bf16.msra.mxu0 %v3231_v14  ;;  %1152 = vmatpush1.bf16.msra.mxu1 %v3237_v18 }
  0xd9   :  { %1112 = vmatprep.subr.bf16.mxu0 %v3235_v15  ;;  %1153 = vmatprep.subr.bf16.mxu1 %v3240_v23 }
  0xdc   :  { %1113 = vmatpush1.bf16.msra.mxu0 %v3243_v31  ;;  %1154 = vmatpush1.bf16.msra.mxu1 %v3249_v38 }
  0xdd   :  { %1114 = vmatprep.subr.bf16.mxu0 %v3247_v34  ;;  %1155 = vmatprep.subr.bf16.mxu1 %v3252_v46 }
  0xe0   :  { %1115 = vmatpush1.bf16.msra.mxu0 %v3255_v57  ;;  %1156 = vmatpush1.bf16.msra.mxu1 %v3261_v61  ;;  %v4946_v57 = vld [vmem:[#allocation62_spill] sm:$0xff]  ;;  %v4947_v61 = vld [vmem:[#allocation63_spill] sm:$0xff] }
  0xe1   :  { %1116 = vmatprep.subr.bf16.mxu0 %v3259_v60  ;;  %1157 = vmatprep.subr.bf16.mxu1 %v4938_v55  ;;  %v4948_v60 = vld [vmem:[#allocation65_spill] sm:$0xff]  ;;  %v4949_v55 = vld [vmem:[#allocation64_spill] sm:$0xff] }
  0xe4   :  { %1117 = vmatpush1.bf16.msra.mxu0 %v4939_v13  ;;  %1158 = vmatpush1.bf16.msra.mxu1 %v4940_v63  ;;  %v4950_v13 = vld [vmem:[#allocation66_spill] sm:$0xff] }
  0xe5   :  { %1118 = vmatprep.subr.bf16.mxu0 %v4941_v22  ;;  %1159 = vmatprep.subr.bf16.mxu1 %v4942_v30  ;;  %v4951_v30 = vld [vmem:[#allocation68_spill] sm:$0xff] }
  0xe8   :  { %1119 = vmatpush1.bf16.msra.mxu0 %v4943_v19  ;;  %1160 = vmatpush1.bf16.msra.mxu1 %v4944_v52  ;;  %v4952_v19 = vld [vmem:[#allocation70_spill] sm:$0xff]  ;;  %v4953_v52 = vld [vmem:[#allocation71_spill] sm:$0xff] }
  0xe9   :  { %1120 = vmatprep.subr.bf16.mxu0 %v4945_v62  ;;  %1161 = vmatprep.subr.bf16.mxu1 %v4946_v57  ;;  %v4954_v62 = vld [vmem:[#allocation73_spill] sm:$0xff]  ;;  %v4955_v57 = vld [vmem:[#allocation72_spill] sm:$0xff] }
  0xec   :  { %1121 = vmatpush1.bf16.msra.mxu0 %v4947_v61  ;;  %1162 = vmatpush1.bf16.msra.mxu1 %v4948_v60  ;;  %v4956_v61 = vld [vmem:[#allocation74_spill] sm:$0xff]  ;;  %v4957_v60 = vld [vmem:[#allocation75_spill] sm:$0xff] }
  0xed   :  { %1122 = vmatprep.subr.bf16.mxu0 %v4949_v55  ;;  %1163 = vmatprep.subr.bf16.mxu1 %v4950_v13  ;;  %v4958_v55 = vld [vmem:[#allocation77_spill] sm:$0xff]  ;;  %v4959_v13 = vld [vmem:[#allocation76_spill] sm:$0xff] }
  0xf0   :  { %1123 = vmatpush1.bf16.msra.mxu0 %v3306_v33  ;;  %1164 = vmatpush1.bf16.msra.mxu1 %v3312_v50  ;;  %v4960_v33 = vld [vmem:[#allocation78_spill] sm:$0xff]  ;;  %v1068_v50 = vld [vmem:[#allocation2 + $0x20] sm:$0xff] }
  0xf1   :  { %1124 = vmatprep.subr.bf16.mxu0 %v4951_v30  ;;  %1165 = vmatprep.subr.bf16.mxu1 %v4952_v19  ;;  %v1069_v30 = vld [vmem:[#allocation2 + $0x28] sm:$0xff]  ;;  %v1070_v19 = vld [vmem:[#allocation2 + $0x30] sm:$0xff] }
  0xf4   :  { %1125 = vmatpush1.bf16.msra.mxu0 %v4953_v52  ;;  %1166 = vmatpush1.bf16.msra.mxu1 %v4954_v62 }
  0xf5   :  { %1126 = vmatprep.subr.bf16.mxu0 %v4955_v57  ;;  %1167 = vmatprep.subr.bf16.mxu1 %v4956_v61 }
  0xf8   :  { %1127 = vmatpush1.bf16.msra.mxu0 %v4957_v60  ;;  %1168 = vmatpush1.bf16.msra.mxu1 %v4958_v55 }
  0xf9   :  { %1178 = vmatprep.subr.bf16.mxu0 %v4959_v13  ;;  %1219 = vmatprep.subr.bf16.mxu1 %v4960_v33 }
 0x14e   :  { %v915_v22 = vpop.f32.mrb[0].mxu0  ;;  %v956_v46 = vpop.f32.mrb[0].mxu1 }
 0x14f   :  { %v1072_v63 = vadd.f32 %v1068_v50, %v915_v22  ;;  %v917_v52 = vpop.f32.mrb[1].mxu0  ;;  %v958_v57 = vpop.f32.mrb[1].mxu1  ;;  %v1074_v31 = vadd.f32 %v1070_v19, %v956_v46 }
 0x150   :  { %v1073_v62 = vadd.f32 %v1069_v30, %v917_v52  ;;  %v919_v34 = vpop.f32.mrb[2].mxu0  ;;  %v960_v60 = vpop.f32.mrb[2].mxu1  ;;  %v4961_v30 = vld [vmem:[#allocation58_spill] sm:$0xff] }
 0x151   :  { %v1076_v38 = vmul.f32 0.5, %v1072_v63  ;;  %v920_v61 = vpop.f32.mrb[3].mxu0  ;;  %v961_v55 = vpop.f32.mrb[3].mxu1 }
 0x152   :  { %v1080_v23 = vmul.f32 0.5, %v1073_v62  ;;  %v65_v61 = vlaneseq }
 0x153   :  { %2814 = vtanh.f32 %v1076_v38 }
 0x154   :  { %2816 = vtanh.f32 %v1080_v23  ;;  %v66_v46 = vshrl.u32 %v65_v61, 7  ;;  %v63_v23 = vld [vmem:[%s4520_s2] sm:$0xf] }
 0x155   :  { %2818 = vtanh.f32 %v1074_v31 }
 0x156   :  { %v67_v60 = vsub.s32 0, %v66_v46  ;;  %v71_v31 = vsub.s32 1, %v66_v46  ;;  %v75_v38 = vsub.s32 2, %v66_v46  ;;  %v79_v63 = vsub.s32 3, %v66_v46 }
 0x158   :  { %v3611_v55 = vrot.slane %v63_v23, %v67_v60 }
 0x15a   :  { %4962 = vst [vmem:[#allocation58_spill] sm:$0xff] %v3611_v55 }
 0x15d   :  { %v2815_v33 = vpop.eup %2814 }
 0x15e   :  { %v2817_v13 = vpop.eup %2816  ;;  %v1078_v15 = vmul.f32 0.5, %v2815_v33  ;;  %v3613_v33 = vrot.slane %v63_v23, %v71_v31 }
 0x15f   :  { %v2819_v18 = vpop.eup %2818  ;;  %v1082_v14 = vmul.f32 0.5, %v2817_v13 }
 0x160   :  { %v1079_v50 = vadd.f32 0.5, %v1078_v15  ;;  %4963 = vst [vmem:[#allocation141_spill] sm:$0xff] %v3613_v33  ;;  %v3615_v15 = vrot.slane %v63_v23, %v75_v38  ;;  %v3620_v38 = vrot.slane %v63_v23, %v79_v63 }
 0x161   :  { %v1083_v22 = vadd.f32 0.5, %v1082_v14 }
 0x162   :  { %v1090_v8 = vmul.f32 %v2819_v18, %v1079_v50  ;;  %4964 = vst [vmem:[#allocation142_spill] sm:$0xff] %v3615_v15  ;;  %4965 = vst [vmem:[#allocation143_spill] sm:$0xff] %v3620_v38 }
 0x163   :  { %v1089_v34 = vmul.f32 %v1083_v22, %v4961_v30 }
 0x165   :  { %v3606_v52 = vadd.f32 %v1090_v8, %v1089_v34 }
 0x18e   :  { %v997_v14 = vpop.f32.mrb[4].mxu0  ;;  %v1038_v13 = vpop.f32.mrb[4].mxu1 }
 0x18f   :  { %v1045_v18 = vadd.f32 %v997_v14, %v3611_v55  ;;  %v999_v8 = vpop.f32.mrb[5].mxu0  ;;  %v1040_v50 = vpop.f32.mrb[5].mxu1  ;;  %v1047_v34 = vadd.f32 %v1038_v13, %v3615_v15  ;;  %v1075_v14 = vadd.f32 %v1071_v2, %v958_v57 }
 0x190   :  { %v1046_v19 = vadd.f32 %v999_v8, %v3613_v33  ;;  %v1001_v62 = vpop.f32.mrb[6].mxu0  ;;  %v1042_v61 = vpop.f32.mrb[6].mxu1  ;;  %v1048_v46 = vadd.f32 %v1040_v50, %v3620_v38 }
 0x191   :  { %v1049_v22 = vmul.f32 0.5, %v1045_v18  ;;  %v1002_v30 = vpop.f32.mrb[7].mxu0  ;;  %v1043_v31 = vpop.f32.mrb[7].mxu1  ;;  %v1085_v55 = vmul.f32 0.5, %v1075_v14 }
 0x192   :  { %v1053_v60 = vmul.f32 0.5, %v1046_v19  ;;  %v1058_v8 = vmul.f32 0.5, %v1048_v46 }
 0x193   :  { %2820 = vtanh.f32 %v1049_v22 }
 0x194   :  { %2822 = vtanh.f32 %v1053_v60 }
 0x195   :  { %2824 = vtanh.f32 %v1047_v34 }
 0x196   :  { %2826 = vtanh.f32 %v1085_v55 }
 0x197   :  { %2828 = vtanh.f32 %v1058_v8 }
 0x198   :  { %2830 = vtanh.f32 %v3606_v52 }
 0x19d   :  { %v2821_v62 = vpop.eup %2820 }
 0x19e   :  { %v2823_v33 = vpop.eup %2822  ;;  %v1051_v18 = vmul.f32 0.5, %v2821_v62 }
 0x19f   :  { %v2825_v30 = vpop.eup %2824  ;;  %v1055_v13 = vmul.f32 0.5, %v2823_v33 }
 0x1a0   :  { %v1052_v19 = vadd.f32 0.5, %v1051_v18  ;;  %v2827_v2 = vpop.eup %2826  ;;  %v4966_v18 = vld [vmem:[#allocation79_spill] sm:$0xff] }
 0x1a1   :  { %v1056_v61 = vadd.f32 0.5, %v1055_v13  ;;  %v2829_v57 = vpop.eup %2828  ;;  %v1087_v63 = vmul.f32 0.5, %v2827_v2  ;;  %v4968_v13 = vld [vmem:[#allocation80_spill] sm:$0xff]  ;;  %v4973_v2 = vld [vmem:[#allocation86_spill] sm:$0xff] }
 0x1a2   :  { %v1063_v31 = vmul.f32 %v2825_v30, %v1052_v19  ;;  %v1060_v50 = vmul.f32 0.5, %v2829_v57  ;;  %v2831_v34 = vpop.eup %2830  ;;  %v4967_v30 = vld [vmem:[#allocation81_spill] sm:$0xff]  ;;  %v4969_v19 = vld [vmem:[#allocation82_spill] sm:$0xff]  ;;  %v4974_v57 = vld [vmem:[#allocation87_spill] sm:$0xff] }
 0x1a3   :  { %v1062_v22 = vmul.f32 0.0, %v1056_v61  ;;  %v1088_v55 = vadd.f32 0.5, %v1087_v63  ;;  %v4970_v61 = vld [vmem:[#allocation83_spill] sm:$0xff]  ;;  %v4975_v63 = vld [vmem:[#allocation89_spill] sm:$0xff] }
 0x1a4   :  { %v1061_v60 = vadd.f32 0.5, %v1060_v50  ;;  %v4976_v50 = vld [vmem:[#allocation88_spill] sm:$0xff] }
 0x1a5   :  { %v3624_v23 = vadd.f32 %v1063_v31, %v1062_v22  ;;  %v1093_v33 = vmul.f32 %v2831_v34, %v1088_v55  ;;  %v4971_v31 = vld [vmem:[#allocation85_spill] sm:$0xff]  ;;  %v4972_v22 = vld [vmem:[#allocation84_spill] sm:$0xff]  ;;  %v4977_v34 = vld [vmem:[#allocation90_spill] sm:$0xff] }
 0x1a6   :  { %v4978_v55 = vld [vmem:[#allocation91_spill] sm:$0xff] }
 0x1a7   :  { %2832 = vtanh.f32 %v3624_v23  ;;  %v3627_v62 = vpack.c.bf16 %v1093_v33, %v1093_v33  ;;  %v4981_v33 = vld [vmem:[#allocation94_spill] sm:$0xff] }
 0x1b1   :  { %v2833_v14 = vpop.eup %2832 }
 0x1b2   :  { %v1066_v46 = vmul.f32 %v2833_v14, %v1061_v60  ;;  %v4979_v60 = vld [vmem:[#allocation93_spill] sm:$0xff]  ;;  %v4980_v14 = vld [vmem:[#allocation92_spill] sm:$0xff] }
 0x1b4   :  { %v1095_v8 = vpack.c.bf16 %v1066_v46, %v1066_v46  ;;  %v4982_v46 = vld [vmem:[#allocation95_spill] sm:$0xff] }
 0x1b6   :  { %1128 = vmatprep.mubr.bf16.mxu0 %v1095_v8  ;;  %1169 = vmatprep.mubr.bf16.mxu1 %v1095_v8 }
 0x1b7   :  { %1129 = vmatmul.mubr.bf16.vlgmr.msra.gmra.mrb[8].mxu0 %v3627_v62  ;;  %1170 = vmatmul.mubr.bf16.vlgmr.msra.gmra.mrb[8].mxu1 %v3627_v62 }
 0x1b8   :  { %1179 = vmatpush1.bf16.msra.mxu0 %v4966_v18  ;;  %1220 = vmatpush1.bf16.msra.mxu1 %v4967_v30 }
 0x1b9   :  { %1210 = vmatprep.mubr.bf16.mxu0 %v1095_v8  ;;  %1251 = vmatprep.mubr.bf16.mxu1 %v1095_v8  ;;  %v4983_v8 = vld [vmem:[#allocation97_spill] sm:$0xff] }
 0x1ba   :  { %1180 = vmatprep.subr.bf16.mxu0 %v4968_v13  ;;  %1221 = vmatprep.subr.bf16.mxu1 %v4969_v19 }
 0x1bc   :  { %1181 = vmatpush1.bf16.msra.mxu0 %v4970_v61  ;;  %1222 = vmatpush1.bf16.msra.mxu1 %v4971_v31 }
 0x1bd   :  { %1182 = vmatprep.subr.bf16.mxu0 %v4972_v22  ;;  %1223 = vmatprep.subr.bf16.mxu1 %v4973_v2  ;;  %v4984_v2 = vld [vmem:[#allocation96_spill] sm:$0xff] }
 0x1c0   :  { %1183 = vmatpush1.bf16.msra.mxu0 %v4974_v57  ;;  %1224 = vmatpush1.bf16.msra.mxu1 %v4975_v63  ;;  %v4985_v57 = vld [vmem:[#allocation98_spill] sm:$0xff]  ;;  %v4986_v63 = vld [vmem:[#allocation99_spill] sm:$0xff] }
 0x1c1   :  { %1184 = vmatprep.subr.bf16.mxu0 %v4976_v50  ;;  %1225 = vmatprep.subr.bf16.mxu1 %v4977_v34  ;;  %v4987_v50 = vld [vmem:[#allocation101_spill] sm:$0xff]  ;;  %v4988_v34 = vld [vmem:[#allocation100_spill] sm:$0xff] }
 0x1c4   :  { %1185 = vmatpush1.bf16.msra.mxu0 %v4978_v55  ;;  %1226 = vmatpush1.bf16.msra.mxu1 %v4979_v60  ;;  %v4989_v55 = vld [vmem:[#allocation102_spill] sm:$0xff]  ;;  %v4990_v60 = vld [vmem:[#allocation103_spill] sm:$0xff] }
 0x1c5   :  { %1186 = vmatprep.subr.bf16.mxu0 %v4980_v14  ;;  %1227 = vmatprep.subr.bf16.mxu1 %v4981_v33  ;;  %v4991_v14 = vld [vmem:[#allocation105_spill] sm:$0xff]  ;;  %v4992_v33 = vld [vmem:[#allocation104_spill] sm:$0xff] }
 0x1c8   :  { %1187 = vmatpush1.bf16.msra.mxu0 %v4982_v46  ;;  %1228 = vmatpush1.bf16.msra.mxu1 %v4983_v8  ;;  %v4993_v46 = vld [vmem:[#allocation106_spill] sm:$0xff]  ;;  %v4994_v8 = vld [vmem:[#allocation107_spill] sm:$0xff] }
 0x1c9   :  { %1188 = vmatprep.subr.bf16.mxu0 %v4984_v2  ;;  %1229 = vmatprep.subr.bf16.mxu1 %v4985_v57  ;;  %v4995_v2 = vld [vmem:[#allocation109_spill] sm:$0xff]  ;;  %v4996_v57 = vld [vmem:[#allocation108_spill] sm:$0xff] }
 0x1cc   :  { %1189 = vmatpush1.bf16.msra.mxu0 %v4986_v63  ;;  %1230 = vmatpush1.bf16.msra.mxu1 %v4987_v50  ;;  %v4997_v63 = vld [vmem:[#allocation110_spill] sm:$0xff]  ;;  %v4998_v50 = vld [vmem:[#allocation111_spill] sm:$0xff] }
 0x1cd   :  { %1190 = vmatprep.subr.bf16.mxu0 %v4988_v34  ;;  %1231 = vmatprep.subr.bf16.mxu1 %v4989_v55  ;;  %v4999_v34 = vld [vmem:[#allocation113_spill] sm:$0xff]  ;;  %v5000_v55 = vld [vmem:[#allocation112_spill] sm:$0xff] }
 0x1d0   :  { %1191 = vmatpush1.bf16.msra.mxu0 %v4990_v60  ;;  %1232 = vmatpush1.bf16.msra.mxu1 %v4991_v14  ;;  %v5001_v60 = vld [vmem:[#allocation114_spill] sm:$0xff]  ;;  %v5002_v14 = vld [vmem:[#allocation115_spill] sm:$0xff] }
 0x1d1   :  { %1192 = vmatprep.subr.bf16.mxu0 %v4992_v33  ;;  %1233 = vmatprep.subr.bf16.mxu1 %v4993_v46  ;;  %v5003_v33 = vld [vmem:[#allocation117_spill] sm:$0xff]  ;;  %v5004_v46 = vld [vmem:[#allocation116_spill] sm:$0xff] }
 0x1d4   :  { %1193 = vmatpush1.bf16.msra.mxu0 %v4994_v8  ;;  %1234 = vmatpush1.bf16.msra.mxu1 %v4995_v2  ;;  %v5005_v8 = vld [vmem:[#allocation118_spill] sm:$0xff]  ;;  %v5006_v2 = vld [vmem:[#allocation119_spill] sm:$0xff] }
 0x1d5   :  { %1194 = vmatprep.subr.bf16.mxu0 %v4996_v57  ;;  %1235 = vmatprep.subr.bf16.mxu1 %v4997_v63  ;;  %v5007_v57 = vld [vmem:[#allocation121_spill] sm:$0xff]  ;;  %v5008_v63 = vld [vmem:[#allocation120_spill] sm:$0xff] }
 0x1d8   :  { %1195 = vmatpush1.bf16.msra.mxu0 %v4998_v50  ;;  %1236 = vmatpush1.bf16.msra.mxu1 %v4999_v34  ;;  %v5009_v50 = vld [vmem:[#allocation122_spill] sm:$0xff]  ;;  %v5010_v34 = vld [vmem:[#allocation123_spill] sm:$0xff] }
 0x1d9   :  { %1196 = vmatprep.subr.bf16.mxu0 %v5000_v55  ;;  %1237 = vmatprep.subr.bf16.mxu1 %v5001_v60  ;;  %v5011_v55 = vld [vmem:[#allocation125_spill] sm:$0xff]  ;;  %v5012_v60 = vld [vmem:[#allocation124_spill] sm:$0xff] }
 0x1dc   :  { %1197 = vmatpush1.bf16.msra.mxu0 %v5002_v14  ;;  %1238 = vmatpush1.bf16.msra.mxu1 %v5003_v33  ;;  %v5013_v14 = vld [vmem:[#allocation126_spill] sm:$0xff] }
 0x1dd   :  { %1198 = vmatprep.subr.bf16.mxu0 %v5004_v46  ;;  %1239 = vmatprep.subr.bf16.mxu1 %v5005_v8 }
 0x1e0   :  { %1199 = vmatpush1.bf16.msra.mxu0 %v5006_v2  ;;  %1240 = vmatpush1.bf16.msra.mxu1 %v5007_v57  ;;  %v5014_v2 = vld [vmem:[#allocation130_spill] sm:$0xff] }
 0x1e1   :  { %1200 = vmatprep.subr.bf16.mxu0 %v5008_v63  ;;  %1241 = vmatprep.subr.bf16.mxu1 %v5009_v50 }
 0x1e4   :  { %1201 = vmatpush1.bf16.msra.mxu0 %v5010_v34  ;;  %1242 = vmatpush1.bf16.msra.mxu1 %v5011_v55 }
 0x1e5   :  { %1202 = vmatprep.subr.bf16.mxu0 %v5012_v60  ;;  %1243 = vmatprep.subr.bf16.mxu1 %v5013_v14 }
 0x1e8   :  { %1203 = vmatpush1.bf16.msra.mxu0 %v3492_v6  ;;  %1244 = vmatpush1.bf16.msra.mxu1 %v3498_v41 }
 0x1e9   :  { %1204 = vmatprep.subr.bf16.mxu0 %v3496_v58  ;;  %1245 = vmatprep.subr.bf16.mxu1 %v5014_v2 }
 0x1ec   :  { %1205 = vmatpush1.bf16.msra.mxu0 %v3504_v47  ;;  %1246 = vmatpush1.bf16.msra.mxu1 %v3510_v7 }
 0x1ed   :  { %1206 = vmatprep.subr.bf16.mxu0 %v3508_v56  ;;  %1247 = vmatprep.subr.bf16.mxu1 %v3513_v0 }
 0x1f0   :  { %1207 = vmatpush1.bf16.msra.mxu0 %v3516_v12  ;;  %1248 = vmatpush1.bf16.msra.mxu1 %v3522_v42 }
 0x1f1   :  { %1208 = vmatprep.subr.bf16.mxu0 %v3520_v25  ;;  %1249 = vmatprep.subr.bf16.mxu1 %v3525_v39 }
 0x1f4   :  { %1209 = vmatpush1.bf16.msra.mxu0 %v3528_v49  ;;  %1250 = vmatpush1.bf16.msra.mxu1 %v3532_v26 }
 0x1f5   :  { %1311 = vmatprep.subr.bf16.mxu0 %v3144_v4  ;;  %1352 = vmatprep.subr.bf16.mxu1 %v3150_v10 }
 0x1f7   :  { %1211 = vmatmul.mubr.bf16.vlgmr.msra.gmra.mrb[12].mxu0 %v3627_v62  ;;  %1252 = vmatmul.mubr.bf16.vlgmr.msra.gmra.mrb[12].mxu1 %v3627_v62  ;;  %v5015_v62 = vld [vmem:[#allocation39_spill] sm:$0xff] }
 0x1f8   :  { %1312 = vmatpush1.bf16.msra.mxu0 %v3146_v5  ;;  %1353 = vmatpush1.bf16.msra.mxu1 %v3152_v11 }
 0x1f9   :  { %1313 = vmatprep.subr.bf16.mxu0 %v3148_v9  ;;  %1354 = vmatprep.subr.bf16.mxu1 %v3159_v17 }
 0x1fc   :  { %1314 = vmatpush1.bf16.msra.mxu0 %v3157_v16  ;;  %1355 = vmatpush1.bf16.msra.mxu1 %v3165_v21 }
 0x1fd   :  { %1315 = vmatprep.subr.bf16.mxu0 %v3163_v20  ;;  %1356 = vmatprep.subr.bf16.mxu1 %v3168_v24 }
 0x200   :  { %1316 = vmatpush1.bf16.msra.mxu0 %v3171_v27  ;;  %1357 = vmatpush1.bf16.msra.mxu1 %v3177_v29 }
 0x201   :  { %1317 = vmatprep.subr.bf16.mxu0 %v3175_v28  ;;  %1358 = vmatprep.subr.bf16.mxu1 %v3180_v32 }
 0x204   :  { %1318 = vmatpush1.bf16.msra.mxu0 %v3183_v35  ;;  %1359 = vmatpush1.bf16.msra.mxu1 %v3189_v37 }
 0x205   :  { %1319 = vmatprep.subr.bf16.mxu0 %v3187_v36  ;;  %1360 = vmatprep.subr.bf16.mxu1 %v3192_v40 }
 0x208   :  { %1320 = vmatpush1.bf16.msra.mxu0 %v3195_v43  ;;  %1361 = vmatpush1.bf16.msra.mxu1 %v3201_v45  ;;  %v5016_v43 = vld [vmem:[#allocation41_spill] sm:$0xff]  ;;  %v5017_v45 = vld [vmem:[#allocation42_spill] sm:$0xff] }
 0x209   :  { %1321 = vmatprep.subr.bf16.mxu0 %v3199_v44  ;;  %1362 = vmatprep.subr.bf16.mxu1 %v3204_v48  ;;  %v5018_v44 = vld [vmem:[#allocation44_spill] sm:$0xff]  ;;  %v5019_v48 = vld [vmem:[#allocation43_spill] sm:$0xff] }
 0x20c   :  { %1322 = vmatpush1.bf16.msra.mxu0 %v3207_v51  ;;  %1363 = vmatpush1.bf16.msra.mxu1 %v3213_v54  ;;  %v5020_v51 = vld [vmem:[#allocation45_spill] sm:$0xff]  ;;  %v5021_v54 = vld [vmem:[#allocation46_spill] sm:$0xff] }
 0x20d   :  { %1323 = vmatprep.subr.bf16.mxu0 %v3211_v53  ;;  %1364 = vmatprep.subr.bf16.mxu1 %v3216_v59  ;;  %v5022_v53 = vld [vmem:[#allocation48_spill] sm:$0xff]  ;;  %v5023_v59 = vld [vmem:[#allocation47_spill] sm:$0xff] }
 0x210   :  { %1324 = vmatpush1.bf16.msra.mxu0 %v3219_v1  ;;  %1365 = vmatpush1.bf16.msra.mxu1 %v3225_v3  ;;  %v5024_v1 = vld [vmem:[#allocation49_spill] sm:$0xff]  ;;  %v5025_v3 = vld [vmem:[#allocation50_spill] sm:$0xff] }
 0x211   :  { %1325 = vmatprep.subr.bf16.mxu0 %v5015_v62  ;;  %1366 = vmatprep.subr.bf16.mxu1 %v5016_v43  ;;  %v5026_v62 = vld [vmem:[#allocation52_spill] sm:$0xff]  ;;  %v5027_v43 = vld [vmem:[#allocation51_spill] sm:$0xff] }
 0x214   :  { %1326 = vmatpush1.bf16.msra.mxu0 %v5017_v45  ;;  %1367 = vmatpush1.bf16.msra.mxu1 %v5018_v44  ;;  %v5028_v45 = vld [vmem:[#allocation53_spill] sm:$0xff]  ;;  %v5029_v44 = vld [vmem:[#allocation54_spill] sm:$0xff] }
 0x215   :  { %1327 = vmatprep.subr.bf16.mxu0 %v5019_v48  ;;  %1368 = vmatprep.subr.bf16.mxu1 %v5020_v51  ;;  %v5030_v48 = vld [vmem:[#allocation56_spill] sm:$0xff]  ;;  %v5031_v51 = vld [vmem:[#allocation55_spill] sm:$0xff] }
 0x218   :  { %1328 = vmatpush1.bf16.msra.mxu0 %v5021_v54  ;;  %1369 = vmatpush1.bf16.msra.mxu1 %v5022_v53  ;;  %v5032_v54 = vld [vmem:[#allocation57_spill] sm:$0xff]  ;;  %v5033_v53 = vld [vmem:[#allocation59_spill] sm:$0xff] }
 0x219   :  { %1329 = vmatprep.subr.bf16.mxu0 %v5023_v59  ;;  %1370 = vmatprep.subr.bf16.mxu1 %v5024_v1  ;;  %v5034_v59 = vld [vmem:[#allocation61_spill] sm:$0xff]  ;;  %v5035_v1 = vld [vmem:[#allocation60_spill] sm:$0xff] }
 0x21c   :  { %1330 = vmatpush1.bf16.msra.mxu0 %v5025_v3  ;;  %1371 = vmatpush1.bf16.msra.mxu1 %v5026_v62  ;;  %v5036_v3 = vld [vmem:[#allocation62_spill] sm:$0xff]  ;;  %v5037_v62 = vld [vmem:[#allocation63_spill] sm:$0xff] }
 0x21d   :  { %1331 = vmatprep.subr.bf16.mxu0 %v5027_v43  ;;  %1372 = vmatprep.subr.bf16.mxu1 %v5028_v45  ;;  %v5038_v43 = vld [vmem:[#allocation65_spill] sm:$0xff]  ;;  %v5039_v45 = vld [vmem:[#allocation64_spill] sm:$0xff] }
 0x220   :  { %1332 = vmatpush1.bf16.msra.mxu0 %v5029_v44  ;;  %1373 = vmatpush1.bf16.msra.mxu1 %v5030_v48  ;;  %v5040_v44 = vld [vmem:[#allocation66_spill] sm:$0xff]  ;;  %v5041_v48 = vld [vmem:[#allocation67_spill] sm:$0xff] }
 0x221   :  { %1333 = vmatprep.subr.bf16.mxu0 %v5031_v51  ;;  %1374 = vmatprep.subr.bf16.mxu1 %v5032_v54  ;;  %v5042_v51 = vld [vmem:[#allocation69_spill] sm:$0xff]  ;;  %v5043_v54 = vld [vmem:[#allocation68_spill] sm:$0xff] }
 0x224   :  { %1334 = vmatpush1.bf16.msra.mxu0 %v5033_v53  ;;  %1375 = vmatpush1.bf16.msra.mxu1 %v5034_v59  ;;  %v5044_v53 = vld [vmem:[#allocation70_spill] sm:$0xff]  ;;  %v5045_v59 = vld [vmem:[#allocation71_spill] sm:$0xff] }
 0x225   :  { %1335 = vmatprep.subr.bf16.mxu0 %v5035_v1  ;;  %1376 = vmatprep.subr.bf16.mxu1 %v5036_v3  ;;  %v5046_v1 = vld [vmem:[#allocation73_spill] sm:$0xff]  ;;  %v5047_v3 = vld [vmem:[#allocation72_spill] sm:$0xff] }
 0x228   :  { %1336 = vmatpush1.bf16.msra.mxu0 %v5037_v62  ;;  %1377 = vmatpush1.bf16.msra.mxu1 %v5038_v43  ;;  %v5048_v62 = vld [vmem:[#allocation74_spill] sm:$0xff]  ;;  %v5049_v43 = vld [vmem:[#allocation75_spill] sm:$0xff] }
 0x229   :  { %1337 = vmatprep.subr.bf16.mxu0 %v5039_v45  ;;  %1378 = vmatprep.subr.bf16.mxu1 %v5040_v44  ;;  %v5050_v45 = vld [vmem:[#allocation77_spill] sm:$0xff]  ;;  %v5051_v44 = vld [vmem:[#allocation76_spill] sm:$0xff] }
 0x22c   :  { %1338 = vmatpush1.bf16.msra.mxu0 %v5041_v48  ;;  %1379 = vmatpush1.bf16.msra.mxu1 %v5042_v51  ;;  %v5052_v48 = vld [vmem:[#allocation78_spill] sm:$0xff]  ;;  %v1283_v51 = vld [vmem:[#allocation2 + $0x40] sm:$0xff] }
 0x22d   :  { %1339 = vmatprep.subr.bf16.mxu0 %v5043_v54  ;;  %1380 = vmatprep.subr.bf16.mxu1 %v5044_v53  ;;  %v1284_v54 = vld [vmem:[#allocation2 + $0x48] sm:$0xff] }
 0x230   :  { %1340 = vmatpush1.bf16.msra.mxu0 %v5045_v59  ;;  %1381 = vmatpush1.bf16.msra.mxu1 %v5046_v1  ;;  %v1285_v1 = vld [vmem:[#allocation2 + $0x50] sm:$0xff] }
 0x231   :  { %1341 = vmatprep.subr.bf16.mxu0 %v5047_v3  ;;  %1382 = vmatprep.subr.bf16.mxu1 %v5048_v62 }
 0x234   :  { %1342 = vmatpush1.bf16.msra.mxu0 %v5049_v43  ;;  %1383 = vmatpush1.bf16.msra.mxu1 %v5050_v45 }
 0x235   :  { %1393 = vmatprep.subr.bf16.mxu0 %v5051_v44  ;;  %1434 = vmatprep.subr.bf16.mxu1 %v5052_v48 }
 0x28a   :  { %v1130_v40 = vpop.f32.mrb[8].mxu0  ;;  %v1171_v53 = vpop.f32.mrb[8].mxu1 }
 0x28b   :  { %v1287_v36 = vadd.f32 %v1283_v51, %v1130_v40  ;;  %v1132_v59 = vpop.f32.mrb[9].mxu0  ;;  %v1173_v37 = vpop.f32.mrb[9].mxu1  ;;  %v1289_v45 = vadd.f32 %v1285_v1, %v1171_v53 }
 0x28c   :  { %v1288_v35 = vadd.f32 %v1284_v54, %v1132_v59  ;;  %v1134_v3 = vpop.f32.mrb[10].mxu0  ;;  %v1175_v32 = vpop.f32.mrb[10].mxu1 }
 0x28d   :  { %v1291_v62 = vmul.f32 0.5, %v1287_v36  ;;  %v1135_v28 = vpop.f32.mrb[11].mxu0  ;;  %v1176_v43 = vpop.f32.mrb[11].mxu1  ;;  %v5053_v36 = vld [vmem:[#allocation58_spill] sm:$0xff] }
 0x28e   :  { %v1295_v29 = vmul.f32 0.5, %v1288_v35 }
 0x28f   :  { %2834 = vtanh.f32 %v1291_v62 }
 0x290   :  { %2836 = vtanh.f32 %v1295_v29  ;;  %v5054_v29 = vld [vmem:[#allocation141_spill] sm:$0xff] }
 0x291   :  { %2838 = vtanh.f32 %v1289_v45 }
 0x299   :  { %v2835_v48 = vpop.eup %2834 }
 0x29a   :  { %v2837_v44 = vpop.eup %2836  ;;  %v1293_v27 = vmul.f32 0.5, %v2835_v48 }
 0x29b   :  { %v1297_v24 = vmul.f32 0.5, %v2837_v44  ;;  %v2839_v40 = vpop.eup %2838 }
 0x29c   :  { %v1294_v20 = vadd.f32 0.5, %v1293_v27 }
 0x29d   :  { %v1298_v51 = vadd.f32 0.5, %v1297_v24  ;;  %v1286_v24 = vld [vmem:[#allocation2 + $0x58] sm:$0xff] }
 0x29e   :  { %v1305_v21 = vmul.f32 %v2839_v40, %v1294_v20 }
 0x29f   :  { %v1304_v54 = vmul.f32 %v1298_v51, %v3606_v52 }
 0x2a1   :  { %v3762_v59 = vadd.f32 %v1305_v21, %v1304_v54  ;;  %v1290_v21 = vadd.f32 %v1286_v24, %v1173_v37 }
 0x2a3   :  { %v1300_v40 = vmul.f32 0.5, %v1290_v21 }
 0x2ca   :  { %v1212_v32 = vpop.f32.mrb[12].mxu0  ;;  %v1253_v28 = vpop.f32.mrb[12].mxu1 }
 0x2cb   :  { %v1260_v35 = vadd.f32 %v1212_v32, %v5053_v36  ;;  %v1214_v43 = vpop.f32.mrb[13].mxu0  ;;  %v1255_v53 = vpop.f32.mrb[13].mxu1  ;;  %v1262_v20 = vadd.f32 %v1253_v28, %v3615_v15 }
 0x2cc   :  { %v1261_v45 = vadd.f32 %v1214_v43, %v5054_v29  ;;  %v1216_v1 = vpop.f32.mrb[14].mxu0  ;;  %v1257_v3 = vpop.f32.mrb[14].mxu1  ;;  %v1263_v52 = vadd.f32 %v1255_v53, %v3620_v38 }
 0x2cd   :  { %v1264_v48 = vmul.f32 0.5, %v1260_v35  ;;  %v1217_v44 = vpop.f32.mrb[15].mxu0  ;;  %v1258_v27 = vpop.f32.mrb[15].mxu1 }
 0x2ce   :  { %v1268_v62 = vmul.f32 0.5, %v1261_v45  ;;  %v1273_v51 = vmul.f32 0.5, %v1263_v52 }
 0x2cf   :  { %2840 = vtanh.f32 %v1264_v48 }
 0x2d0   :  { %2842 = vtanh.f32 %v1268_v62 }
 0x2d1   :  { %2844 = vtanh.f32 %v1262_v20 }
 0x2d2   :  { %2846 = vtanh.f32 %v1300_v40 }
 0x2d3   :  { %2848 = vtanh.f32 %v1273_v51 }
 0x2d4   :  { %2850 = vtanh.f32 %v3762_v59 }
 0x2d9   :  { %v2841_v54 = vpop.eup %2840 }
 0x2da   :  { %v2843_v32 = vpop.eup %2842  ;;  %v1266_v43 = vmul.f32 0.5, %v2841_v54 }
 0x2db   :  { %v1270_v1 = vmul.f32 0.5, %v2843_v32  ;;  %v2845_v3 = vpop.eup %2844 }
 0x2dc   :  { %v1267_v35 = vadd.f32 0.5, %v1266_v43  ;;  %v2847_v28 = vpop.eup %2846  ;;  %v5056_v43 = vld [vmem:[#allocation87_spill] sm:$0xff] }
 0x2dd   :  { %v1271_v45 = vadd.f32 0.5, %v1270_v1  ;;  %v2849_v53 = vpop.eup %2848  ;;  %v1302_v27 = vmul.f32 0.5, %v2847_v28  ;;  %v5057_v1 = vld [vmem:[#allocation89_spill] sm:$0xff]  ;;  %v5063_v28 = vld [vmem:[#allocation94_spill] sm:$0xff] }
 0x2de   :  { %v1278_v44 = vmul.f32 %v2845_v3, %v1267_v35  ;;  %v1275_v62 = vmul.f32 0.5, %v2849_v53  ;;  %v2851_v24 = vpop.eup %2850  ;;  %v5058_v35 = vld [vmem:[#allocation88_spill] sm:$0xff]  ;;  %v5059_v3 = vld [vmem:[#allocation90_spill] sm:$0xff]  ;;  %v5064_v53 = vld [vmem:[#allocation95_spill] sm:$0xff] }
 0x2df   :  { %v1277_v48 = vmul.f32 %v1271_v45, %v3624_v23  ;;  %v1303_v20 = vadd.f32 0.5, %v1302_v27  ;;  %v5055_v23 = vld [vmem:[#allocation86_spill] sm:$0xff]  ;;  %v5060_v45 = vld [vmem:[#allocation91_spill] sm:$0xff]  ;;  %v5065_v27 = vld [vmem:[#allocation97_spill] sm:$0xff] }
 0x2e0   :  { %v1276_v21 = vadd.f32 0.5, %v1275_v62  ;;  %v5066_v62 = vld [vmem:[#allocation96_spill] sm:$0xff] }
 0x2e1   :  { %v3770_v37 = vadd.f32 %v1278_v44, %v1277_v48  ;;  %v1308_v40 = vmul.f32 %v2851_v24, %v1303_v20  ;;  %v5061_v44 = vld [vmem:[#allocation93_spill] sm:$0xff]  ;;  %v5062_v48 = vld [vmem:[#allocation92_spill] sm:$0xff]  ;;  %v5067_v24 = vld [vmem:[#allocation98_spill] sm:$0xff] }
 0x2e2   :  { %v5068_v20 = vld [vmem:[#allocation99_spill] sm:$0xff] }
 0x2e3   :  { %2852 = vtanh.f32 %v3770_v37  ;;  %v3773_v32 = vpack.c.bf16 %v1308_v40, %v1308_v40  ;;  %v5071_v40 = vld [vmem:[#allocation102_spill] sm:$0xff] }
 0x2ed   :  { %v2853_v52 = vpop.eup %2852 }
 0x2ee   :  { %v1281_v51 = vmul.f32 %v2853_v52, %v1276_v21  ;;  %v5069_v21 = vld [vmem:[#allocation101_spill] sm:$0xff]  ;;  %v5070_v52 = vld [vmem:[#allocation100_spill] sm:$0xff] }
 0x2f0   :  { %v1310_v54 = vpack.c.bf16 %v1281_v51, %v1281_v51  ;;  %v5072_v51 = vld [vmem:[#allocation103_spill] sm:$0xff] }
 0x2f2   :  { %1343 = vmatprep.mubr.bf16.mxu0 %v1310_v54  ;;  %1384 = vmatprep.mubr.bf16.mxu1 %v1310_v54 }
 0x2f3   :  { %1344 = vmatmul.mubr.bf16.vlgmr.msra.gmra.mrb[16].mxu0 %v3773_v32  ;;  %1385 = vmatmul.mubr.bf16.vlgmr.msra.gmra.mrb[16].mxu1 %v3773_v32 }
 0x2f4   :  { %1394 = vmatpush1.bf16.msra.mxu0 %v4966_v18  ;;  %1435 = vmatpush1.bf16.msra.mxu1 %v4967_v30 }
 0x2f5   :  { %1425 = vmatprep.mubr.bf16.mxu0 %v1310_v54  ;;  %1466 = vmatprep.mubr.bf16.mxu1 %v1310_v54  ;;  %v5073_v54 = vld [vmem:[#allocation105_spill] sm:$0xff] }
 0x2f6   :  { %1395 = vmatprep.subr.bf16.mxu0 %v4968_v13  ;;  %1436 = vmatprep.subr.bf16.mxu1 %v4969_v19 }
 0x2f8   :  { %1396 = vmatpush1.bf16.msra.mxu0 %v4970_v61  ;;  %1437 = vmatpush1.bf16.msra.mxu1 %v4971_v31 }
 0x2f9   :  { %1397 = vmatprep.subr.bf16.mxu0 %v4972_v22  ;;  %1438 = vmatprep.subr.bf16.mxu1 %v5055_v23 }
 0x2fc   :  { %1398 = vmatpush1.bf16.msra.mxu0 %v5056_v43  ;;  %1439 = vmatpush1.bf16.msra.mxu1 %v5057_v1 }
 0x2fd   :  { %1399 = vmatprep.subr.bf16.mxu0 %v5058_v35  ;;  %1440 = vmatprep.subr.bf16.mxu1 %v5059_v3 }
 0x300   :  { %1400 = vmatpush1.bf16.msra.mxu0 %v5060_v45  ;;  %1441 = vmatpush1.bf16.msra.mxu1 %v5061_v44 }
 0x301   :  { %1401 = vmatprep.subr.bf16.mxu0 %v5062_v48  ;;  %1442 = vmatprep.subr.bf16.mxu1 %v5063_v28  ;;  %v5074_v28 = vld [vmem:[#allocation104_spill] sm:$0xff] }
 0x304   :  { %1402 = vmatpush1.bf16.msra.mxu0 %v5064_v53  ;;  %1443 = vmatpush1.bf16.msra.mxu1 %v5065_v27  ;;  %v5075_v53 = vld [vmem:[#allocation106_spill] sm:$0xff]  ;;  %v5076_v27 = vld [vmem:[#allocation107_spill] sm:$0xff] }
 0x305   :  { %1403 = vmatprep.subr.bf16.mxu0 %v5066_v62  ;;  %1444 = vmatprep.subr.bf16.mxu1 %v5067_v24  ;;  %v5077_v62 = vld [vmem:[#allocation109_spill] sm:$0xff]  ;;  %v5078_v24 = vld [vmem:[#allocation108_spill] sm:$0xff] }
 0x308   :  { %1404 = vmatpush1.bf16.msra.mxu0 %v5068_v20  ;;  %1445 = vmatpush1.bf16.msra.mxu1 %v5069_v21  ;;  %v5079_v20 = vld [vmem:[#allocation110_spill] sm:$0xff]  ;;  %v5080_v21 = vld [vmem:[#allocation111_spill] sm:$0xff] }
 0x309   :  { %1405 = vmatprep.subr.bf16.mxu0 %v5070_v52  ;;  %1446 = vmatprep.subr.bf16.mxu1 %v5071_v40  ;;  %v5081_v52 = vld [vmem:[#allocation113_spill] sm:$0xff]  ;;  %v5082_v40 = vld [vmem:[#allocation112_spill] sm:$0xff] }
 0x30c   :  { %1406 = vmatpush1.bf16.msra.mxu0 %v5072_v51  ;;  %1447 = vmatpush1.bf16.msra.mxu1 %v5073_v54  ;;  %v5083_v51 = vld [vmem:[#allocation114_spill] sm:$0xff]  ;;  %v5084_v54 = vld [vmem:[#allocation115_spill] sm:$0xff] }
 0x30d   :  { %1407 = vmatprep.subr.bf16.mxu0 %v5074_v28  ;;  %1448 = vmatprep.subr.bf16.mxu1 %v5075_v53 }
 0x310   :  { %1408 = vmatpush1.bf16.msra.mxu0 %v5076_v27  ;;  %1449 = vmatpush1.bf16.msra.mxu1 %v5077_v62  ;;  %v5085_v62 = vld [vmem:[#allocation119_spill] sm:$0xff] }
 0x311   :  { %1409 = vmatprep.subr.bf16.mxu0 %v5078_v24  ;;  %1450 = vmatprep.subr.bf16.mxu1 %v5079_v20 }
 0x314   :  { %1410 = vmatpush1.bf16.msra.mxu0 %v5080_v21  ;;  %1451 = vmatpush1.bf16.msra.mxu1 %v5081_v52 }
 0x315   :  { %1411 = vmatprep.subr.bf16.mxu0 %v5082_v40  ;;  %1452 = vmatprep.subr.bf16.mxu1 %v5083_v51 }
 0x318   :  { %1412 = vmatpush1.bf16.msra.mxu0 %v5084_v54  ;;  %1453 = vmatpush1.bf16.msra.mxu1 %v5003_v33 }
 0x319   :  { %1413 = vmatprep.subr.bf16.mxu0 %v5004_v46  ;;  %1454 = vmatprep.subr.bf16.mxu1 %v5005_v8 }
 0x31c   :  { %1414 = vmatpush1.bf16.msra.mxu0 %v5085_v62  ;;  %1455 = vmatpush1.bf16.msra.mxu1 %v5007_v57 }
 0x31d   :  { %1415 = vmatprep.subr.bf16.mxu0 %v5008_v63  ;;  %1456 = vmatprep.subr.bf16.mxu1 %v5009_v50 }
 0x320   :  { %1416 = vmatpush1.bf16.msra.mxu0 %v5010_v34  ;;  %1457 = vmatpush1.bf16.msra.mxu1 %v5011_v55 }
 0x321   :  { %1417 = vmatprep.subr.bf16.mxu0 %v5012_v60  ;;  %1458 = vmatprep.subr.bf16.mxu1 %v5013_v14 }
 0x324   :  { %1418 = vmatpush1.bf16.msra.mxu0 %v3492_v6  ;;  %1459 = vmatpush1.bf16.msra.mxu1 %v3498_v41 }
 0x325   :  { %1419 = vmatprep.subr.bf16.mxu0 %v3496_v58  ;;  %1460 = vmatprep.subr.bf16.mxu1 %v5014_v2 }
 0x328   :  { %1420 = vmatpush1.bf16.msra.mxu0 %v3504_v47  ;;  %1461 = vmatpush1.bf16.msra.mxu1 %v3510_v7 }
 0x329   :  { %1421 = vmatprep.subr.bf16.mxu0 %v3508_v56  ;;  %1462 = vmatprep.subr.bf16.mxu1 %v3513_v0 }
 0x32c   :  { %1422 = vmatpush1.bf16.msra.mxu0 %v3516_v12  ;;  %1463 = vmatpush1.bf16.msra.mxu1 %v3522_v42 }
 0x32d   :  { %1423 = vmatprep.subr.bf16.mxu0 %v3520_v25  ;;  %1464 = vmatprep.subr.bf16.mxu1 %v3525_v39  ;;  %v5090_v39 = vld [vmem:[#allocation24_spill] sm:$0xff] }
 0x330   :  { %1424 = vmatpush1.bf16.msra.mxu0 %v3528_v49  ;;  %1465 = vmatpush1.bf16.msra.mxu1 %v3532_v26  ;;  %v5086_v49 = vld [vmem:[#allocation20_spill] sm:$0xff]  ;;  %v5087_v26 = vld [vmem:[#allocation19_spill] sm:$0xff] }
 0x331   :  { %1526 = vmatprep.subr.bf16.mxu0 %v3144_v4  ;;  %1567 = vmatprep.subr.bf16.mxu1 %v3150_v10  ;;  %v5088_v4 = vld [vmem:[#allocation21_spill] sm:$0xff]  ;;  %v5089_v10 = vld [vmem:[#allocation22_spill] sm:$0xff] }
 0x333   :  { %1426 = vmatmul.mubr.bf16.vlgmr.msra.gmra.mrb[20].mxu0 %v3773_v32  ;;  %1467 = vmatmul.mubr.bf16.vlgmr.msra.gmra.mrb[20].mxu1 %v3773_v32  ;;  %v5091_v32 = vld [vmem:[#allocation23_spill] sm:$0xff] }
 0x334   :  { %1527 = vmatpush1.bf16.msra.mxu0 %v3146_v5  ;;  %1568 = vmatpush1.bf16.msra.mxu1 %v3152_v11  ;;  %v5092_v5 = vld [vmem:[#allocation25_spill] sm:$0xff]  ;;  %v5093_v11 = vld [vmem:[#allocation26_spill] sm:$0xff] }
 0x335   :  { %1528 = vmatprep.subr.bf16.mxu0 %v3148_v9  ;;  %1569 = vmatprep.subr.bf16.mxu1 %v3159_v17  ;;  %v5094_v9 = vld [vmem:[#allocation28_spill] sm:$0xff]  ;;  %v5095_v17 = vld [vmem:[#allocation27_spill] sm:$0xff] }
 0x338   :  { %1529 = vmatpush1.bf16.msra.mxu0 %v3157_v16  ;;  %1570 = vmatpush1.bf16.msra.mxu1 %v5086_v49  ;;  %v5096_v16 = vld [vmem:[#allocation29_spill] sm:$0xff]  ;;  %v5097_v49 = vld [vmem:[#allocation30_spill] sm:$0xff] }
 0x339   :  { %1530 = vmatprep.subr.bf16.mxu0 %v5087_v26  ;;  %1571 = vmatprep.subr.bf16.mxu1 %v5088_v4  ;;  %v5098_v26 = vld [vmem:[#allocation32_spill] sm:$0xff]  ;;  %v5099_v4 = vld [vmem:[#allocation31_spill] sm:$0xff] }
 0x33c   :  { %1531 = vmatpush1.bf16.msra.mxu0 %v5089_v10  ;;  %1572 = vmatpush1.bf16.msra.mxu1 %v5090_v39  ;;  %v5100_v10 = vld [vmem:[#allocation33_spill] sm:$0xff]  ;;  %v5101_v39 = vld [vmem:[#allocation34_spill] sm:$0xff] }
 0x33d   :  { %1532 = vmatprep.subr.bf16.mxu0 %v5091_v32  ;;  %1573 = vmatprep.subr.bf16.mxu1 %v5092_v5  ;;  %v5102_v32 = vld [vmem:[#allocation36_spill] sm:$0xff]  ;;  %v5103_v5 = vld [vmem:[#allocation35_spill] sm:$0xff] }
 0x340   :  { %1533 = vmatpush1.bf16.msra.mxu0 %v5093_v11  ;;  %1574 = vmatpush1.bf16.msra.mxu1 %v5094_v9  ;;  %v5104_v11 = vld [vmem:[#allocation37_spill] sm:$0xff]  ;;  %v5105_v9 = vld [vmem:[#allocation38_spill] sm:$0xff] }
 0x341   :  { %1534 = vmatprep.subr.bf16.mxu0 %v5095_v17  ;;  %1575 = vmatprep.subr.bf16.mxu1 %v5096_v16  ;;  %v5106_v17 = vld [vmem:[#allocation40_spill] sm:$0xff]  ;;  %v5107_v16 = vld [vmem:[#allocation39_spill] sm:$0xff] }
 0x344   :  { %1535 = vmatpush1.bf16.msra.mxu0 %v5097_v49  ;;  %1576 = vmatpush1.bf16.msra.mxu1 %v5098_v26  ;;  %v5108_v49 = vld [vmem:[#allocation41_spill] sm:$0xff]  ;;  %v5109_v26 = vld [vmem:[#allocation42_spill] sm:$0xff] }
 0x345   :  { %1536 = vmatprep.subr.bf16.mxu0 %v5099_v4  ;;  %1577 = vmatprep.subr.bf16.mxu1 %v5100_v10  ;;  %v5110_v4 = vld [vmem:[#allocation44_spill] sm:$0xff]  ;;  %v5111_v10 = vld [vmem:[#allocation43_spill] sm:$0xff] }
 0x348   :  { %1537 = vmatpush1.bf16.msra.mxu0 %v5101_v39  ;;  %1578 = vmatpush1.bf16.msra.mxu1 %v5102_v32  ;;  %v5112_v39 = vld [vmem:[#allocation45_spill] sm:$0xff]  ;;  %v5113_v32 = vld [vmem:[#allocation46_spill] sm:$0xff] }
 0x349   :  { %1538 = vmatprep.subr.bf16.mxu0 %v5103_v5  ;;  %1579 = vmatprep.subr.bf16.mxu1 %v5104_v11  ;;  %v5114_v5 = vld [vmem:[#allocation48_spill] sm:$0xff]  ;;  %v5115_v11 = vld [vmem:[#allocation47_spill] sm:$0xff] }
 0x34c   :  { %1539 = vmatpush1.bf16.msra.mxu0 %v5105_v9  ;;  %1580 = vmatpush1.bf16.msra.mxu1 %v5106_v17  ;;  %v5116_v9 = vld [vmem:[#allocation49_spill] sm:$0xff]  ;;  %v5117_v17 = vld [vmem:[#allocation50_spill] sm:$0xff] }
 0x34d   :  { %1540 = vmatprep.subr.bf16.mxu0 %v5107_v16  ;;  %1581 = vmatprep.subr.bf16.mxu1 %v5108_v49  ;;  %v5118_v16 = vld [vmem:[#allocation52_spill] sm:$0xff]  ;;  %v5119_v49 = vld [vmem:[#allocation51_spill] sm:$0xff] }
 0x350   :  { %1541 = vmatpush1.bf16.msra.mxu0 %v5109_v26  ;;  %1582 = vmatpush1.bf16.msra.mxu1 %v5110_v4  ;;  %v5120_v26 = vld [vmem:[#allocation53_spill] sm:$0xff]  ;;  %v5121_v4 = vld [vmem:[#allocation54_spill] sm:$0xff] }
 0x351   :  { %1542 = vmatprep.subr.bf16.mxu0 %v5111_v10  ;;  %1583 = vmatprep.subr.bf16.mxu1 %v5112_v39  ;;  %v5122_v10 = vld [vmem:[#allocation56_spill] sm:$0xff]  ;;  %v5123_v39 = vld [vmem:[#allocation55_spill] sm:$0xff] }
 0x354   :  { %1543 = vmatpush1.bf16.msra.mxu0 %v5113_v32  ;;  %1584 = vmatpush1.bf16.msra.mxu1 %v5114_v5  ;;  %v5124_v32 = vld [vmem:[#allocation57_spill] sm:$0xff]  ;;  %v5125_v5 = vld [vmem:[#allocation59_spill] sm:$0xff] }
 0x355   :  { %1544 = vmatprep.subr.bf16.mxu0 %v5115_v11  ;;  %1585 = vmatprep.subr.bf16.mxu1 %v5116_v9  ;;  %v5126_v11 = vld [vmem:[#allocation61_spill] sm:$0xff]  ;;  %v5127_v9 = vld [vmem:[#allocation60_spill] sm:$0xff] }
 0x358   :  { %1545 = vmatpush1.bf16.msra.mxu0 %v5117_v17  ;;  %1586 = vmatpush1.bf16.msra.mxu1 %v5118_v16  ;;  %v5128_v17 = vld [vmem:[#allocation62_spill] sm:$0xff]  ;;  %v5129_v16 = vld [vmem:[#allocation63_spill] sm:$0xff] }
 0x359   :  { %1546 = vmatprep.subr.bf16.mxu0 %v5119_v49  ;;  %1587 = vmatprep.subr.bf16.mxu1 %v5120_v26  ;;  %v5130_v49 = vld [vmem:[#allocation65_spill] sm:$0xff]  ;;  %v5131_v26 = vld [vmem:[#allocation64_spill] sm:$0xff] }
 0x35c   :  { %1547 = vmatpush1.bf16.msra.mxu0 %v5121_v4  ;;  %1588 = vmatpush1.bf16.msra.mxu1 %v5122_v10  ;;  %v5132_v4 = vld [vmem:[#allocation66_spill] sm:$0xff]  ;;  %v5133_v10 = vld [vmem:[#allocation67_spill] sm:$0xff] }
 0x35d   :  { %1548 = vmatprep.subr.bf16.mxu0 %v5123_v39  ;;  %1589 = vmatprep.subr.bf16.mxu1 %v5124_v32  ;;  %v5134_v39 = vld [vmem:[#allocation69_spill] sm:$0xff]  ;;  %v5135_v32 = vld [vmem:[#allocation68_spill] sm:$0xff] }
 0x360   :  { %1549 = vmatpush1.bf16.msra.mxu0 %v5125_v5  ;;  %1590 = vmatpush1.bf16.msra.mxu1 %v5126_v11  ;;  %v5136_v5 = vld [vmem:[#allocation70_spill] sm:$0xff]  ;;  %v5137_v11 = vld [vmem:[#allocation71_spill] sm:$0xff] }
 0x361   :  { %1550 = vmatprep.subr.bf16.mxu0 %v5127_v9  ;;  %1591 = vmatprep.subr.bf16.mxu1 %v5128_v17  ;;  %v5138_v9 = vld [vmem:[#allocation73_spill] sm:$0xff]  ;;  %v5139_v17 = vld [vmem:[#allocation72_spill] sm:$0xff] }
 0x364   :  { %1551 = vmatpush1.bf16.msra.mxu0 %v5129_v16  ;;  %1592 = vmatpush1.bf16.msra.mxu1 %v5130_v49  ;;  %v5140_v16 = vld [vmem:[#allocation74_spill] sm:$0xff]  ;;  %v5141_v49 = vld [vmem:[#allocation75_spill] sm:$0xff] }
 0x365   :  { %1552 = vmatprep.subr.bf16.mxu0 %v5131_v26  ;;  %1593 = vmatprep.subr.bf16.mxu1 %v5132_v4  ;;  %v5142_v26 = vld [vmem:[#allocation77_spill] sm:$0xff]  ;;  %v5143_v4 = vld [vmem:[#allocation76_spill] sm:$0xff] }
 0x368   :  { %1553 = vmatpush1.bf16.msra.mxu0 %v5133_v10  ;;  %1594 = vmatpush1.bf16.msra.mxu1 %v5134_v39  ;;  %v5144_v10 = vld [vmem:[#allocation78_spill] sm:$0xff]  ;;  %v1498_v39 = vld [vmem:[#allocation2 + $0x60] sm:$0xff] }
 0x369   :  { %1554 = vmatprep.subr.bf16.mxu0 %v5135_v32  ;;  %1595 = vmatprep.subr.bf16.mxu1 %v5136_v5  ;;  %v1499_v32 = vld [vmem:[#allocation2 + $0x68] sm:$0xff] }
 0x36c   :  { %1555 = vmatpush1.bf16.msra.mxu0 %v5137_v11  ;;  %1596 = vmatpush1.bf16.msra.mxu1 %v5138_v9  ;;  %v1500_v9 = vld [vmem:[#allocation2 + $0x70] sm:$0xff] }
 0x36d   :  { %1556 = vmatprep.subr.bf16.mxu0 %v5139_v17  ;;  %1597 = vmatprep.subr.bf16.mxu1 %v5140_v16 }
 0x370   :  { %1557 = vmatpush1.bf16.msra.mxu0 %v5141_v49  ;;  %1598 = vmatpush1.bf16.msra.mxu1 %v5142_v26 }
 0x371   :  { %1608 = vmatprep.subr.bf16.mxu0 %v5143_v4  ;;  %1649 = vmatprep.subr.bf16.mxu1 %v5144_v10 }
 0x3c6   :  { %v1345_v25 = vpop.f32.mrb[16].mxu0  ;;  %v1386_v5 = vpop.f32.mrb[16].mxu1 }
 0x3c7   :  { %v1502_v42 = vadd.f32 %v1498_v39, %v1345_v25  ;;  %v1347_v11 = vpop.f32.mrb[17].mxu0  ;;  %v1388_v12 = vpop.f32.mrb[17].mxu1  ;;  %v1504_v26 = vadd.f32 %v1500_v9, %v1386_v5 }
 0x3c8   :  { %v1503_v0 = vadd.f32 %v1499_v32, %v1347_v11  ;;  %v1349_v17 = vpop.f32.mrb[18].mxu0  ;;  %v1390_v56 = vpop.f32.mrb[18].mxu1 }
 0x3c9   :  { %v1506_v16 = vmul.f32 0.5, %v1502_v42  ;;  %v1350_v7 = vpop.f32.mrb[19].mxu0  ;;  %v1391_v49 = vpop.f32.mrb[19].mxu1 }
 0x3ca   :  { %v1510_v47 = vmul.f32 0.5, %v1503_v0 }
 0x3cb   :  { %2854 = vtanh.f32 %v1506_v16 }
 0x3cc   :  { %2856 = vtanh.f32 %v1510_v47 }
 0x3cd   :  { %2858 = vtanh.f32 %v1504_v26 }
 0x3d5   :  { %v2855_v10 = vpop.eup %2854 }
 0x3d6   :  { %v2857_v4 = vpop.eup %2856  ;;  %v1508_v2 = vmul.f32 0.5, %v2855_v10 }
 0x3d7   :  { %v1512_v58 = vmul.f32 0.5, %v2857_v4  ;;  %v2859_v25 = vpop.eup %2858 }
 0x3d8   :  { %v1509_v41 = vadd.f32 0.5, %v1508_v2 }
 0x3d9   :  { %v1513_v39 = vadd.f32 0.5, %v1512_v58  ;;  %v1501_v58 = vld [vmem:[#allocation2 + $0x78] sm:$0xff] }
 0x3da   :  { %v1520_v6 = vmul.f32 %v2859_v25, %v1509_v41 }
 0x3db   :  { %v1519_v11 = vmul.f32 %v1513_v39, %v3762_v59 }
 0x3dd   :  { %v3908_v17 = vadd.f32 %v1520_v6, %v1519_v11  ;;  %v1505_v6 = vadd.f32 %v1501_v58, %v1388_v12 }
 0x3df   :  { %v1515_v59 = vmul.f32 0.5, %v1505_v6 }
 0x406   :  { %v1427_v56 = vpop.f32.mrb[20].mxu0  ;;  %v1468_v7 = vpop.f32.mrb[20].mxu1 }
 0x407   :  { %v1475_v49 = vadd.f32 %v1427_v56, %v5053_v36  ;;  %v1429_v16 = vpop.f32.mrb[21].mxu0  ;;  %v1470_v5 = vpop.f32.mrb[21].mxu1  ;;  %v1477_v41 = vadd.f32 %v1468_v7, %v3615_v15 }
 0x408   :  { %v1476_v9 = vadd.f32 %v1429_v16, %v5054_v29  ;;  %v1431_v0 = vpop.f32.mrb[22].mxu0  ;;  %v1472_v47 = vpop.f32.mrb[22].mxu1  ;;  %v1478_v2 = vadd.f32 %v1470_v5, %v3620_v38 }
 0x409   :  { %v1479_v10 = vmul.f32 0.5, %v1475_v49  ;;  %v1432_v4 = vpop.f32.mrb[23].mxu0  ;;  %v1473_v42 = vpop.f32.mrb[23].mxu1 }
 0x40a   :  { %v1483_v26 = vmul.f32 0.5, %v1476_v9  ;;  %v1488_v32 = vmul.f32 0.5, %v1478_v2 }
 0x40b   :  { %2860 = vtanh.f32 %v1479_v10 }
 0x40c   :  { %2862 = vtanh.f32 %v1483_v26 }
 0x40d   :  { %2864 = vtanh.f32 %v1477_v41 }
 0x40e   :  { %2866 = vtanh.f32 %v1515_v59 }
 0x40f   :  { %2868 = vtanh.f32 %v1488_v32 }
 0x410   :  { %2870 = vtanh.f32 %v3908_v17 }
 0x415   :  { %v2861_v25 = vpop.eup %2860 }
 0x416   :  { %v2863_v39 = vpop.eup %2862  ;;  %v1481_v11 = vmul.f32 0.5, %v2861_v25  ;;  %v5146_v25 = vld [vmem:[#allocation95_spill] sm:$0xff] }
 0x417   :  { %v1485_v56 = vmul.f32 0.5, %v2863_v39  ;;  %v2865_v16 = vpop.eup %2864  ;;  %v5147_v39 = vld [vmem:[#allocation97_spill] sm:$0xff] }
 0x418   :  { %v1482_v49 = vadd.f32 0.5, %v1481_v11  ;;  %v2867_v7 = vpop.eup %2866  ;;  %v5148_v11 = vld [vmem:[#allocation96_spill] sm:$0xff] }
 0x419   :  { %v1486_v9 = vadd.f32 0.5, %v1485_v56  ;;  %v2869_v5 = vpop.eup %2868  ;;  %v1517_v10 = vmul.f32 0.5, %v2867_v7  ;;  %v5149_v56 = vld [vmem:[#allocation98_spill] sm:$0xff]  ;;  %v5155_v7 = vld [vmem:[#allocation105_spill] sm:$0xff] }
 0x41a   :  { %v1493_v0 = vmul.f32 %v2865_v16, %v1482_v49  ;;  %v1490_v4 = vmul.f32 0.5, %v2869_v5  ;;  %v2871_v42 = vpop.eup %2870  ;;  %v5150_v49 = vld [vmem:[#allocation99_spill] sm:$0xff]  ;;  %v5151_v16 = vld [vmem:[#allocation101_spill] sm:$0xff] }
 0x41b   :  { %v1492_v47 = vmul.f32 %v1486_v9, %v3770_v37  ;;  %v1518_v26 = vadd.f32 0.5, %v1517_v10  ;;  %v5145_v37 = vld [vmem:[#allocation94_spill] sm:$0xff]  ;;  %v5152_v9 = vld [vmem:[#allocation100_spill] sm:$0xff]  ;;  %v5156_v5 = vld [vmem:[#allocation109_spill] sm:$0xff] }
 0x41c   :  { %v1491_v58 = vadd.f32 0.5, %v1490_v4  ;;  %v5157_v10 = vld [vmem:[#allocation127_spill] sm:$0xff]  ;;  %v5158_v4 = vld [vmem:[#allocation129_spill] sm:$0xff] }
 0x41d   :  { %v3916_v12 = vadd.f32 %v1493_v0, %v1492_v47  ;;  %v1523_v6 = vmul.f32 %v2871_v42, %v1518_v26  ;;  %v5153_v0 = vld [vmem:[#allocation102_spill] sm:$0xff]  ;;  %v5154_v47 = vld [vmem:[#allocation103_spill] sm:$0xff]  ;;  %v5159_v42 = vld [vmem:[#allocation128_spill] sm:$0xff] }
 0x41e   :  { %v5160_v26 = vld [vmem:[#allocation130_spill] sm:$0xff] }
 0x41f   :  { %2872 = vtanh.f32 %v3916_v12  ;;  %v3919_v32 = vpack.c.bf16 %v1523_v6, %v1523_v6  ;;  %v5163_v6 = vld [vmem:[#allocation132_spill] sm:$0xff] }
 0x429   :  { %v2873_v41 = vpop.eup %2872 }
 0x42a   :  { %v1496_v2 = vmul.f32 %v2873_v41, %v1491_v58  ;;  %v5161_v58 = vld [vmem:[#allocation131_spill] sm:$0xff]  ;;  %v5162_v41 = vld [vmem:[#allocation133_spill] sm:$0xff] }
 0x42c   :  { %v1525_v59 = vpack.c.bf16 %v1496_v2, %v1496_v2  ;;  %v5164_v2 = vld [vmem:[#allocation134_spill] sm:$0xff] }
 0x42e   :  { %1558 = vmatprep.mubr.bf16.mxu0 %v1525_v59  ;;  %1599 = vmatprep.mubr.bf16.mxu1 %v1525_v59 }
 0x42f   :  { %1559 = vmatmul.mubr.bf16.vlgmr.msra.gmra.mrb[24].mxu0 %v3919_v32  ;;  %1600 = vmatmul.mubr.bf16.vlgmr.msra.gmra.mrb[24].mxu1 %v3919_v32 }
 0x430   :  { %1609 = vmatpush1.bf16.msra.mxu0 %v4966_v18  ;;  %1650 = vmatpush1.bf16.msra.mxu1 %v4967_v30 }
 0x431   :  { %1640 = vmatprep.mubr.bf16.mxu0 %v1525_v59  ;;  %1681 = vmatprep.mubr.bf16.mxu1 %v1525_v59  ;;  %v5165_v59 = vld [vmem:[#allocation135_spill] sm:$0xff] }
 0x432   :  { %1610 = vmatprep.subr.bf16.mxu0 %v4968_v13  ;;  %1651 = vmatprep.subr.bf16.mxu1 %v4969_v19 }
 0x434   :  { %1611 = vmatpush1.bf16.msra.mxu0 %v4970_v61  ;;  %1652 = vmatpush1.bf16.msra.mxu1 %v4971_v31 }
 0x435   :  { %1612 = vmatprep.subr.bf16.mxu0 %v4972_v22  ;;  %1653 = vmatprep.subr.bf16.mxu1 %v5055_v23 }
 0x438   :  { %1613 = vmatpush1.bf16.msra.mxu0 %v5056_v43  ;;  %1654 = vmatpush1.bf16.msra.mxu1 %v5057_v1 }
 0x439   :  { %1614 = vmatprep.subr.bf16.mxu0 %v5058_v35  ;;  %1655 = vmatprep.subr.bf16.mxu1 %v5059_v3 }
 0x43c   :  { %1615 = vmatpush1.bf16.msra.mxu0 %v5060_v45  ;;  %1656 = vmatpush1.bf16.msra.mxu1 %v5061_v44 }
 0x43d   :  { %1616 = vmatprep.subr.bf16.mxu0 %v5062_v48  ;;  %1657 = vmatprep.subr.bf16.mxu1 %v5145_v37 }
 0x440   :  { %1617 = vmatpush1.bf16.msra.mxu0 %v5146_v25  ;;  %1658 = vmatpush1.bf16.msra.mxu1 %v5147_v39 }
 0x441   :  { %1618 = vmatprep.subr.bf16.mxu0 %v5148_v11  ;;  %1659 = vmatprep.subr.bf16.mxu1 %v5149_v56 }
 0x444   :  { %1619 = vmatpush1.bf16.msra.mxu0 %v5150_v49  ;;  %1660 = vmatpush1.bf16.msra.mxu1 %v5151_v16 }
 0x445   :  { %1620 = vmatprep.subr.bf16.mxu0 %v5152_v9  ;;  %1661 = vmatprep.subr.bf16.mxu1 %v5153_v0 }
 0x448   :  { %1621 = vmatpush1.bf16.msra.mxu0 %v5154_v47  ;;  %1662 = vmatpush1.bf16.msra.mxu1 %v5155_v7 }
 0x449   :  { %1622 = vmatprep.subr.bf16.mxu0 %v5074_v28  ;;  %1663 = vmatprep.subr.bf16.mxu1 %v5075_v53 }
 0x44c   :  { %1623 = vmatpush1.bf16.msra.mxu0 %v5076_v27  ;;  %1664 = vmatpush1.bf16.msra.mxu1 %v5156_v5 }
 0x44d   :  { %1624 = vmatprep.subr.bf16.mxu0 %v5078_v24  ;;  %1665 = vmatprep.subr.bf16.mxu1 %v5079_v20 }
 0x450   :  { %1625 = vmatpush1.bf16.msra.mxu0 %v5080_v21  ;;  %1666 = vmatpush1.bf16.msra.mxu1 %v5081_v52 }
 0x451   :  { %1626 = vmatprep.subr.bf16.mxu0 %v5082_v40  ;;  %1667 = vmatprep.subr.bf16.mxu1 %v5083_v51 }
 0x454   :  { %1627 = vmatpush1.bf16.msra.mxu0 %v5084_v54  ;;  %1668 = vmatpush1.bf16.msra.mxu1 %v5003_v33 }
 0x455   :  { %1628 = vmatprep.subr.bf16.mxu0 %v5004_v46  ;;  %1669 = vmatprep.subr.bf16.mxu1 %v5005_v8 }
 0x458   :  { %1629 = vmatpush1.bf16.msra.mxu0 %v5085_v62  ;;  %1670 = vmatpush1.bf16.msra.mxu1 %v5007_v57 }
 0x459   :  { %1630 = vmatprep.subr.bf16.mxu0 %v5008_v63  ;;  %1671 = vmatprep.subr.bf16.mxu1 %v5009_v50 }
 0x45c   :  { %1631 = vmatpush1.bf16.msra.mxu0 %v5010_v34  ;;  %1672 = vmatpush1.bf16.msra.mxu1 %v5011_v55 }
 0x45d   :  { %1632 = vmatprep.subr.bf16.mxu0 %v5012_v60  ;;  %1673 = vmatprep.subr.bf16.mxu1 %v5013_v14  ;;  %v5166_v60 = vld [vmem:[#allocation137_spill] sm:$0xff]  ;;  %v5167_v14 = vld [vmem:[#allocation136_spill] sm:$0xff] }
 0x460   :  { %1633 = vmatpush1.bf16.msra.mxu0 %v5157_v10  ;;  %1674 = vmatpush1.bf16.msra.mxu1 %v5158_v4  ;;  %v5168_v10 = vld [vmem:[#allocation138_spill] sm:$0xff]  ;;  %v5169_v4 = vld [vmem:[#allocation139_spill] sm:$0xff] }
 0x461   :  { %1634 = vmatprep.subr.bf16.mxu0 %v5159_v42  ;;  %1675 = vmatprep.subr.bf16.mxu1 %v5160_v26  ;;  %v5170_v42 = vld [vmem:[#allocation140_spill] sm:$0xff] }
 0x462   :  { %v5171_v26 = vld [vmem:[#allocation12_spill] sm:$0xff] }
 0x464   :  { %1635 = vmatpush1.bf16.msra.mxu0 %v5161_v58  ;;  %1676 = vmatpush1.bf16.msra.mxu1 %v5162_v41  ;;  %v5172_v58 = vld [vmem:[#allocation15_spill] sm:$0xff] }
 0x465   :  { %1636 = vmatprep.subr.bf16.mxu0 %v5163_v6  ;;  %1677 = vmatprep.subr.bf16.mxu1 %v5164_v2  ;;  %v5173_v2 = vld [vmem:[#allocation13_spill] sm:$0xff]  ;;  %v5182_v6 = vld [vmem:[#allocation24_spill] sm:$0xff] }
 0x468   :  { %1637 = vmatpush1.bf16.msra.mxu0 %v5165_v59  ;;  %1678 = vmatpush1.bf16.msra.mxu1 %v5166_v60  ;;  %v5174_v59 = vld [vmem:[#allocation16_spill] sm:$0xff]  ;;  %v5175_v60 = vld [vmem:[#allocation14_spill] sm:$0xff] }
 0x469   :  { %1638 = vmatprep.subr.bf16.mxu0 %v5167_v14  ;;  %1679 = vmatprep.subr.bf16.mxu1 %v5168_v10  ;;  %v5176_v14 = vld [vmem:[#allocation18_spill] sm:$0xff]  ;;  %v5177_v10 = vld [vmem:[#allocation17_spill] sm:$0xff] }
 0x46c   :  { %1639 = vmatpush1.bf16.msra.mxu0 %v5169_v4  ;;  %1680 = vmatpush1.bf16.msra.mxu1 %v5170_v42  ;;  %v5178_v4 = vld [vmem:[#allocation20_spill] sm:$0xff]  ;;  %v5179_v42 = vld [vmem:[#allocation19_spill] sm:$0xff] }
 0x46d   :  { %1741 = vmatprep.subr.bf16.mxu0 %v5171_v26  ;;  %1782 = vmatprep.subr.bf16.mxu1 %v5172_v58  ;;  %v5180_v26 = vld [vmem:[#allocation21_spill] sm:$0xff]  ;;  %v5181_v58 = vld [vmem:[#allocation22_spill] sm:$0xff] }
 0x46f   :  { %1641 = vmatmul.mubr.bf16.vlgmr.msra.gmra.mrb[28].mxu0 %v3919_v32  ;;  %1682 = vmatmul.mubr.bf16.vlgmr.msra.gmra.mrb[28].mxu1 %v3919_v32  ;;  %v5183_v32 = vld [vmem:[#allocation23_spill] sm:$0xff] }
 0x470   :  { %1742 = vmatpush1.bf16.msra.mxu0 %v5173_v2  ;;  %1783 = vmatpush1.bf16.msra.mxu1 %v5174_v59  ;;  %v5184_v2 = vld [vmem:[#allocation25_spill] sm:$0xff]  ;;  %v5185_v59 = vld [vmem:[#allocation26_spill] sm:$0xff] }
 0x471   :  { %1743 = vmatprep.subr.bf16.mxu0 %v5175_v60  ;;  %1784 = vmatprep.subr.bf16.mxu1 %v5176_v14  ;;  %v5186_v60 = vld [vmem:[#allocation28_spill] sm:$0xff]  ;;  %v5187_v14 = vld [vmem:[#allocation27_spill] sm:$0xff] }
 0x474   :  { %1744 = vmatpush1.bf16.msra.mxu0 %v5177_v10  ;;  %1785 = vmatpush1.bf16.msra.mxu1 %v5178_v4  ;;  %v5188_v10 = vld [vmem:[#allocation29_spill] sm:$0xff]  ;;  %v5189_v4 = vld [vmem:[#allocation30_spill] sm:$0xff] }
 0x475   :  { %1745 = vmatprep.subr.bf16.mxu0 %v5179_v42  ;;  %1786 = vmatprep.subr.bf16.mxu1 %v5180_v26  ;;  %v5190_v42 = vld [vmem:[#allocation32_spill] sm:$0xff]  ;;  %v5191_v26 = vld [vmem:[#allocation31_spill] sm:$0xff] }
 0x478   :  { %1746 = vmatpush1.bf16.msra.mxu0 %v5181_v58  ;;  %1787 = vmatpush1.bf16.msra.mxu1 %v5182_v6  ;;  %v5192_v58 = vld [vmem:[#allocation33_spill] sm:$0xff]  ;;  %v5193_v6 = vld [vmem:[#allocation34_spill] sm:$0xff] }
 0x479   :  { %1747 = vmatprep.subr.bf16.mxu0 %v5183_v32  ;;  %1788 = vmatprep.subr.bf16.mxu1 %v5184_v2  ;;  %v5194_v32 = vld [vmem:[#allocation36_spill] sm:$0xff]  ;;  %v5195_v2 = vld [vmem:[#allocation35_spill] sm:$0xff] }
 0x47c   :  { %1748 = vmatpush1.bf16.msra.mxu0 %v5185_v59  ;;  %1789 = vmatpush1.bf16.msra.mxu1 %v5186_v60  ;;  %v5196_v59 = vld [vmem:[#allocation37_spill] sm:$0xff]  ;;  %v5197_v60 = vld [vmem:[#allocation38_spill] sm:$0xff] }
 0x47d   :  { %1749 = vmatprep.subr.bf16.mxu0 %v5187_v14  ;;  %1790 = vmatprep.subr.bf16.mxu1 %v5188_v10  ;;  %v5198_v14 = vld [vmem:[#allocation40_spill] sm:$0xff]  ;;  %v5199_v10 = vld [vmem:[#allocation39_spill] sm:$0xff] }
 0x480   :  { %1750 = vmatpush1.bf16.msra.mxu0 %v5189_v4  ;;  %1791 = vmatpush1.bf16.msra.mxu1 %v5190_v42  ;;  %v5200_v4 = vld [vmem:[#allocation41_spill] sm:$0xff]  ;;  %v5201_v42 = vld [vmem:[#allocation42_spill] sm:$0xff] }
 0x481   :  { %1751 = vmatprep.subr.bf16.mxu0 %v5191_v26  ;;  %1792 = vmatprep.subr.bf16.mxu1 %v5192_v58  ;;  %v5202_v26 = vld [vmem:[#allocation44_spill] sm:$0xff]  ;;  %v5203_v58 = vld [vmem:[#allocation43_spill] sm:$0xff] }
 0x484   :  { %1752 = vmatpush1.bf16.msra.mxu0 %v5193_v6  ;;  %1793 = vmatpush1.bf16.msra.mxu1 %v5194_v32  ;;  %v5204_v6 = vld [vmem:[#allocation45_spill] sm:$0xff]  ;;  %v5205_v32 = vld [vmem:[#allocation46_spill] sm:$0xff] }
 0x485   :  { %1753 = vmatprep.subr.bf16.mxu0 %v5195_v2  ;;  %1794 = vmatprep.subr.bf16.mxu1 %v5196_v59  ;;  %v5206_v2 = vld [vmem:[#allocation48_spill] sm:$0xff]  ;;  %v5207_v59 = vld [vmem:[#allocation47_spill] sm:$0xff] }
 0x488   :  { %1754 = vmatpush1.bf16.msra.mxu0 %v5197_v60  ;;  %1795 = vmatpush1.bf16.msra.mxu1 %v5198_v14  ;;  %v5208_v60 = vld [vmem:[#allocation49_spill] sm:$0xff]  ;;  %v5209_v14 = vld [vmem:[#allocation50_spill] sm:$0xff] }
 0x489   :  { %1755 = vmatprep.subr.bf16.mxu0 %v5199_v10  ;;  %1796 = vmatprep.subr.bf16.mxu1 %v5200_v4  ;;  %v5210_v10 = vld [vmem:[#allocation52_spill] sm:$0xff]  ;;  %v5211_v4 = vld [vmem:[#allocation51_spill] sm:$0xff] }
 0x48c   :  { %1756 = vmatpush1.bf16.msra.mxu0 %v5201_v42  ;;  %1797 = vmatpush1.bf16.msra.mxu1 %v5202_v26  ;;  %v5212_v42 = vld [vmem:[#allocation53_spill] sm:$0xff]  ;;  %v5213_v26 = vld [vmem:[#allocation54_spill] sm:$0xff] }
 0x48d   :  { %1757 = vmatprep.subr.bf16.mxu0 %v5203_v58  ;;  %1798 = vmatprep.subr.bf16.mxu1 %v5204_v6  ;;  %v5214_v58 = vld [vmem:[#allocation56_spill] sm:$0xff]  ;;  %v5215_v6 = vld [vmem:[#allocation55_spill] sm:$0xff] }
 0x490   :  { %1758 = vmatpush1.bf16.msra.mxu0 %v5205_v32  ;;  %1799 = vmatpush1.bf16.msra.mxu1 %v5206_v2  ;;  %v5216_v32 = vld [vmem:[#allocation57_spill] sm:$0xff]  ;;  %v5217_v2 = vld [vmem:[#allocation59_spill] sm:$0xff] }
 0x491   :  { %1759 = vmatprep.subr.bf16.mxu0 %v5207_v59  ;;  %1800 = vmatprep.subr.bf16.mxu1 %v5208_v60  ;;  %v5218_v59 = vld [vmem:[#allocation61_spill] sm:$0xff]  ;;  %v5219_v60 = vld [vmem:[#allocation60_spill] sm:$0xff] }
 0x494   :  { %1760 = vmatpush1.bf16.msra.mxu0 %v5209_v14  ;;  %1801 = vmatpush1.bf16.msra.mxu1 %v5210_v10  ;;  %v5220_v14 = vld [vmem:[#allocation62_spill] sm:$0xff]  ;;  %v5221_v10 = vld [vmem:[#allocation63_spill] sm:$0xff] }
 0x495   :  { %1761 = vmatprep.subr.bf16.mxu0 %v5211_v4  ;;  %1802 = vmatprep.subr.bf16.mxu1 %v5212_v42  ;;  %v5222_v4 = vld [vmem:[#allocation65_spill] sm:$0xff]  ;;  %v5223_v42 = vld [vmem:[#allocation64_spill] sm:$0xff] }
 0x498   :  { %1762 = vmatpush1.bf16.msra.mxu0 %v5213_v26  ;;  %1803 = vmatpush1.bf16.msra.mxu1 %v5214_v58  ;;  %v5224_v26 = vld [vmem:[#allocation66_spill] sm:$0xff]  ;;  %v5225_v58 = vld [vmem:[#allocation67_spill] sm:$0xff] }
 0x499   :  { %1763 = vmatprep.subr.bf16.mxu0 %v5215_v6  ;;  %1804 = vmatprep.subr.bf16.mxu1 %v5216_v32  ;;  %v5226_v6 = vld [vmem:[#allocation69_spill] sm:$0xff]  ;;  %v5227_v32 = vld [vmem:[#allocation68_spill] sm:$0xff] }
 0x49c   :  { %1764 = vmatpush1.bf16.msra.mxu0 %v5217_v2  ;;  %1805 = vmatpush1.bf16.msra.mxu1 %v5218_v59  ;;  %v5228_v2 = vld [vmem:[#allocation70_spill] sm:$0xff]  ;;  %v5229_v59 = vld [vmem:[#allocation71_spill] sm:$0xff] }
 0x49d   :  { %1765 = vmatprep.subr.bf16.mxu0 %v5219_v60  ;;  %1806 = vmatprep.subr.bf16.mxu1 %v5220_v14  ;;  %v5230_v60 = vld [vmem:[#allocation73_spill] sm:$0xff]  ;;  %v5231_v14 = vld [vmem:[#allocation72_spill] sm:$0xff] }
 0x4a0   :  { %1766 = vmatpush1.bf16.msra.mxu0 %v5221_v10  ;;  %1807 = vmatpush1.bf16.msra.mxu1 %v5222_v4  ;;  %v5232_v10 = vld [vmem:[#allocation74_spill] sm:$0xff]  ;;  %v5233_v4 = vld [vmem:[#allocation75_spill] sm:$0xff] }
 0x4a1   :  { %1767 = vmatprep.subr.bf16.mxu0 %v5223_v42  ;;  %1808 = vmatprep.subr.bf16.mxu1 %v5224_v26  ;;  %v5234_v42 = vld [vmem:[#allocation77_spill] sm:$0xff]  ;;  %v5235_v26 = vld [vmem:[#allocation76_spill] sm:$0xff] }
 0x4a4   :  { %1768 = vmatpush1.bf16.msra.mxu0 %v5225_v58  ;;  %1809 = vmatpush1.bf16.msra.mxu1 %v5226_v6  ;;  %v5236_v58 = vld [vmem:[#allocation78_spill] sm:$0xff]  ;;  %v1713_v6 = vld [vmem:[#allocation2 + $0x80] sm:$0xff] }
 0x4a5   :  { %1769 = vmatprep.subr.bf16.mxu0 %v5227_v32  ;;  %1810 = vmatprep.subr.bf16.mxu1 %v5228_v2  ;;  %v1714_v32 = vld [vmem:[#allocation2 + $0x88] sm:$0xff] }
 0x4a8   :  { %1770 = vmatpush1.bf16.msra.mxu0 %v5229_v59  ;;  %1811 = vmatpush1.bf16.msra.mxu1 %v5230_v60  ;;  %v1715_v60 = vld [vmem:[#allocation2 + $0x90] sm:$0xff] }
 0x4a9   :  { %1771 = vmatprep.subr.bf16.mxu0 %v5231_v14  ;;  %1812 = vmatprep.subr.bf16.mxu1 %v5232_v10 }
 0x4ac   :  { %1772 = vmatpush1.bf16.msra.mxu0 %v5233_v4  ;;  %1813 = vmatpush1.bf16.msra.mxu1 %v5234_v42 }
 0x4ad   :  { %1823 = vmatprep.subr.bf16.mxu0 %v5235_v26  ;;  %1864 = vmatprep.subr.bf16.mxu1 %v5236_v58 }
 0x502   :  { %v1560_v41 = vpop.f32.mrb[24].mxu0  ;;  %v1601_v2 = vpop.f32.mrb[24].mxu1 }
 0x503   :  { %v1717_v55 = vadd.f32 %v1713_v6, %v1560_v41  ;;  %v1562_v59 = vpop.f32.mrb[25].mxu0  ;;  %v1603_v34 = vpop.f32.mrb[25].mxu1  ;;  %v1719_v42 = vadd.f32 %v1715_v60, %v1601_v2 }
 0x504   :  { %v1718_v50 = vadd.f32 %v1714_v32, %v1562_v59  ;;  %v1564_v14 = vpop.f32.mrb[26].mxu0  ;;  %v1605_v63 = vpop.f32.mrb[26].mxu1 }
 0x505   :  { %v1721_v10 = vmul.f32 0.5, %v1717_v55  ;;  %v1565_v57 = vpop.f32.mrb[27].mxu0  ;;  %v1606_v4 = vpop.f32.mrb[27].mxu1 }
 0x506   :  { %v1725_v62 = vmul.f32 0.5, %v1718_v50 }
 0x507   :  { %2874 = vtanh.f32 %v1721_v10 }
 0x508   :  { %2876 = vtanh.f32 %v1725_v62 }
 0x509   :  { %2878 = vtanh.f32 %v1719_v42 }
 0x511   :  { %v2875_v58 = vpop.eup %2874 }
 0x512   :  { %v2877_v26 = vpop.eup %2876  ;;  %v1723_v8 = vmul.f32 0.5, %v2875_v58 }
 0x513   :  { %v1727_v46 = vmul.f32 0.5, %v2877_v26  ;;  %v2879_v41 = vpop.eup %2878 }
 0x514   :  { %v1724_v33 = vadd.f32 0.5, %v1723_v8 }
 0x515   :  { %v1728_v6 = vadd.f32 0.5, %v1727_v46  ;;  %v1716_v46 = vld [vmem:[#allocation2 + $0x98] sm:$0xff] }
 0x516   :  { %v1735_v54 = vmul.f32 %v2879_v41, %v1724_v33 }
 0x517   :  { %v1734_v59 = vmul.f32 %v1728_v6, %v3908_v17 }
 0x519   :  { %v4054_v14 = vadd.f32 %v1735_v54, %v1734_v59  ;;  %v1720_v54 = vadd.f32 %v1716_v46, %v1603_v34 }
 0x51b   :  { %v1730_v2 = vmul.f32 0.5, %v1720_v54 }
 0x542   :  { %v1642_v63 = vpop.f32.mrb[28].mxu0  ;;  %v1683_v57 = vpop.f32.mrb[28].mxu1 }
 0x543   :  { %v1690_v50 = vadd.f32 %v1642_v63, %v5053_v36  ;;  %v1644_v55 = vpop.f32.mrb[29].mxu0  ;;  %v1685_v60 = vpop.f32.mrb[29].mxu1  ;;  %v1692_v33 = vadd.f32 %v1683_v57, %v3615_v15 }
 0x544   :  { %v1691_v62 = vadd.f32 %v1644_v55, %v5054_v29  ;;  %v1646_v10 = vpop.f32.mrb[30].mxu0  ;;  %v1687_v4 = vpop.f32.mrb[30].mxu1  ;;  %v1693_v17 = vadd.f32 %v1685_v60, %v3620_v38 }
 0x545   :  { %v1694_v42 = vmul.f32 0.5, %v1690_v50  ;;  %v1647_v26 = vpop.f32.mrb[31].mxu0  ;;  %v1688_v8 = vpop.f32.mrb[31].mxu1 }
 0x546   :  { %v1698_v58 = vmul.f32 0.5, %v1691_v62  ;;  %v1703_v32 = vmul.f32 0.5, %v1693_v17 }
 0x547   :  { %2880 = vtanh.f32 %v1694_v42 }
 0x548   :  { %2882 = vtanh.f32 %v1698_v58 }
 0x549   :  { %2884 = vtanh.f32 %v1692_v33 }
 0x54a   :  { %2886 = vtanh.f32 %v1730_v2 }
 0x54b   :  { %2888 = vtanh.f32 %v1703_v32 }
 0x54c   :  { %2890 = vtanh.f32 %v4054_v14 }
 0x551   :  { %v2881_v41 = vpop.eup %2880 }
 0x552   :  { %v2883_v6 = vpop.eup %2882  ;;  %v1696_v59 = vmul.f32 0.5, %v2881_v41  ;;  %v5238_v41 = vld [vmem:[#allocation117_spill] sm:$0xff] }
 0x553   :  { %v1700_v63 = vmul.f32 0.5, %v2883_v6  ;;  %v2885_v55 = vpop.eup %2884  ;;  %v5239_v6 = vld [vmem:[#allocation116_spill] sm:$0xff] }
 0x554   :  { %v1697_v50 = vadd.f32 0.5, %v1696_v59  ;;  %v2887_v57 = vpop.eup %2886  ;;  %v5240_v59 = vld [vmem:[#allocation118_spill] sm:$0xff] }
 0x555   :  { %v1701_v62 = vadd.f32 0.5, %v1700_v63  ;;  %v2889_v60 = vpop.eup %2888  ;;  %v1732_v42 = vmul.f32 0.5, %v2887_v57  ;;  %v5241_v63 = vld [vmem:[#allocation119_spill] sm:$0xff]  ;;  %v5247_v57 = vld [vmem:[#allocation124_spill] sm:$0xff] }
 0x556   :  { %v1708_v10 = vmul.f32 %v2885_v55, %v1697_v50  ;;  %v1705_v26 = vmul.f32 0.5, %v2889_v60  ;;  %v2891_v8 = vpop.eup %2890  ;;  %v5242_v50 = vld [vmem:[#allocation121_spill] sm:$0xff]  ;;  %v5243_v55 = vld [vmem:[#allocation120_spill] sm:$0xff]  ;;  %v5248_v60 = vld [vmem:[#allocation126_spill] sm:$0xff] }
 0x557   :  { %v1707_v4 = vmul.f32 %v1701_v62, %v3916_v12  ;;  %v1733_v58 = vadd.f32 0.5, %v1732_v42  ;;  %v5237_v12 = vld [vmem:[#allocation115_spill] sm:$0xff]  ;;  %v5244_v62 = vld [vmem:[#allocation122_spill] sm:$0xff] }
 0x558   :  { %v1706_v46 = vadd.f32 0.5, %v1705_v26  ;;  %v5249_v42 = vld [vmem:[#allocation127_spill] sm:$0xff]  ;;  %v5250_v26 = vld [vmem:[#allocation129_spill] sm:$0xff] }
 0x559   :  { %v4062_v34 = vadd.f32 %v1708_v10, %v1707_v4  ;;  %v1738_v54 = vmul.f32 %v2891_v8, %v1733_v58  ;;  %v5245_v10 = vld [vmem:[#allocation123_spill] sm:$0xff]  ;;  %v5246_v4 = vld [vmem:[#allocation125_spill] sm:$0xff]  ;;  %v5251_v8 = vld [vmem:[#allocation128_spill] sm:$0xff] }
 0x55a   :  { %v5252_v58 = vld [vmem:[#allocation130_spill] sm:$0xff] }
 0x55b   :  { %2892 = vtanh.f32 %v4062_v34  ;;  %v4065_v32 = vpack.c.bf16 %v1738_v54, %v1738_v54  ;;  %v5255_v54 = vld [vmem:[#allocation132_spill] sm:$0xff] }
 0x565   :  { %v2893_v33 = vpop.eup %2892 }
 0x566   :  { %v1711_v17 = vmul.f32 %v2893_v33, %v1706_v46  ;;  %v5253_v46 = vld [vmem:[#allocation131_spill] sm:$0xff]  ;;  %v5254_v33 = vld [vmem:[#allocation133_spill] sm:$0xff] }
 0x568   :  { %v1740_v2 = vpack.c.bf16 %v1711_v17, %v1711_v17  ;;  %v5256_v17 = vld [vmem:[#allocation134_spill] sm:$0xff] }
 0x56a   :  { %1773 = vmatprep.mubr.bf16.mxu0 %v1740_v2  ;;  %1814 = vmatprep.mubr.bf16.mxu1 %v1740_v2 }
 0x56b   :  { %1774 = vmatmul.mubr.bf16.vlgmr.msra.gmra.mrb[32].mxu0 %v4065_v32  ;;  %1815 = vmatmul.mubr.bf16.vlgmr.msra.gmra.mrb[32].mxu1 %v4065_v32 }
 0x56c   :  { %1824 = vmatpush1.bf16.msra.mxu0 %v4966_v18  ;;  %1865 = vmatpush1.bf16.msra.mxu1 %v4967_v30 }
 0x56d   :  { %1855 = vmatprep.mubr.bf16.mxu0 %v1740_v2  ;;  %1896 = vmatprep.mubr.bf16.mxu1 %v1740_v2  ;;  %v5257_v2 = vld [vmem:[#allocation135_spill] sm:$0xff] }
 0x56e   :  { %1825 = vmatprep.subr.bf16.mxu0 %v4968_v13  ;;  %1866 = vmatprep.subr.bf16.mxu1 %v4969_v19 }
 0x570   :  { %1826 = vmatpush1.bf16.msra.mxu0 %v4970_v61  ;;  %1867 = vmatpush1.bf16.msra.mxu1 %v4971_v31 }
 0x571   :  { %1827 = vmatprep.subr.bf16.mxu0 %v4972_v22  ;;  %1868 = vmatprep.subr.bf16.mxu1 %v5055_v23 }
 0x574   :  { %1828 = vmatpush1.bf16.msra.mxu0 %v5056_v43  ;;  %1869 = vmatpush1.bf16.msra.mxu1 %v5057_v1 }
 0x575   :  { %1829 = vmatprep.subr.bf16.mxu0 %v5058_v35  ;;  %1870 = vmatprep.subr.bf16.mxu1 %v5059_v3 }
 0x578   :  { %1830 = vmatpush1.bf16.msra.mxu0 %v5060_v45  ;;  %1871 = vmatpush1.bf16.msra.mxu1 %v5061_v44 }
 0x579   :  { %1831 = vmatprep.subr.bf16.mxu0 %v5062_v48  ;;  %1872 = vmatprep.subr.bf16.mxu1 %v5145_v37 }
 0x57c   :  { %1832 = vmatpush1.bf16.msra.mxu0 %v5146_v25  ;;  %1873 = vmatpush1.bf16.msra.mxu1 %v5147_v39 }
 0x57d   :  { %1833 = vmatprep.subr.bf16.mxu0 %v5148_v11  ;;  %1874 = vmatprep.subr.bf16.mxu1 %v5149_v56 }
 0x580   :  { %1834 = vmatpush1.bf16.msra.mxu0 %v5150_v49  ;;  %1875 = vmatpush1.bf16.msra.mxu1 %v5151_v16 }
 0x581   :  { %1835 = vmatprep.subr.bf16.mxu0 %v5152_v9  ;;  %1876 = vmatprep.subr.bf16.mxu1 %v5153_v0 }
 0x584   :  { %1836 = vmatpush1.bf16.msra.mxu0 %v5154_v47  ;;  %1877 = vmatpush1.bf16.msra.mxu1 %v5155_v7 }
 0x585   :  { %1837 = vmatprep.subr.bf16.mxu0 %v5074_v28  ;;  %1878 = vmatprep.subr.bf16.mxu1 %v5075_v53 }
 0x588   :  { %1838 = vmatpush1.bf16.msra.mxu0 %v5076_v27  ;;  %1879 = vmatpush1.bf16.msra.mxu1 %v5156_v5 }
 0x589   :  { %1839 = vmatprep.subr.bf16.mxu0 %v5078_v24  ;;  %1880 = vmatprep.subr.bf16.mxu1 %v5079_v20 }
 0x58c   :  { %1840 = vmatpush1.bf16.msra.mxu0 %v5080_v21  ;;  %1881 = vmatpush1.bf16.msra.mxu1 %v5081_v52 }
 0x58d   :  { %1841 = vmatprep.subr.bf16.mxu0 %v5082_v40  ;;  %1882 = vmatprep.subr.bf16.mxu1 %v5083_v51 }
 0x590   :  { %1842 = vmatpush1.bf16.msra.mxu0 %v5237_v12  ;;  %1883 = vmatpush1.bf16.msra.mxu1 %v5238_v41 }
 0x591   :  { %1843 = vmatprep.subr.bf16.mxu0 %v5239_v6  ;;  %1884 = vmatprep.subr.bf16.mxu1 %v5240_v59 }
 0x594   :  { %1844 = vmatpush1.bf16.msra.mxu0 %v5241_v63  ;;  %1885 = vmatpush1.bf16.msra.mxu1 %v5242_v50 }
 0x595   :  { %1845 = vmatprep.subr.bf16.mxu0 %v5243_v55  ;;  %1886 = vmatprep.subr.bf16.mxu1 %v5244_v62 }
 0x598   :  { %1846 = vmatpush1.bf16.msra.mxu0 %v5245_v10  ;;  %1887 = vmatpush1.bf16.msra.mxu1 %v5246_v4 }
 0x599   :  { %1847 = vmatprep.subr.bf16.mxu0 %v5247_v57  ;;  %1888 = vmatprep.subr.bf16.mxu1 %v5248_v60  ;;  %v5258_v57 = vld [vmem:[#allocation137_spill] sm:$0xff]  ;;  %v5259_v60 = vld [vmem:[#allocation136_spill] sm:$0xff] }
 0x59c   :  { %1848 = vmatpush1.bf16.msra.mxu0 %v5249_v42  ;;  %1889 = vmatpush1.bf16.msra.mxu1 %v5250_v26  ;;  %v5260_v42 = vld [vmem:[#allocation138_spill] sm:$0xff]  ;;  %v5261_v26 = vld [vmem:[#allocation139_spill] sm:$0xff] }
 0x59d   :  { %1849 = vmatprep.subr.bf16.mxu0 %v5251_v8  ;;  %1890 = vmatprep.subr.bf16.mxu1 %v5252_v58  ;;  %v5262_v8 = vld [vmem:[#allocation140_spill] sm:$0xff] }
 0x59e   :  { %v5263_v58 = vld [vmem:[#allocation12_spill] sm:$0xff] }
 0x5a0   :  { %1850 = vmatpush1.bf16.msra.mxu0 %v5253_v46  ;;  %1891 = vmatpush1.bf16.msra.mxu1 %v5254_v33  ;;  %v5264_v46 = vld [vmem:[#allocation15_spill] sm:$0xff] }
 0x5a1   :  { %1851 = vmatprep.subr.bf16.mxu0 %v5255_v54  ;;  %1892 = vmatprep.subr.bf16.mxu1 %v5256_v17  ;;  %v5265_v17 = vld [vmem:[#allocation13_spill] sm:$0xff]  ;;  %v5274_v54 = vld [vmem:[#allocation24_spill] sm:$0xff] }
 0x5a4   :  { %1852 = vmatpush1.bf16.msra.mxu0 %v5257_v2  ;;  %1893 = vmatpush1.bf16.msra.mxu1 %v5258_v57  ;;  %v5266_v2 = vld [vmem:[#allocation16_spill] sm:$0xff]  ;;  %v5267_v57 = vld [vmem:[#allocation14_spill] sm:$0xff] }
 0x5a5   :  { %1853 = vmatprep.subr.bf16.mxu0 %v5259_v60  ;;  %1894 = vmatprep.subr.bf16.mxu1 %v5260_v42  ;;  %v5268_v60 = vld [vmem:[#allocation18_spill] sm:$0xff]  ;;  %v5269_v42 = vld [vmem:[#allocation17_spill] sm:$0xff] }
 0x5a8   :  { %1854 = vmatpush1.bf16.msra.mxu0 %v5261_v26  ;;  %1895 = vmatpush1.bf16.msra.mxu1 %v5262_v8  ;;  %v5270_v26 = vld [vmem:[#allocation20_spill] sm:$0xff]  ;;  %v5271_v8 = vld [vmem:[#allocation19_spill] sm:$0xff] }
 0x5a9   :  { %1956 = vmatprep.subr.bf16.mxu0 %v5263_v58  ;;  %1997 = vmatprep.subr.bf16.mxu1 %v5264_v46  ;;  %v5272_v58 = vld [vmem:[#allocation21_spill] sm:$0xff]  ;;  %v5273_v46 = vld [vmem:[#allocation22_spill] sm:$0xff] }
 0x5ab   :  { %1856 = vmatmul.mubr.bf16.vlgmr.msra.gmra.mrb[36].mxu0 %v4065_v32  ;;  %1897 = vmatmul.mubr.bf16.vlgmr.msra.gmra.mrb[36].mxu1 %v4065_v32  ;;  %v5275_v32 = vld [vmem:[#allocation23_spill] sm:$0xff] }
 0x5ac   :  { %1957 = vmatpush1.bf16.msra.mxu0 %v5265_v17  ;;  %1998 = vmatpush1.bf16.msra.mxu1 %v5266_v2  ;;  %v5276_v17 = vld [vmem:[#allocation25_spill] sm:$0xff]  ;;  %v5277_v2 = vld [vmem:[#allocation26_spill] sm:$0xff] }
 0x5ad   :  { %1958 = vmatprep.subr.bf16.mxu0 %v5267_v57  ;;  %1999 = vmatprep.subr.bf16.mxu1 %v5268_v60  ;;  %v5278_v57 = vld [vmem:[#allocation28_spill] sm:$0xff]  ;;  %v5279_v60 = vld [vmem:[#allocation27_spill] sm:$0xff] }
 0x5b0   :  { %1959 = vmatpush1.bf16.msra.mxu0 %v5269_v42  ;;  %2000 = vmatpush1.bf16.msra.mxu1 %v5270_v26  ;;  %v5280_v42 = vld [vmem:[#allocation29_spill] sm:$0xff]  ;;  %v5281_v26 = vld [vmem:[#allocation30_spill] sm:$0xff] }
 0x5b1   :  { %1960 = vmatprep.subr.bf16.mxu0 %v5271_v8  ;;  %2001 = vmatprep.subr.bf16.mxu1 %v5272_v58  ;;  %v5282_v8 = vld [vmem:[#allocation32_spill] sm:$0xff]  ;;  %v5283_v58 = vld [vmem:[#allocation31_spill] sm:$0xff] }
 0x5b4   :  { %1961 = vmatpush1.bf16.msra.mxu0 %v5273_v46  ;;  %2002 = vmatpush1.bf16.msra.mxu1 %v5274_v54  ;;  %v5284_v46 = vld [vmem:[#allocation33_spill] sm:$0xff]  ;;  %v5285_v54 = vld [vmem:[#allocation34_spill] sm:$0xff] }
 0x5b5   :  { %1962 = vmatprep.subr.bf16.mxu0 %v5275_v32  ;;  %2003 = vmatprep.subr.bf16.mxu1 %v5276_v17  ;;  %v5286_v32 = vld [vmem:[#allocation36_spill] sm:$0xff]  ;;  %v5287_v17 = vld [vmem:[#allocation35_spill] sm:$0xff] }
 0x5b8   :  { %1963 = vmatpush1.bf16.msra.mxu0 %v5277_v2  ;;  %2004 = vmatpush1.bf16.msra.mxu1 %v5278_v57  ;;  %v5288_v2 = vld [vmem:[#allocation37_spill] sm:$0xff]  ;;  %v5289_v57 = vld [vmem:[#allocation38_spill] sm:$0xff] }
 0x5b9   :  { %1964 = vmatprep.subr.bf16.mxu0 %v5279_v60  ;;  %2005 = vmatprep.subr.bf16.mxu1 %v5280_v42  ;;  %v5290_v60 = vld [vmem:[#allocation40_spill] sm:$0xff]  ;;  %v5291_v42 = vld [vmem:[#allocation39_spill] sm:$0xff] }
 0x5bc   :  { %1965 = vmatpush1.bf16.msra.mxu0 %v5281_v26  ;;  %2006 = vmatpush1.bf16.msra.mxu1 %v5282_v8  ;;  %v5292_v26 = vld [vmem:[#allocation41_spill] sm:$0xff]  ;;  %v5293_v8 = vld [vmem:[#allocation42_spill] sm:$0xff] }
 0x5bd   :  { %1966 = vmatprep.subr.bf16.mxu0 %v5283_v58  ;;  %2007 = vmatprep.subr.bf16.mxu1 %v5284_v46  ;;  %v5294_v58 = vld [vmem:[#allocation44_spill] sm:$0xff]  ;;  %v5295_v46 = vld [vmem:[#allocation43_spill] sm:$0xff] }
 0x5c0   :  { %1967 = vmatpush1.bf16.msra.mxu0 %v5285_v54  ;;  %2008 = vmatpush1.bf16.msra.mxu1 %v5286_v32  ;;  %v5296_v54 = vld [vmem:[#allocation45_spill] sm:$0xff]  ;;  %v5297_v32 = vld [vmem:[#allocation46_spill] sm:$0xff] }
 0x5c1   :  { %1968 = vmatprep.subr.bf16.mxu0 %v5287_v17  ;;  %2009 = vmatprep.subr.bf16.mxu1 %v5288_v2  ;;  %v5298_v17 = vld [vmem:[#allocation48_spill] sm:$0xff]  ;;  %v5299_v2 = vld [vmem:[#allocation47_spill] sm:$0xff] }
 0x5c4   :  { %1969 = vmatpush1.bf16.msra.mxu0 %v5289_v57  ;;  %2010 = vmatpush1.bf16.msra.mxu1 %v5290_v60  ;;  %v5300_v57 = vld [vmem:[#allocation49_spill] sm:$0xff]  ;;  %v5301_v60 = vld [vmem:[#allocation50_spill] sm:$0xff] }
 0x5c5   :  { %1970 = vmatprep.subr.bf16.mxu0 %v5291_v42  ;;  %2011 = vmatprep.subr.bf16.mxu1 %v5292_v26  ;;  %v5302_v42 = vld [vmem:[#allocation52_spill] sm:$0xff]  ;;  %v5303_v26 = vld [vmem:[#allocation51_spill] sm:$0xff] }
 0x5c8   :  { %1971 = vmatpush1.bf16.msra.mxu0 %v5293_v8  ;;  %2012 = vmatpush1.bf16.msra.mxu1 %v5294_v58  ;;  %v5304_v8 = vld [vmem:[#allocation53_spill] sm:$0xff]  ;;  %v5305_v58 = vld [vmem:[#allocation54_spill] sm:$0xff] }
 0x5c9   :  { %1972 = vmatprep.subr.bf16.mxu0 %v5295_v46  ;;  %2013 = vmatprep.subr.bf16.mxu1 %v5296_v54  ;;  %v5306_v46 = vld [vmem:[#allocation56_spill] sm:$0xff]  ;;  %v5307_v54 = vld [vmem:[#allocation55_spill] sm:$0xff] }
 0x5cc   :  { %1973 = vmatpush1.bf16.msra.mxu0 %v5297_v32  ;;  %2014 = vmatpush1.bf16.msra.mxu1 %v5298_v17  ;;  %v5308_v32 = vld [vmem:[#allocation57_spill] sm:$0xff]  ;;  %v5309_v17 = vld [vmem:[#allocation59_spill] sm:$0xff] }
 0x5cd   :  { %1974 = vmatprep.subr.bf16.mxu0 %v5299_v2  ;;  %2015 = vmatprep.subr.bf16.mxu1 %v5300_v57  ;;  %v5310_v2 = vld [vmem:[#allocation61_spill] sm:$0xff]  ;;  %v5311_v57 = vld [vmem:[#allocation60_spill] sm:$0xff] }
 0x5d0   :  { %1975 = vmatpush1.bf16.msra.mxu0 %v5301_v60  ;;  %2016 = vmatpush1.bf16.msra.mxu1 %v5302_v42  ;;  %v5312_v60 = vld [vmem:[#allocation62_spill] sm:$0xff]  ;;  %v5313_v42 = vld [vmem:[#allocation63_spill] sm:$0xff] }
 0x5d1   :  { %1976 = vmatprep.subr.bf16.mxu0 %v5303_v26  ;;  %2017 = vmatprep.subr.bf16.mxu1 %v5304_v8  ;;  %v5314_v26 = vld [vmem:[#allocation65_spill] sm:$0xff]  ;;  %v5315_v8 = vld [vmem:[#allocation64_spill] sm:$0xff] }
 0x5d4   :  { %1977 = vmatpush1.bf16.msra.mxu0 %v5305_v58  ;;  %2018 = vmatpush1.bf16.msra.mxu1 %v5306_v46  ;;  %v5316_v58 = vld [vmem:[#allocation66_spill] sm:$0xff]  ;;  %v5317_v46 = vld [vmem:[#allocation67_spill] sm:$0xff] }
 0x5d5   :  { %1978 = vmatprep.subr.bf16.mxu0 %v5307_v54  ;;  %2019 = vmatprep.subr.bf16.mxu1 %v5308_v32  ;;  %v5318_v54 = vld [vmem:[#allocation69_spill] sm:$0xff]  ;;  %v5319_v32 = vld [vmem:[#allocation68_spill] sm:$0xff] }
 0x5d8   :  { %1979 = vmatpush1.bf16.msra.mxu0 %v5309_v17  ;;  %2020 = vmatpush1.bf16.msra.mxu1 %v5310_v2  ;;  %v5320_v17 = vld [vmem:[#allocation70_spill] sm:$0xff]  ;;  %v5321_v2 = vld [vmem:[#allocation71_spill] sm:$0xff] }
 0x5d9   :  { %1980 = vmatprep.subr.bf16.mxu0 %v5311_v57  ;;  %2021 = vmatprep.subr.bf16.mxu1 %v5312_v60  ;;  %v5322_v57 = vld [vmem:[#allocation73_spill] sm:$0xff]  ;;  %v5323_v60 = vld [vmem:[#allocation72_spill] sm:$0xff] }
 0x5dc   :  { %1981 = vmatpush1.bf16.msra.mxu0 %v5313_v42  ;;  %2022 = vmatpush1.bf16.msra.mxu1 %v5314_v26  ;;  %v5324_v42 = vld [vmem:[#allocation74_spill] sm:$0xff]  ;;  %v5325_v26 = vld [vmem:[#allocation75_spill] sm:$0xff] }
 0x5dd   :  { %1982 = vmatprep.subr.bf16.mxu0 %v5315_v8  ;;  %2023 = vmatprep.subr.bf16.mxu1 %v5316_v58  ;;  %v5326_v8 = vld [vmem:[#allocation77_spill] sm:$0xff]  ;;  %v5327_v58 = vld [vmem:[#allocation76_spill] sm:$0xff] }
 0x5e0   :  { %1983 = vmatpush1.bf16.msra.mxu0 %v5317_v46  ;;  %2024 = vmatpush1.bf16.msra.mxu1 %v5318_v54  ;;  %v5328_v46 = vld [vmem:[#allocation78_spill] sm:$0xff]  ;;  %v1928_v54 = vld [vmem:[#allocation2 + $0xa0] sm:$0xff] }
 0x5e1   :  { %1984 = vmatprep.subr.bf16.mxu0 %v5319_v32  ;;  %2025 = vmatprep.subr.bf16.mxu1 %v5320_v17  ;;  %v1929_v32 = vld [vmem:[#allocation2 + $0xa8] sm:$0xff] }
 0x5e4   :  { %1985 = vmatpush1.bf16.msra.mxu0 %v5321_v2  ;;  %2026 = vmatpush1.bf16.msra.mxu1 %v5322_v57  ;;  %v1930_v57 = vld [vmem:[#allocation2 + $0xb0] sm:$0xff] }
 0x5e5   :  { %1986 = vmatprep.subr.bf16.mxu0 %v5323_v60  ;;  %2027 = vmatprep.subr.bf16.mxu1 %v5324_v42 }
 0x5e8   :  { %1987 = vmatpush1.bf16.msra.mxu0 %v5325_v26  ;;  %2028 = vmatpush1.bf16.msra.mxu1 %v5326_v8 }
 0x5e9   :  { %2038 = vmatprep.subr.bf16.mxu0 %v5327_v58  ;;  %2079 = vmatprep.subr.bf16.mxu1 %v5328_v46 }
 0x63e   :  { %v1775_v33 = vpop.f32.mrb[32].mxu0  ;;  %v1816_v17 = vpop.f32.mrb[32].mxu1 }
 0x63f   :  { %v1932_v4 = vadd.f32 %v1928_v54, %v1775_v33  ;;  %v1777_v2 = vpop.f32.mrb[33].mxu0  ;;  %v1818_v10 = vpop.f32.mrb[33].mxu1  ;;  %v1934_v8 = vadd.f32 %v1930_v57, %v1816_v17 }
 0x640   :  { %v1933_v62 = vadd.f32 %v1929_v32, %v1777_v2  ;;  %v1779_v60 = vpop.f32.mrb[34].mxu0  ;;  %v1820_v55 = vpop.f32.mrb[34].mxu1 }
 0x641   :  { %v1936_v42 = vmul.f32 0.5, %v1932_v4  ;;  %v1780_v50 = vpop.f32.mrb[35].mxu0  ;;  %v1821_v26 = vpop.f32.mrb[35].mxu1 }
 0x642   :  { %v1940_v63 = vmul.f32 0.5, %v1933_v62 }
 0x643   :  { %2894 = vtanh.f32 %v1936_v42 }
 0x644   :  { %2896 = vtanh.f32 %v1940_v63 }
 0x645   :  { %2898 = vtanh.f32 %v1934_v8 }
 0x64d   :  { %v2895_v46 = vpop.eup %2894 }
 0x64e   :  { %v2897_v58 = vpop.eup %2896  ;;  %v1938_v59 = vmul.f32 0.5, %v2895_v46 }
 0x64f   :  { %v1942_v6 = vmul.f32 0.5, %v2897_v58  ;;  %v2899_v33 = vpop.eup %2898 }
 0x650   :  { %v1939_v41 = vadd.f32 0.5, %v1938_v59 }
 0x651   :  { %v1943_v54 = vadd.f32 0.5, %v1942_v6  ;;  %v1931_v6 = vld [vmem:[#allocation2 + $0xb8] sm:$0xff] }
 0x652   :  { %v1950_v12 = vmul.f32 %v2899_v33, %v1939_v41 }
 0x653   :  { %v1949_v2 = vmul.f32 %v1943_v54, %v4054_v14 }
 0x655   :  { %v4200_v60 = vadd.f32 %v1950_v12, %v1949_v2  ;;  %v1935_v12 = vadd.f32 %v1931_v6, %v1818_v10 }
 0x657   :  { %v1945_v17 = vmul.f32 0.5, %v1935_v12 }
 0x67e   :  { %v1857_v55 = vpop.f32.mrb[36].mxu0  ;;  %v1898_v50 = vpop.f32.mrb[36].mxu1 }
 0x67f   :  { %v1905_v62 = vadd.f32 %v1857_v55, %v5053_v36  ;;  %v1859_v4 = vpop.f32.mrb[37].mxu0  ;;  %v1900_v57 = vpop.f32.mrb[37].mxu1  ;;  %v1907_v14 = vadd.f32 %v1898_v50, %v3615_v15 }
 0x680   :  { %v1906_v63 = vadd.f32 %v1859_v4, %v5054_v29  ;;  %v1861_v42 = vpop.f32.mrb[38].mxu0  ;;  %v1902_v26 = vpop.f32.mrb[38].mxu1  ;;  %v1908_v41 = vadd.f32 %v1900_v57, %v3620_v38 }
 0x681   :  { %v1909_v8 = vmul.f32 0.5, %v1905_v62  ;;  %v1862_v58 = vpop.f32.mrb[39].mxu0  ;;  %v1903_v59 = vpop.f32.mrb[39].mxu1 }
 0x682   :  { %v1913_v46 = vmul.f32 0.5, %v1906_v63  ;;  %v1918_v32 = vmul.f32 0.5, %v1908_v41 }
 0x683   :  { %2900 = vtanh.f32 %v1909_v8 }
 0x684   :  { %2902 = vtanh.f32 %v1913_v46 }
 0x685   :  { %2904 = vtanh.f32 %v1907_v14 }
 0x686   :  { %2906 = vtanh.f32 %v1945_v17 }
 0x687   :  { %2908 = vtanh.f32 %v1918_v32 }
 0x688   :  { %2910 = vtanh.f32 %v4200_v60 }
 0x68d   :  { %v2901_v33 = vpop.eup %2900 }
 0x68e   :  { %v2903_v54 = vpop.eup %2902  ;;  %v1911_v2 = vmul.f32 0.5, %v2901_v33  ;;  %v5330_v33 = vld [vmem:[#allocation117_spill] sm:$0xff] }
 0x68f   :  { %v1915_v55 = vmul.f32 0.5, %v2903_v54  ;;  %v2905_v4 = vpop.eup %2904  ;;  %v5331_v54 = vld [vmem:[#allocation116_spill] sm:$0xff] }
 0x690   :  { %v1912_v62 = vadd.f32 0.5, %v1911_v2  ;;  %v2907_v50 = vpop.eup %2906  ;;  %v5332_v2 = vld [vmem:[#allocation118_spill] sm:$0xff] }
 0x691   :  { %v1916_v63 = vadd.f32 0.5, %v1915_v55  ;;  %v2909_v57 = vpop.eup %2908  ;;  %v1947_v8 = vmul.f32 0.5, %v2907_v50  ;;  %v5333_v55 = vld [vmem:[#allocation119_spill] sm:$0xff]  ;;  %v5339_v50 = vld [vmem:[#allocation124_spill] sm:$0xff] }
 0x692   :  { %v1923_v42 = vmul.f32 %v2905_v4, %v1912_v62  ;;  %v1920_v58 = vmul.f32 0.5, %v2909_v57  ;;  %v2911_v59 = vpop.eup %2910  ;;  %v5334_v62 = vld [vmem:[#allocation121_spill] sm:$0xff]  ;;  %v5335_v4 = vld [vmem:[#allocation120_spill] sm:$0xff]  ;;  %v5340_v57 = vld [vmem:[#allocation126_spill] sm:$0xff] }
 0x693   :  { %v1922_v26 = vmul.f32 %v1916_v63, %v4062_v34  ;;  %v1948_v46 = vadd.f32 0.5, %v1947_v8  ;;  %v5329_v34 = vld [vmem:[#allocation115_spill] sm:$0xff]  ;;  %v5336_v63 = vld [vmem:[#allocation122_spill] sm:$0xff] }
 0x694   :  { %v1921_v6 = vadd.f32 0.5, %v1920_v58  ;;  %v5341_v8 = vld [vmem:[#allocation127_spill] sm:$0xff]  ;;  %v5342_v58 = vld [vmem:[#allocation129_spill] sm:$0xff] }
 0x695   :  { %v4208_v10 = vadd.f32 %v1923_v42, %v1922_v26  ;;  %v1953_v12 = vmul.f32 %v2911_v59, %v1948_v46  ;;  %v5337_v42 = vld [vmem:[#allocation123_spill] sm:$0xff]  ;;  %v5338_v26 = vld [vmem:[#allocation125_spill] sm:$0xff]  ;;  %v5343_v59 = vld [vmem:[#allocation128_spill] sm:$0xff] }
 0x696   :  { %v5344_v46 = vld [vmem:[#allocation130_spill] sm:$0xff] }
 0x697   :  { %2912 = vtanh.f32 %v4208_v10  ;;  %v4211_v32 = vpack.c.bf16 %v1953_v12, %v1953_v12  ;;  %v5347_v12 = vld [vmem:[#allocation132_spill] sm:$0xff] }
 0x6a1   :  { %v2913_v14 = vpop.eup %2912 }
 0x6a2   :  { %v1926_v41 = vmul.f32 %v2913_v14, %v1921_v6  ;;  %v5345_v6 = vld [vmem:[#allocation131_spill] sm:$0xff]  ;;  %v5346_v14 = vld [vmem:[#allocation133_spill] sm:$0xff] }
 0x6a4   :  { %v1955_v17 = vpack.c.bf16 %v1926_v41, %v1926_v41  ;;  %v5348_v41 = vld [vmem:[#allocation134_spill] sm:$0xff] }
 0x6a6   :  { %1988 = vmatprep.mubr.bf16.mxu0 %v1955_v17  ;;  %2029 = vmatprep.mubr.bf16.mxu1 %v1955_v17 }
 0x6a7   :  { %1989 = vmatmul.mubr.bf16.vlgmr.msra.gmra.mrb[40].mxu0 %v4211_v32  ;;  %2030 = vmatmul.mubr.bf16.vlgmr.msra.gmra.mrb[40].mxu1 %v4211_v32 }
 0x6a8   :  { %2039 = vmatpush1.bf16.msra.mxu0 %v4966_v18  ;;  %2080 = vmatpush1.bf16.msra.mxu1 %v4967_v30 }
 0x6a9   :  { %2070 = vmatprep.mubr.bf16.mxu0 %v1955_v17  ;;  %2111 = vmatprep.mubr.bf16.mxu1 %v1955_v17  ;;  %v5349_v17 = vld [vmem:[#allocation135_spill] sm:$0xff] }
 0x6aa   :  { %2040 = vmatprep.subr.bf16.mxu0 %v4968_v13  ;;  %2081 = vmatprep.subr.bf16.mxu1 %v4969_v19 }
 0x6ac   :  { %2041 = vmatpush1.bf16.msra.mxu0 %v4970_v61  ;;  %2082 = vmatpush1.bf16.msra.mxu1 %v4971_v31 }
 0x6ad   :  { %2042 = vmatprep.subr.bf16.mxu0 %v4972_v22  ;;  %2083 = vmatprep.subr.bf16.mxu1 %v5055_v23 }
 0x6b0   :  { %2043 = vmatpush1.bf16.msra.mxu0 %v5056_v43  ;;  %2084 = vmatpush1.bf16.msra.mxu1 %v5057_v1 }
 0x6b1   :  { %2044 = vmatprep.subr.bf16.mxu0 %v5058_v35  ;;  %2085 = vmatprep.subr.bf16.mxu1 %v5059_v3 }
 0x6b4   :  { %2045 = vmatpush1.bf16.msra.mxu0 %v5060_v45  ;;  %2086 = vmatpush1.bf16.msra.mxu1 %v5061_v44 }
 0x6b5   :  { %2046 = vmatprep.subr.bf16.mxu0 %v5062_v48  ;;  %2087 = vmatprep.subr.bf16.mxu1 %v5145_v37 }
 0x6b8   :  { %2047 = vmatpush1.bf16.msra.mxu0 %v5146_v25  ;;  %2088 = vmatpush1.bf16.msra.mxu1 %v5147_v39 }
 0x6b9   :  { %2048 = vmatprep.subr.bf16.mxu0 %v5148_v11  ;;  %2089 = vmatprep.subr.bf16.mxu1 %v5149_v56 }
 0x6bc   :  { %2049 = vmatpush1.bf16.msra.mxu0 %v5150_v49  ;;  %2090 = vmatpush1.bf16.msra.mxu1 %v5151_v16 }
 0x6bd   :  { %2050 = vmatprep.subr.bf16.mxu0 %v5152_v9  ;;  %2091 = vmatprep.subr.bf16.mxu1 %v5153_v0 }
 0x6c0   :  { %2051 = vmatpush1.bf16.msra.mxu0 %v5154_v47  ;;  %2092 = vmatpush1.bf16.msra.mxu1 %v5155_v7 }
 0x6c1   :  { %2052 = vmatprep.subr.bf16.mxu0 %v5074_v28  ;;  %2093 = vmatprep.subr.bf16.mxu1 %v5075_v53 }
 0x6c4   :  { %2053 = vmatpush1.bf16.msra.mxu0 %v5076_v27  ;;  %2094 = vmatpush1.bf16.msra.mxu1 %v5156_v5 }
 0x6c5   :  { %2054 = vmatprep.subr.bf16.mxu0 %v5078_v24  ;;  %2095 = vmatprep.subr.bf16.mxu1 %v5079_v20 }
 0x6c8   :  { %2055 = vmatpush1.bf16.msra.mxu0 %v5080_v21  ;;  %2096 = vmatpush1.bf16.msra.mxu1 %v5081_v52 }
 0x6c9   :  { %2056 = vmatprep.subr.bf16.mxu0 %v5082_v40  ;;  %2097 = vmatprep.subr.bf16.mxu1 %v5083_v51 }
 0x6cc   :  { %2057 = vmatpush1.bf16.msra.mxu0 %v5329_v34  ;;  %2098 = vmatpush1.bf16.msra.mxu1 %v5330_v33 }
 0x6cd   :  { %2058 = vmatprep.subr.bf16.mxu0 %v5331_v54  ;;  %2099 = vmatprep.subr.bf16.mxu1 %v5332_v2 }
 0x6d0   :  { %2059 = vmatpush1.bf16.msra.mxu0 %v5333_v55  ;;  %2100 = vmatpush1.bf16.msra.mxu1 %v5334_v62 }
 0x6d1   :  { %2060 = vmatprep.subr.bf16.mxu0 %v5335_v4  ;;  %2101 = vmatprep.subr.bf16.mxu1 %v5336_v63 }
 0x6d4   :  { %2061 = vmatpush1.bf16.msra.mxu0 %v5337_v42  ;;  %2102 = vmatpush1.bf16.msra.mxu1 %v5338_v26 }
 0x6d5   :  { %2062 = vmatprep.subr.bf16.mxu0 %v5339_v50  ;;  %2103 = vmatprep.subr.bf16.mxu1 %v5340_v57  ;;  %v5350_v50 = vld [vmem:[#allocation137_spill] sm:$0xff]  ;;  %v5351_v57 = vld [vmem:[#allocation136_spill] sm:$0xff] }
 0x6d8   :  { %2063 = vmatpush1.bf16.msra.mxu0 %v5341_v8  ;;  %2104 = vmatpush1.bf16.msra.mxu1 %v5342_v58  ;;  %v5352_v8 = vld [vmem:[#allocation138_spill] sm:$0xff]  ;;  %v5353_v58 = vld [vmem:[#allocation139_spill] sm:$0xff] }
 0x6d9   :  { %2064 = vmatprep.subr.bf16.mxu0 %v5343_v59  ;;  %2105 = vmatprep.subr.bf16.mxu1 %v5344_v46  ;;  %v5354_v59 = vld [vmem:[#allocation140_spill] sm:$0xff] }
 0x6da   :  { %v5355_v46 = vld [vmem:[#allocation12_spill] sm:$0xff] }
 0x6dc   :  { %2065 = vmatpush1.bf16.msra.mxu0 %v5345_v6  ;;  %2106 = vmatpush1.bf16.msra.mxu1 %v5346_v14  ;;  %v5356_v6 = vld [vmem:[#allocation15_spill] sm:$0xff] }
 0x6dd   :  { %2066 = vmatprep.subr.bf16.mxu0 %v5347_v12  ;;  %2107 = vmatprep.subr.bf16.mxu1 %v5348_v41  ;;  %v5357_v41 = vld [vmem:[#allocation13_spill] sm:$0xff]  ;;  %v5366_v12 = vld [vmem:[#allocation24_spill] sm:$0xff] }
 0x6e0   :  { %2067 = vmatpush1.bf16.msra.mxu0 %v5349_v17  ;;  %2108 = vmatpush1.bf16.msra.mxu1 %v5350_v50  ;;  %v5358_v17 = vld [vmem:[#allocation16_spill] sm:$0xff]  ;;  %v5359_v50 = vld [vmem:[#allocation14_spill] sm:$0xff] }
 0x6e1   :  { %2068 = vmatprep.subr.bf16.mxu0 %v5351_v57  ;;  %2109 = vmatprep.subr.bf16.mxu1 %v5352_v8  ;;  %v5360_v57 = vld [vmem:[#allocation18_spill] sm:$0xff]  ;;  %v5361_v8 = vld [vmem:[#allocation17_spill] sm:$0xff] }
 0x6e4   :  { %2069 = vmatpush1.bf16.msra.mxu0 %v5353_v58  ;;  %2110 = vmatpush1.bf16.msra.mxu1 %v5354_v59  ;;  %v5362_v58 = vld [vmem:[#allocation20_spill] sm:$0xff]  ;;  %v5363_v59 = vld [vmem:[#allocation19_spill] sm:$0xff] }
 0x6e5   :  { %2171 = vmatprep.subr.bf16.mxu0 %v5355_v46  ;;  %2212 = vmatprep.subr.bf16.mxu1 %v5356_v6  ;;  %v5364_v46 = vld [vmem:[#allocation21_spill] sm:$0xff]  ;;  %v5365_v6 = vld [vmem:[#allocation22_spill] sm:$0xff] }
 0x6e7   :  { %2071 = vmatmul.mubr.bf16.vlgmr.msra.gmra.mrb[44].mxu0 %v4211_v32  ;;  %2112 = vmatmul.mubr.bf16.vlgmr.msra.gmra.mrb[44].mxu1 %v4211_v32  ;;  %v5367_v32 = vld [vmem:[#allocation23_spill] sm:$0xff] }
 0x6e8   :  { %2172 = vmatpush1.bf16.msra.mxu0 %v5357_v41  ;;  %2213 = vmatpush1.bf16.msra.mxu1 %v5358_v17  ;;  %v5368_v41 = vld [vmem:[#allocation25_spill] sm:$0xff]  ;;  %v5369_v17 = vld [vmem:[#allocation26_spill] sm:$0xff] }
 0x6e9   :  { %2173 = vmatprep.subr.bf16.mxu0 %v5359_v50  ;;  %2214 = vmatprep.subr.bf16.mxu1 %v5360_v57  ;;  %v5370_v50 = vld [vmem:[#allocation28_spill] sm:$0xff]  ;;  %v5371_v57 = vld [vmem:[#allocation27_spill] sm:$0xff] }
 0x6ec   :  { %2174 = vmatpush1.bf16.msra.mxu0 %v5361_v8  ;;  %2215 = vmatpush1.bf16.msra.mxu1 %v5362_v58  ;;  %v5372_v8 = vld [vmem:[#allocation29_spill] sm:$0xff]  ;;  %v5373_v58 = vld [vmem:[#allocation30_spill] sm:$0xff] }
 0x6ed   :  { %2175 = vmatprep.subr.bf16.mxu0 %v5363_v59  ;;  %2216 = vmatprep.subr.bf16.mxu1 %v5364_v46  ;;  %v5374_v59 = vld [vmem:[#allocation32_spill] sm:$0xff]  ;;  %v5375_v46 = vld [vmem:[#allocation31_spill] sm:$0xff] }
 0x6f0   :  { %2176 = vmatpush1.bf16.msra.mxu0 %v5365_v6  ;;  %2217 = vmatpush1.bf16.msra.mxu1 %v5366_v12  ;;  %v5376_v6 = vld [vmem:[#allocation33_spill] sm:$0xff]  ;;  %v5377_v12 = vld [vmem:[#allocation34_spill] sm:$0xff] }
 0x6f1   :  { %2177 = vmatprep.subr.bf16.mxu0 %v5367_v32  ;;  %2218 = vmatprep.subr.bf16.mxu1 %v5368_v41  ;;  %v5378_v32 = vld [vmem:[#allocation36_spill] sm:$0xff]  ;;  %v5379_v41 = vld [vmem:[#allocation35_spill] sm:$0xff] }
 0x6f4   :  { %2178 = vmatpush1.bf16.msra.mxu0 %v5369_v17  ;;  %2219 = vmatpush1.bf16.msra.mxu1 %v5370_v50  ;;  %v5380_v17 = vld [vmem:[#allocation37_spill] sm:$0xff]  ;;  %v5381_v50 = vld [vmem:[#allocation38_spill] sm:$0xff] }
 0x6f5   :  { %2179 = vmatprep.subr.bf16.mxu0 %v5371_v57  ;;  %2220 = vmatprep.subr.bf16.mxu1 %v5372_v8  ;;  %v5382_v57 = vld [vmem:[#allocation40_spill] sm:$0xff]  ;;  %v5383_v8 = vld [vmem:[#allocation39_spill] sm:$0xff] }
 0x6f8   :  { %2180 = vmatpush1.bf16.msra.mxu0 %v5373_v58  ;;  %2221 = vmatpush1.bf16.msra.mxu1 %v5374_v59  ;;  %v5384_v58 = vld [vmem:[#allocation41_spill] sm:$0xff]  ;;  %v5385_v59 = vld [vmem:[#allocation42_spill] sm:$0xff] }
 0x6f9   :  { %2181 = vmatprep.subr.bf16.mxu0 %v5375_v46  ;;  %2222 = vmatprep.subr.bf16.mxu1 %v5376_v6  ;;  %v5386_v46 = vld [vmem:[#allocation44_spill] sm:$0xff]  ;;  %v5387_v6 = vld [vmem:[#allocation43_spill] sm:$0xff] }
 0x6fc   :  { %2182 = vmatpush1.bf16.msra.mxu0 %v5377_v12  ;;  %2223 = vmatpush1.bf16.msra.mxu1 %v5378_v32  ;;  %v5388_v12 = vld [vmem:[#allocation45_spill] sm:$0xff]  ;;  %v5389_v32 = vld [vmem:[#allocation46_spill] sm:$0xff] }
 0x6fd   :  { %2183 = vmatprep.subr.bf16.mxu0 %v5379_v41  ;;  %2224 = vmatprep.subr.bf16.mxu1 %v5380_v17  ;;  %v5390_v41 = vld [vmem:[#allocation48_spill] sm:$0xff]  ;;  %v5391_v17 = vld [vmem:[#allocation47_spill] sm:$0xff] }
 0x700   :  { %2184 = vmatpush1.bf16.msra.mxu0 %v5381_v50  ;;  %2225 = vmatpush1.bf16.msra.mxu1 %v5382_v57  ;;  %v5392_v50 = vld [vmem:[#allocation49_spill] sm:$0xff]  ;;  %v5393_v57 = vld [vmem:[#allocation50_spill] sm:$0xff] }
 0x701   :  { %2185 = vmatprep.subr.bf16.mxu0 %v5383_v8  ;;  %2226 = vmatprep.subr.bf16.mxu1 %v5384_v58  ;;  %v5394_v8 = vld [vmem:[#allocation52_spill] sm:$0xff]  ;;  %v5395_v58 = vld [vmem:[#allocation51_spill] sm:$0xff] }
 0x704   :  { %2186 = vmatpush1.bf16.msra.mxu0 %v5385_v59  ;;  %2227 = vmatpush1.bf16.msra.mxu1 %v5386_v46  ;;  %v5396_v59 = vld [vmem:[#allocation53_spill] sm:$0xff]  ;;  %v5397_v46 = vld [vmem:[#allocation54_spill] sm:$0xff] }
 0x705   :  { %2187 = vmatprep.subr.bf16.mxu0 %v5387_v6  ;;  %2228 = vmatprep.subr.bf16.mxu1 %v5388_v12  ;;  %v5398_v6 = vld [vmem:[#allocation56_spill] sm:$0xff]  ;;  %v5399_v12 = vld [vmem:[#allocation55_spill] sm:$0xff] }
 0x708   :  { %2188 = vmatpush1.bf16.msra.mxu0 %v5389_v32  ;;  %2229 = vmatpush1.bf16.msra.mxu1 %v5390_v41  ;;  %v5400_v32 = vld [vmem:[#allocation57_spill] sm:$0xff]  ;;  %v5401_v41 = vld [vmem:[#allocation59_spill] sm:$0xff] }
 0x709   :  { %2189 = vmatprep.subr.bf16.mxu0 %v5391_v17  ;;  %2230 = vmatprep.subr.bf16.mxu1 %v5392_v50  ;;  %v5402_v17 = vld [vmem:[#allocation61_spill] sm:$0xff]  ;;  %v5403_v50 = vld [vmem:[#allocation60_spill] sm:$0xff] }
 0x70c   :  { %2190 = vmatpush1.bf16.msra.mxu0 %v5393_v57  ;;  %2231 = vmatpush1.bf16.msra.mxu1 %v5394_v8  ;;  %v5404_v57 = vld [vmem:[#allocation62_spill] sm:$0xff]  ;;  %v5405_v8 = vld [vmem:[#allocation63_spill] sm:$0xff] }
 0x70d   :  { %2191 = vmatprep.subr.bf16.mxu0 %v5395_v58  ;;  %2232 = vmatprep.subr.bf16.mxu1 %v5396_v59  ;;  %v5406_v58 = vld [vmem:[#allocation65_spill] sm:$0xff]  ;;  %v5407_v59 = vld [vmem:[#allocation64_spill] sm:$0xff] }
 0x710   :  { %2192 = vmatpush1.bf16.msra.mxu0 %v5397_v46  ;;  %2233 = vmatpush1.bf16.msra.mxu1 %v5398_v6  ;;  %v5408_v46 = vld [vmem:[#allocation66_spill] sm:$0xff]  ;;  %v5409_v6 = vld [vmem:[#allocation67_spill] sm:$0xff] }
 0x711   :  { %2193 = vmatprep.subr.bf16.mxu0 %v5399_v12  ;;  %2234 = vmatprep.subr.bf16.mxu1 %v5400_v32  ;;  %v5410_v12 = vld [vmem:[#allocation69_spill] sm:$0xff]  ;;  %v5411_v32 = vld [vmem:[#allocation68_spill] sm:$0xff] }
 0x714   :  { %2194 = vmatpush1.bf16.msra.mxu0 %v5401_v41  ;;  %2235 = vmatpush1.bf16.msra.mxu1 %v5402_v17  ;;  %v5412_v41 = vld [vmem:[#allocation70_spill] sm:$0xff]  ;;  %v5413_v17 = vld [vmem:[#allocation71_spill] sm:$0xff] }
 0x715   :  { %2195 = vmatprep.subr.bf16.mxu0 %v5403_v50  ;;  %2236 = vmatprep.subr.bf16.mxu1 %v5404_v57  ;;  %v5414_v50 = vld [vmem:[#allocation73_spill] sm:$0xff]  ;;  %v5415_v57 = vld [vmem:[#allocation72_spill] sm:$0xff] }
 0x718   :  { %2196 = vmatpush1.bf16.msra.mxu0 %v5405_v8  ;;  %2237 = vmatpush1.bf16.msra.mxu1 %v5406_v58  ;;  %v5416_v8 = vld [vmem:[#allocation74_spill] sm:$0xff]  ;;  %v5417_v58 = vld [vmem:[#allocation75_spill] sm:$0xff] }
 0x719   :  { %2197 = vmatprep.subr.bf16.mxu0 %v5407_v59  ;;  %2238 = vmatprep.subr.bf16.mxu1 %v5408_v46  ;;  %v5418_v59 = vld [vmem:[#allocation77_spill] sm:$0xff]  ;;  %v5419_v46 = vld [vmem:[#allocation76_spill] sm:$0xff] }
 0x71c   :  { %2198 = vmatpush1.bf16.msra.mxu0 %v5409_v6  ;;  %2239 = vmatpush1.bf16.msra.mxu1 %v5410_v12  ;;  %v5420_v6 = vld [vmem:[#allocation78_spill] sm:$0xff]  ;;  %v2143_v12 = vld [vmem:[#allocation2 + $0xc0] sm:$0xff] }
 0x71d   :  { %2199 = vmatprep.subr.bf16.mxu0 %v5411_v32  ;;  %2240 = vmatprep.subr.bf16.mxu1 %v5412_v41  ;;  %v2144_v32 = vld [vmem:[#allocation2 + $0xc8] sm:$0xff] }
 0x720   :  { %2200 = vmatpush1.bf16.msra.mxu0 %v5413_v17  ;;  %2241 = vmatpush1.bf16.msra.mxu1 %v5414_v50  ;;  %v2145_v50 = vld [vmem:[#allocation2 + $0xd0] sm:$0xff] }
 0x721   :  { %2201 = vmatprep.subr.bf16.mxu0 %v5415_v57  ;;  %2242 = vmatprep.subr.bf16.mxu1 %v5416_v8 }
 0x724   :  { %2202 = vmatpush1.bf16.msra.mxu0 %v5417_v58  ;;  %2243 = vmatpush1.bf16.msra.mxu1 %v5418_v59 }
 0x725   :  { %2253 = vmatprep.subr.bf16.mxu0 %v5419_v46  ;;  %2294 = vmatprep.subr.bf16.mxu1 %v5420_v6 }
 0x77a   :  { %v1990_v14 = vpop.f32.mrb[40].mxu0  ;;  %v2031_v41 = vpop.f32.mrb[40].mxu1 }
 0x77b   :  { %v2147_v26 = vadd.f32 %v2143_v12, %v1990_v14  ;;  %v1992_v17 = vpop.f32.mrb[41].mxu0  ;;  %v2033_v42 = vpop.f32.mrb[41].mxu1  ;;  %v2149_v59 = vadd.f32 %v2145_v50, %v2031_v41 }
 0x77c   :  { %v2148_v63 = vadd.f32 %v2144_v32, %v1992_v17  ;;  %v1994_v57 = vpop.f32.mrb[42].mxu0  ;;  %v2035_v4 = vpop.f32.mrb[42].mxu1 }
 0x77d   :  { %v2151_v8 = vmul.f32 0.5, %v2147_v26  ;;  %v1995_v62 = vpop.f32.mrb[43].mxu0  ;;  %v2036_v58 = vpop.f32.mrb[43].mxu1 }
 0x77e   :  { %v2155_v55 = vmul.f32 0.5, %v2148_v63 }
 0x77f   :  { %2914 = vtanh.f32 %v2151_v8 }
 0x780   :  { %2916 = vtanh.f32 %v2155_v55 }
 0x781   :  { %2918 = vtanh.f32 %v2149_v59 }
 0x789   :  { %v2915_v6 = vpop.eup %2914 }
 0x78a   :  { %v2917_v46 = vpop.eup %2916  ;;  %v2153_v2 = vmul.f32 0.5, %v2915_v6 }
 0x78b   :  { %v2157_v54 = vmul.f32 0.5, %v2917_v46  ;;  %v2919_v14 = vpop.eup %2918 }
 0x78c   :  { %v2154_v33 = vadd.f32 0.5, %v2153_v2 }
 0x78d   :  { %v2158_v12 = vadd.f32 0.5, %v2157_v54  ;;  %v2146_v54 = vld [vmem:[#allocation2 + $0xd8] sm:$0xff] }
 0x78e   :  { %v2165_v34 = vmul.f32 %v2919_v14, %v2154_v33 }
 0x78f   :  { %v2164_v32 = vmul.f32 %v2158_v12, %v4200_v60 }
 0x791   :  { %v4346_v17 = vadd.f32 %v2165_v34, %v2164_v32  ;;  %v2150_v34 = vadd.f32 %v2146_v54, %v2033_v42 }
 0x793   :  { %5421 = vst [vmem:[#allocation79_spill] sm:$0xff] %v4346_v17  ;;  %v2160_v58 = vmul.f32 0.5, %v2150_v34 }
 0x7ba   :  { %v2072_v4 = vpop.f32.mrb[44].mxu0  ;;  %v2113_v62 = vpop.f32.mrb[44].mxu1 }
 0x7bb   :  { %v2120_v63 = vadd.f32 %v2072_v4, %v5053_v36  ;;  %v2074_v26 = vpop.f32.mrb[45].mxu0  ;;  %v2115_v41 = vpop.f32.mrb[45].mxu1  ;;  %v2122_v60 = vadd.f32 %v2113_v62, %v3615_v15  ;;  %v5446_v15 = vld [vmem:[#allocation138_spill] sm:$0xff]  ;;  %v5448_v36 = vld [vmem:[#allocation140_spill] sm:$0xff] }
 0x7bc   :  { %v2121_v55 = vadd.f32 %v2074_v26, %v5054_v29  ;;  %v2076_v50 = vpop.f32.mrb[46].mxu0  ;;  %v2117_v57 = vpop.f32.mrb[46].mxu1  ;;  %v2123_v33 = vadd.f32 %v2115_v41, %v3620_v38  ;;  %v5445_v38 = vld [vmem:[#allocation136_spill] sm:$0xff]  ;;  %v5447_v29 = vld [vmem:[#allocation139_spill] sm:$0xff] }
 0x7bd   :  { %v2124_v6 = vmul.f32 0.5, %v2120_v63  ;;  %v2077_v46 = vpop.f32.mrb[47].mxu0  ;;  %v2118_v2 = vpop.f32.mrb[47].mxu1 }
 0x7be   :  { %v2128_v8 = vmul.f32 0.5, %v2121_v55  ;;  %v2133_v59 = vmul.f32 0.5, %v2123_v33 }
 0x7bf   :  { %2920 = vtanh.f32 %v2124_v6 }
 0x7c0   :  { %2922 = vtanh.f32 %v2128_v8 }
 0x7c1   :  { %2924 = vtanh.f32 %v2122_v60 }
 0x7c2   :  { %2926 = vtanh.f32 %v2160_v58 }
 0x7c3   :  { %2928 = vtanh.f32 %v2133_v59 }
 0x7c4   :  { %2930 = vtanh.f32 %v4346_v17  ;;  %v5449_v17 = vld [vmem:[#allocation76_spill] sm:$0xff] }
 0x7c9   :  { %v2921_v14 = vpop.eup %2920 }
 0x7ca   :  { %v2923_v12 = vpop.eup %2922  ;;  %v2126_v32 = vmul.f32 0.5, %v2921_v14  ;;  %v5424_v14 = vld [vmem:[#allocation117_spill] sm:$0xff] }
 0x7cb   :  { %v2130_v4 = vmul.f32 0.5, %v2923_v12  ;;  %v2925_v26 = vpop.eup %2924  ;;  %v5425_v12 = vld [vmem:[#allocation116_spill] sm:$0xff] }
 0x7cc   :  { %v2127_v63 = vadd.f32 0.5, %v2126_v32  ;;  %v2927_v62 = vpop.eup %2926  ;;  %v5426_v32 = vld [vmem:[#allocation118_spill] sm:$0xff] }
 0x7cd   :  { %v2131_v55 = vadd.f32 0.5, %v2130_v4  ;;  %v2929_v41 = vpop.eup %2928  ;;  %v2162_v6 = vmul.f32 0.5, %v2927_v62  ;;  %v5427_v4 = vld [vmem:[#allocation119_spill] sm:$0xff]  ;;  %v5433_v62 = vld [vmem:[#allocation124_spill] sm:$0xff] }
 0x7ce   :  { %v2138_v50 = vmul.f32 %v2925_v26, %v2127_v63  ;;  %v2135_v46 = vmul.f32 0.5, %v2929_v41  ;;  %v2931_v2 = vpop.eup %2930  ;;  %v5428_v63 = vld [vmem:[#allocation121_spill] sm:$0xff]  ;;  %v5429_v26 = vld [vmem:[#allocation120_spill] sm:$0xff]  ;;  %v5434_v41 = vld [vmem:[#allocation126_spill] sm:$0xff] }
 0x7cf   :  { %v2137_v57 = vmul.f32 %v2131_v55, %v4208_v10  ;;  %v2163_v8 = vadd.f32 0.5, %v2162_v6  ;;  %v5423_v10 = vld [vmem:[#allocation115_spill] sm:$0xff]  ;;  %v5430_v55 = vld [vmem:[#allocation122_spill] sm:$0xff] }
 0x7d0   :  { %v2136_v54 = vadd.f32 0.5, %v2135_v46  ;;  %v5435_v6 = vld [vmem:[#allocation127_spill] sm:$0xff]  ;;  %v5436_v46 = vld [vmem:[#allocation129_spill] sm:$0xff] }
 0x7d1   :  { %v4354_v42 = vadd.f32 %v2138_v50, %v2137_v57  ;;  %v2168_v34 = vmul.f32 %v2931_v2, %v2163_v8  ;;  %v5431_v50 = vld [vmem:[#allocation123_spill] sm:$0xff]  ;;  %v5432_v57 = vld [vmem:[#allocation125_spill] sm:$0xff]  ;;  %v5437_v2 = vld [vmem:[#allocation128_spill] sm:$0xff] }
 0x7d2   :  { %v5438_v8 = vld [vmem:[#allocation130_spill] sm:$0xff] }
 0x7d3   :  { %5422 = vst [vmem:[#allocation81_spill] sm:$0xff] %v4354_v42  ;;  %2932 = vtanh.f32 %v4354_v42  ;;  %v4357_v59 = vpack.c.bf16 %v2168_v34, %v2168_v34  ;;  %v5441_v34 = vld [vmem:[#allocation132_spill] sm:$0xff]  ;;  %v5444_v42 = vld [vmem:[#allocation137_spill] sm:$0xff] }
 0x7dd   :  { %v2933_v60 = vpop.eup %2932 }
 0x7de   :  { %v2141_v33 = vmul.f32 %v2933_v60, %v2136_v54  ;;  %v5439_v54 = vld [vmem:[#allocation131_spill] sm:$0xff]  ;;  %v5440_v60 = vld [vmem:[#allocation133_spill] sm:$0xff] }
 0x7e0   :  { %v2170_v58 = vpack.c.bf16 %v2141_v33, %v2141_v33  ;;  %v5442_v33 = vld [vmem:[#allocation134_spill] sm:$0xff] }
 0x7e2   :  { %2203 = vmatprep.mubr.bf16.mxu0 %v2170_v58  ;;  %2244 = vmatprep.mubr.bf16.mxu1 %v2170_v58 }
 0x7e3   :  { %2204 = vmatmul.mubr.bf16.vlgmr.msra.gmra.mrb[48].mxu0 %v4357_v59  ;;  %2245 = vmatmul.mubr.bf16.vlgmr.msra.gmra.mrb[48].mxu1 %v4357_v59 }
 0x7e4   :  { %2254 = vmatpush1.bf16.msra.mxu0 %v4966_v18  ;;  %2295 = vmatpush1.bf16.msra.mxu1 %v4967_v30 }
 0x7e5   :  { %2285 = vmatprep.mubr.bf16.mxu0 %v2170_v58  ;;  %2326 = vmatprep.mubr.bf16.mxu1 %v2170_v58  ;;  %v5443_v58 = vld [vmem:[#allocation135_spill] sm:$0xff] }
 0x7e6   :  { %2255 = vmatprep.subr.bf16.mxu0 %v4968_v13  ;;  %2296 = vmatprep.subr.bf16.mxu1 %v4969_v19 }
 0x7e8   :  { %2256 = vmatpush1.bf16.msra.mxu0 %v4970_v61  ;;  %2297 = vmatpush1.bf16.msra.mxu1 %v4971_v31 }
 0x7e9   :  { %2257 = vmatprep.subr.bf16.mxu0 %v4972_v22  ;;  %2298 = vmatprep.subr.bf16.mxu1 %v5055_v23 }
 0x7ec   :  { %2258 = vmatpush1.bf16.msra.mxu0 %v5056_v43  ;;  %2299 = vmatpush1.bf16.msra.mxu1 %v5057_v1 }
 0x7ed   :  { %2259 = vmatprep.subr.bf16.mxu0 %v5058_v35  ;;  %2300 = vmatprep.subr.bf16.mxu1 %v5059_v3 }
 0x7f0   :  { %2260 = vmatpush1.bf16.msra.mxu0 %v5060_v45  ;;  %2301 = vmatpush1.bf16.msra.mxu1 %v5061_v44 }
 0x7f1   :  { %2261 = vmatprep.subr.bf16.mxu0 %v5062_v48  ;;  %2302 = vmatprep.subr.bf16.mxu1 %v5145_v37 }
 0x7f4   :  { %2262 = vmatpush1.bf16.msra.mxu0 %v5146_v25  ;;  %2303 = vmatpush1.bf16.msra.mxu1 %v5147_v39 }
 0x7f5   :  { %2263 = vmatprep.subr.bf16.mxu0 %v5148_v11  ;;  %2304 = vmatprep.subr.bf16.mxu1 %v5149_v56 }
 0x7f8   :  { %2264 = vmatpush1.bf16.msra.mxu0 %v5150_v49  ;;  %2305 = vmatpush1.bf16.msra.mxu1 %v5151_v16 }
 0x7f9   :  { %2265 = vmatprep.subr.bf16.mxu0 %v5152_v9  ;;  %2306 = vmatprep.subr.bf16.mxu1 %v5153_v0 }
 0x7fc   :  { %2266 = vmatpush1.bf16.msra.mxu0 %v5154_v47  ;;  %2307 = vmatpush1.bf16.msra.mxu1 %v5155_v7 }
 0x7fd   :  { %2267 = vmatprep.subr.bf16.mxu0 %v5074_v28  ;;  %2308 = vmatprep.subr.bf16.mxu1 %v5075_v53 }
 0x800   :  { %2268 = vmatpush1.bf16.msra.mxu0 %v5076_v27  ;;  %2309 = vmatpush1.bf16.msra.mxu1 %v5156_v5 }
 0x801   :  { %2269 = vmatprep.subr.bf16.mxu0 %v5078_v24  ;;  %2310 = vmatprep.subr.bf16.mxu1 %v5079_v20 }
 0x804   :  { %2270 = vmatpush1.bf16.msra.mxu0 %v5080_v21  ;;  %2311 = vmatpush1.bf16.msra.mxu1 %v5081_v52 }
 0x805   :  { %2271 = vmatprep.subr.bf16.mxu0 %v5082_v40  ;;  %2312 = vmatprep.subr.bf16.mxu1 %v5083_v51 }
 0x808   :  { %2272 = vmatpush1.bf16.msra.mxu0 %v5423_v10  ;;  %2313 = vmatpush1.bf16.msra.mxu1 %v5424_v14 }
 0x809   :  { %2273 = vmatprep.subr.bf16.mxu0 %v5425_v12  ;;  %2314 = vmatprep.subr.bf16.mxu1 %v5426_v32 }
 0x80c   :  { %2274 = vmatpush1.bf16.msra.mxu0 %v5427_v4  ;;  %2315 = vmatpush1.bf16.msra.mxu1 %v5428_v63 }
 0x80d   :  { %2275 = vmatprep.subr.bf16.mxu0 %v5429_v26  ;;  %2316 = vmatprep.subr.bf16.mxu1 %v5430_v55 }
 0x810   :  { %2276 = vmatpush1.bf16.msra.mxu0 %v5431_v50  ;;  %2317 = vmatpush1.bf16.msra.mxu1 %v5432_v57 }
 0x811   :  { %2277 = vmatprep.subr.bf16.mxu0 %v5433_v62  ;;  %2318 = vmatprep.subr.bf16.mxu1 %v5434_v41 }
 0x814   :  { %2278 = vmatpush1.bf16.msra.mxu0 %v5435_v6  ;;  %2319 = vmatpush1.bf16.msra.mxu1 %v5436_v46 }
 0x815   :  { %2279 = vmatprep.subr.bf16.mxu0 %v5437_v2  ;;  %2320 = vmatprep.subr.bf16.mxu1 %v5438_v8 }
 0x818   :  { %2280 = vmatpush1.bf16.msra.mxu0 %v5439_v54  ;;  %2321 = vmatpush1.bf16.msra.mxu1 %v5440_v60  ;;  %v5450_v54 = vld [vmem:[#allocation78_spill] sm:$0xff] }
 0x819   :  { %2281 = vmatprep.subr.bf16.mxu0 %v5441_v34  ;;  %2322 = vmatprep.subr.bf16.mxu1 %v5442_v33 }
 0x81c   :  { %2282 = vmatpush1.bf16.msra.mxu0 %v5443_v58  ;;  %2323 = vmatpush1.bf16.msra.mxu1 %v5444_v42 }
 0x81d   :  { %2283 = vmatprep.subr.bf16.mxu0 %v5445_v38  ;;  %2324 = vmatprep.subr.bf16.mxu1 %v5446_v15 }
 0x820   :  { %2284 = vmatpush1.bf16.msra.mxu0 %v5447_v29  ;;  %2325 = vmatpush1.bf16.msra.mxu1 %v5448_v36 }
 0x821   :  { %2386 = vmatprep.subr.bf16.mxu0 %v5449_v17  ;;  %2427 = vmatprep.subr.bf16.mxu1 %v5450_v54 }
 0x823   :  { %2286 = vmatmul.mubr.bf16.vlgmr.msra.gmra.mrb[52].mxu0 %v4357_v59  ;;  %2327 = vmatmul.mubr.bf16.vlgmr.msra.gmra.mrb[52].mxu1 %v4357_v59  ;;  %v5454_v59 = vld [vmem:[#allocation141_spill] sm:$0xff] }
 0x824   :  { %2387 = vmatpush1.bf16.msra.mxu0 %v4966_v18  ;;  %2428 = vmatpush1.bf16.msra.mxu1 %v4967_v30  ;;  %v5451_v18 = vld [vmem:[#allocation131_spill] sm:$0xff] }
 0x825   :  { %2388 = vmatprep.subr.bf16.mxu0 %v4968_v13  ;;  %2429 = vmatprep.subr.bf16.mxu1 %v4969_v19  ;;  %v2358_v30 = vld [vmem:[#allocation2 + $0xe0] sm:$0xff]  ;;  %v2359_v13 = vld [vmem:[#allocation2 + $0xe8] sm:$0xff] }
 0x828   :  { %2389 = vmatpush1.bf16.msra.mxu0 %v4970_v61  ;;  %2430 = vmatpush1.bf16.msra.mxu1 %v4971_v31 }
 0x829   :  { %2390 = vmatprep.subr.bf16.mxu0 %v4972_v22  ;;  %2431 = vmatprep.subr.bf16.mxu1 %v5055_v23 }
 0x82c   :  { %2391 = vmatpush1.bf16.msra.mxu0 %v5056_v43  ;;  %2432 = vmatpush1.bf16.msra.mxu1 %v5057_v1  ;;  %v2360_v43 = vld [vmem:[#allocation2 + $0xf0] sm:$0xff] }
 0x82d   :  { %2392 = vmatprep.subr.bf16.mxu0 %v5058_v35  ;;  %2433 = vmatprep.subr.bf16.mxu1 %v5059_v3 }
 0x830   :  { %2393 = vmatpush1.bf16.msra.mxu0 %v5060_v45  ;;  %2434 = vmatpush1.bf16.msra.mxu1 %v5061_v44 }
 0x831   :  { %2394 = vmatprep.subr.bf16.mxu0 %v5062_v48  ;;  %2435 = vmatprep.subr.bf16.mxu1 %v5145_v37  ;;  %v5452_v37 = vld [vmem:[#allocation79_spill] sm:$0xff] }
 0x834   :  { %2395 = vmatpush1.bf16.msra.mxu0 %v5146_v25  ;;  %2436 = vmatpush1.bf16.msra.mxu1 %v5147_v39 }
 0x835   :  { %2396 = vmatprep.subr.bf16.mxu0 %v5148_v11  ;;  %2437 = vmatprep.subr.bf16.mxu1 %v5149_v56 }
 0x838   :  { %2397 = vmatpush1.bf16.msra.mxu0 %v5150_v49  ;;  %2438 = vmatpush1.bf16.msra.mxu1 %v5151_v16 }
 0x839   :  { %2398 = vmatprep.subr.bf16.mxu0 %v5152_v9  ;;  %2439 = vmatprep.subr.bf16.mxu1 %v5153_v0 }
 0x83c   :  { %2399 = vmatpush1.bf16.msra.mxu0 %v5154_v47  ;;  %2440 = vmatpush1.bf16.msra.mxu1 %v5155_v7  ;;  %v5453_v7 = vld [vmem:[#allocation58_spill] sm:$0xff] }
 0x83d   :  { %2400 = vmatprep.subr.bf16.mxu0 %v5074_v28  ;;  %2441 = vmatprep.subr.bf16.mxu1 %v5075_v53 }
 0x840   :  { %2401 = vmatpush1.bf16.msra.mxu0 %v5076_v27  ;;  %2442 = vmatpush1.bf16.msra.mxu1 %v5156_v5 }
 0x841   :  { %2402 = vmatprep.subr.bf16.mxu0 %v5078_v24  ;;  %2443 = vmatprep.subr.bf16.mxu1 %v5079_v20 }
 0x844   :  { %2403 = vmatpush1.bf16.msra.mxu0 %v5080_v21  ;;  %2444 = vmatpush1.bf16.msra.mxu1 %v5081_v52 }
 0x845   :  { %2404 = vmatprep.subr.bf16.mxu0 %v5082_v40  ;;  %2445 = vmatprep.subr.bf16.mxu1 %v5083_v51 }
 0x848   :  { %2405 = vmatpush1.bf16.msra.mxu0 %v5423_v10  ;;  %2446 = vmatpush1.bf16.msra.mxu1 %v5424_v14 }
 0x849   :  { %2406 = vmatprep.subr.bf16.mxu0 %v5425_v12  ;;  %2447 = vmatprep.subr.bf16.mxu1 %v5426_v32 }
 0x84c   :  { %2407 = vmatpush1.bf16.msra.mxu0 %v5427_v4  ;;  %2448 = vmatpush1.bf16.msra.mxu1 %v5428_v63 }
 0x84d   :  { %2408 = vmatprep.subr.bf16.mxu0 %v5429_v26  ;;  %2449 = vmatprep.subr.bf16.mxu1 %v5430_v55  ;;  %v5455_v55 = vld [vmem:[#allocation142_spill] sm:$0xff] }
 0x850   :  { %2409 = vmatpush1.bf16.msra.mxu0 %v5431_v50  ;;  %2450 = vmatpush1.bf16.msra.mxu1 %v5432_v57  ;;  %v5456_v57 = vld [vmem:[#allocation143_spill] sm:$0xff] }
 0x851   :  { %2410 = vmatprep.subr.bf16.mxu0 %v5433_v62  ;;  %2451 = vmatprep.subr.bf16.mxu1 %v5434_v41 }
 0x854   :  { %2411 = vmatpush1.bf16.msra.mxu0 %v5435_v6  ;;  %2452 = vmatpush1.bf16.msra.mxu1 %v5436_v46 }
 0x855   :  { %2412 = vmatprep.subr.bf16.mxu0 %v5437_v2  ;;  %2453 = vmatprep.subr.bf16.mxu1 %v5438_v8 }
 0x858   :  { %2413 = vmatpush1.bf16.msra.mxu0 %v5451_v18  ;;  %2454 = vmatpush1.bf16.msra.mxu1 %v5440_v60 }
 0x859   :  { %2414 = vmatprep.subr.bf16.mxu0 %v5441_v34  ;;  %2455 = vmatprep.subr.bf16.mxu1 %v5442_v33 }
 0x85c   :  { %2415 = vmatpush1.bf16.msra.mxu0 %v5443_v58  ;;  %2456 = vmatpush1.bf16.msra.mxu1 %v5444_v42  ;;  %v5457_v58 = vld [vmem:[#allocation81_spill] sm:$0xff] }
 0x85d   :  { %2416 = vmatprep.subr.bf16.mxu0 %v5445_v38  ;;  %2457 = vmatprep.subr.bf16.mxu1 %v5446_v15 }
 0x860   :  { %2417 = vmatpush1.bf16.msra.mxu0 %v5447_v29  ;;  %2458 = vmatpush1.bf16.msra.mxu1 %v5448_v36  ;;  %v2361_v29 = vld [vmem:[#allocation2 + $0xf8] sm:$0xff] }
 0x8b6   :  { %v2205_v19 = vpop.f32.mrb[48].mxu0  ;;  %v2246_v61 = vpop.f32.mrb[48].mxu1 }
 0x8b7   :  { %v2362_v31 = vadd.f32 %v2358_v30, %v2205_v19  ;;  %v2207_v22 = vpop.f32.mrb[49].mxu0  ;;  %v2248_v23 = vpop.f32.mrb[49].mxu1  ;;  %v2364_v15 = vadd.f32 %v2360_v43, %v2246_v61 }
 0x8b8   :  { %v2363_v1 = vadd.f32 %v2359_v13, %v2207_v22  ;;  %v2209_v35 = vpop.f32.mrb[50].mxu0  ;;  %v2250_v3 = vpop.f32.mrb[50].mxu1  ;;  %v2365_v36 = vadd.f32 %v2361_v29, %v2248_v23  ;;  %v2803_v29 = vld [vmem:[#allocation7 + $0x38] sm:$0xff]  }
 0x8b9   :  { %v2366_v45 = vmul.f32 0.5, %v2362_v31  ;;  %v2210_v44 = vpop.f32.mrb[51].mxu0  ;;  %v2251_v38 = vpop.f32.mrb[51].mxu1  ;;  %v3066_v35 = vmov 0.0   ;;  %v2797_v3 = vld [vmem:[#allocation7 + $0x8] sm:$0xff]  }
 0x8ba   :  { %v2370_v48 = vmul.f32 0.5, %v2363_v1  ;;  %v2375_v28 = vmul.f32 0.5, %v2365_v36  ;;  %v2796_v1 = vld [vmem:[#allocation7] sm:$0xff]   ;;  %2765 = vmatprep.subr.bf16.mxu0 %v3066_v35  ;;  %v2799_v44 = vld [vmem:[#allocation7 + $0x18] sm:$0xff]  }
 0x8bb   :  { %2934 = vtanh.f32 %v2366_v45  ;;  %v2798_v45 = vld [vmem:[#allocation7 + $0x10] sm:$0xff]   ;;  %v2800_v38 = vld [vmem:[#allocation7 + $0x20] sm:$0xff]  }
 0x8bc   :  { %2936 = vtanh.f32 %v2370_v48  ;;  %v2801_v48 = vld [vmem:[#allocation7 + $0x28] sm:$0xff]  }
 0x8bd   :  { %2938 = vtanh.f32 %v2364_v15  ;;  %v2802_v15 = vld [vmem:[#allocation7 + $0x30] sm:$0xff]  }
 0x8be   :  { %2940 = vtanh.f32 %v2375_v28 }
 0x8c5   :  { %v2935_v53 = vpop.eup %2934 }
 0x8c6   :  { %v2937_v27 = vpop.eup %2936  ;;  %v2368_v24 = vmul.f32 0.5, %v2935_v53 }
 0x8c7   :  { %v2372_v20 = vmul.f32 0.5, %v2937_v27  ;;  %v2939_v52 = vpop.eup %2938 }
 0x8c8   :  { %v2369_v21 = vadd.f32 0.5, %v2368_v24  ;;  %v2941_v11 = vpop.eup %2940 }
 0x8c9   :  { %v2373_v40 = vadd.f32 0.5, %v2372_v20  ;;  %v2377_v56 = vmul.f32 0.5, %v2941_v11 }
 0x8ca   :  { %v2380_v51 = vmul.f32 %v2939_v52, %v2369_v21 }
 0x8cb   :  { %v2379_v25 = vmul.f32 %v2373_v40, %v5452_v37  ;;  %v2378_v49 = vadd.f32 0.5, %v2377_v56 }
 0x8cd   :  { %v2381_v39 = vadd.f32 %v2380_v51, %v2379_v25 }
 0x8cf   :  { %2942 = vtanh.f32 %v2381_v39 }
 0x8d9   :  { %v2943_v16 = vpop.eup %2942 }
 0x8da   :  { %v2383_v9 = vmul.f32 %v2943_v16, %v2378_v49 }
 0x8dc   :  { %v2384_v43 = vpack.c.bf16 %v2383_v9, %v2383_v9 }
 0x8f6   :  { %v2287_v0 = vpop.f32.mrb[52].mxu0  ;;  %v2328_v47 = vpop.f32.mrb[52].mxu1 }
 0x8f7   :  { %v2335_v5 = vadd.f32 %v2287_v0, %v5453_v7  ;;  %v2289_v17 = vpop.f32.mrb[53].mxu0  ;;  %v2330_v42 = vpop.f32.mrb[53].mxu1  ;;  %v2337_v50 = vadd.f32 %v2328_v47, %v5455_v55 }
 0x8f8   :  { %v2336_v10 = vadd.f32 %v2289_v17, %v5454_v59  ;;  %v2291_v14 = vpop.f32.mrb[54].mxu0  ;;  %v2332_v12 = vpop.f32.mrb[54].mxu1  ;;  %v2338_v62 = vadd.f32 %v2330_v42, %v5456_v57 }
 0x8f9   :  { %v2339_v32 = vmul.f32 0.5, %v2335_v5  ;;  %v2292_v4 = vpop.f32.mrb[55].mxu0  ;;  %v2333_v63 = vpop.f32.mrb[55].mxu1 }
 0x8fa   :  { %v2343_v26 = vmul.f32 0.5, %v2336_v10  ;;  %v2348_v41 = vmul.f32 0.5, %v2338_v62 }
 0x8fb   :  { %2944 = vtanh.f32 %v2339_v32 }
 0x8fc   :  { %2946 = vtanh.f32 %v2343_v26  ;;  %v2747_v26 = vld [vmem:[%s4522_s4] ss:$0 sm:$0xff] }
 0x8fd   :  { %2948 = vtanh.f32 %v2337_v50 }
 0x8fe   :  { %2950 = vtanh.f32 %v2348_v41 }
 0x905   :  { %v2945_v6 = vpop.eup %2944 }
 0x906   :  { %v2947_v46 = vpop.eup %2946  ;;  %v2341_v2 = vmul.f32 0.5, %v2945_v6 }
 0x907   :  { %v2345_v8 = vmul.f32 0.5, %v2947_v46  ;;  %v2949_v60 = vpop.eup %2948 }
 0x908   :  { %v2342_v54 = vadd.f32 0.5, %v2341_v2  ;;  %v2951_v13 = vpop.eup %2950 }
 0x909   :  { %v2346_v34 = vadd.f32 0.5, %v2345_v8  ;;  %v2350_v19 = vmul.f32 0.5, %v2951_v13 }
 0x90a   :  { %v2353_v33 = vmul.f32 %v2949_v60, %v2342_v54 }
 0x90b   :  { %v2352_v18 = vmul.f32 %v2346_v34, %v5457_v58  ;;  %v2351_v61 = vadd.f32 0.5, %v2350_v19 }
 0x90d   :  { %v4495_v30 = vadd.f32 %v2353_v33, %v2352_v18 }
 0x90f   :  { %2952 = vtanh.f32 %v4495_v30 }
 0x919   :  { %v2953_v31 = vpop.eup %2952 }
 0x91a   :  { %v2356_v22 = vmul.f32 %v2953_v31, %v2351_v61 }
 0x91c   :  { %v2385_v23 = vpack.c.bf16 %v2356_v22, %v2356_v22 }
 0x91e   :  { %2418 = vmatprep.mubr.bf16.mxu0 %v2385_v23  ;;  %2459 = vmatprep.mubr.bf16.mxu1 %v2385_v23 }
 0x91f   :  { %2419 = vmatmul.mubr.bf16.vlgmr.msra.gmra.mrb[56].mxu0 %v2384_v43  ;;  %2460 = vmatmul.mubr.bf16.vlgmr.msra.gmra.mrb[56].mxu1 %v2384_v43 }
 0x920   :  { %2766 = vmatpush3.bf16.msra.mxu0 %v2796_v1  ;;  %2781 = vmatprep.mubr.msk.bf16.mxu0 %vm3067_vm0, %v3066_v35 }
 0x921   :  { %2767 = vmatprep.subr.bf16.mxu0 %v3066_v35 }
 0x924   :  { %2768 = vmatpush3.bf16.msra.mxu0 %v2797_v3 }
 0x925   :  { %2769 = vmatprep.subr.bf16.mxu0 %v3066_v35 }
 0x928   :  { %2770 = vmatpush3.bf16.msra.mxu0 %v2798_v45 }
 0x929   :  { %2771 = vmatprep.subr.bf16.mxu0 %v3066_v35 }
 0x92c   :  { %2772 = vmatpush3.bf16.msra.mxu0 %v2799_v44 }
 0x92d   :  { %2773 = vmatprep.subr.bf16.mxu0 %v3066_v35 }
 0x930   :  { %2774 = vmatpush3.bf16.msra.mxu0 %v2800_v38 }
 0x931   :  { %2775 = vmatprep.subr.bf16.mxu0 %v3066_v35 }
 0x934   :  { %2776 = vmatpush3.bf16.msra.mxu0 %v2801_v48 }
 0x935   :  { %2777 = vmatprep.subr.bf16.mxu0 %v3066_v35 }
 0x938   :  { %2778 = vmatpush3.bf16.msra.mxu0 %v2802_v15 }
 0x939   :  { %2779 = vmatprep.subr.bf16.mxu0 %v3066_v35 }
 0x93c   :  { %2780 = vmatpush3.bf16.msra.mxu0 %v2803_v29 }
 0x9f2   :  { %v2420_v36 = vpop.f32.mrb[56].mxu0  ;;  %v2461_v28 = vpop.f32.mrb[56].mxu1 }
 0x9f3   :  { %v2468_v53 = vadd.f32 %v2420_v36, %v5453_v7  ;;  %v2422_v27 = vpop.f32.mrb[57].mxu0  ;;  %v2463_v24 = vpop.f32.mrb[57].mxu1  ;;  %v2470_v39 = vadd.f32 %v2461_v28, %v5455_v55 }
 0x9f4   :  { %v2469_v20 = vadd.f32 %v2422_v27, %v5454_v59  ;;  %v2424_v21 = vpop.f32.mrb[58].mxu0  ;;  %v2465_v52 = vpop.f32.mrb[58].mxu1  ;;  %v2471_v11 = vadd.f32 %v2463_v24, %v5456_v57 }
 0x9f5   :  { %v2472_v40 = vmul.f32 0.5, %v2468_v53  ;;  %v2425_v51 = vpop.f32.mrb[59].mxu0  ;;  %v2466_v37 = vpop.f32.mrb[59].mxu1 }
 0x9f6   :  { %v2476_v25 = vmul.f32 0.5, %v2469_v20  ;;  %v2481_v56 = vmul.f32 0.5, %v2471_v11 }
 0x9f7   :  { %2954 = vtanh.f32 %v2472_v40 }
 0x9f8   :  { %2956 = vtanh.f32 %v2476_v25 }
 0x9f9   :  { %2958 = vtanh.f32 %v2470_v39 }
 0x9fa   :  { %2960 = vtanh.f32 %v2481_v56 }
 0xa01   :  { %v2955_v49 = vpop.eup %2954 }
 0xa02   :  { %v2957_v16 = vpop.eup %2956  ;;  %v2474_v9 = vmul.f32 0.5, %v2955_v49 }
 0xa03   :  { %v2478_v0 = vmul.f32 0.5, %v2957_v16  ;;  %v2959_v7 = vpop.eup %2958 }
 0xa04   :  { %v2475_v47 = vadd.f32 0.5, %v2474_v9  ;;  %v2961_v10 = vpop.eup %2960 }
 0xa05   :  { %v2479_v5 = vadd.f32 0.5, %v2478_v0  ;;  %v2483_v14 = vmul.f32 0.5, %v2961_v10 }
 0xa06   :  { %v2486_v17 = vmul.f32 %v2959_v7, %v2475_v47 }
 0xa07   :  { %v2485_v42 = vmul.f32 %v2479_v5, %v4495_v30  ;;  %v2484_v12 = vadd.f32 0.5, %v2483_v14 }
 0xa09   :  { %v2487_v59 = vadd.f32 %v2486_v17, %v2485_v42 }
 0xa0b   :  { %2962 = vtanh.f32 %v2487_v59 }
 0xa15   :  { %v2963_v32 = vpop.eup %2962 }
 0xa16   :  { %v2489_v4 = vmul.f32 %v2963_v32, %v2484_v12 }
 0xa18   :  { %v2490_v63 = vpack.c.bf16 %v2489_v4, %v2489_v4 }
 0xa1a   :  { %2782 = vmatmul.mubr.bf16.vlgmr.msra.gmra.mrb[60].mxu0 %v2490_v63 }
 0xaed   :  { %v2596_v55 = vpop.f32.mrb[60].mxu0 }
 0xaee   :  { %v2597_v50 = vadd.f32 %v2747_v26, %v2596_v55  ;;  %v2783_v57 = vpop.f32.mrb[61].mxu0 }
 0xaef   :  { %v2599_v62 = vpop.f32.mrb[62].mxu0 }
 0xaf0   :  { %2602 = vst [vmem:[#allocation8] sm:$0xff] %v2597_v50  ;;  %v2784_v41 = vpop.f32.mrb[63].mxu0 }
 0xaf1   :  { %3041 = shalt.err (!%p3038_p0)
}
 0xaf2   :  { %s3042_s4 = scalar_lea.hbm %s4523_s5, 128 }
 0xaf3   :  { %p3043_p1 = scmp.ne.s32.totalorder %s4523_s5, %s3042_s4  ;;  %p3046_p2 = scmp.lt.u32.totalorder %s3042_s4, %s4523_s5 }
 0xaf5   :  { %p3048_p3 = pnand %p3046_p2, %p3043_p1 }
 0xaf7   :  { %3051 = shalt.err (!%p3048_p3)
}
 0xaf8   :  { %2612 = dma.vmem_to_hbm [thread:$0]  %s2610_s9, 128, %s4523_s5, [#allocation4]  }
 0xaf9   :  { %3056 = dma.done.wait [#allocation4], 128  }
 0xafa   :  { %3057 = vsyncadd [#allocation4], 4294967168 }
 0xafb   :  { %2616 = vsyncpa [#allocation3], 1 }
 0xafc   :  { %2617 = vsyncpa [#allocation6], 1 }
 0xafd   :  { %2618 = vsyncpa [#allocation4], 1 }

</bundles_post_ra>
